<compile_context>
chip_gen: v7x
topology: tpu7x:2x2x1
jax: 0.10.0
libtpu: 0.0.40
codegen_flags: <defaults>
</compile_context>

<pallas_src>
import jax
import jax.numpy as jnp
from jax.experimental import pallas as pl
from jax.experimental.pallas import tpu as pltpu


G = 32  # batch rows packed per lane-dense row (32 * n_output == 128 lanes)


def controlnet_kernel(x_ref, gate_ref, w1_ref, b1_ref, w2_ref, b2_ref,
                      w3_ref, b3_ref, o_ref):
    """One batch tile: 3 dense matmuls + ReLUs + elementwise gate, all lane-dense."""
    x = x_ref[...]                                                    # (tb/G, G*n_in)
    h1 = jnp.dot(x, w1_ref[...], preferred_element_type=jnp.float32) + b1_ref[...]
    h1 = jnp.maximum(h1, 0.0)                                         # ReLU
    h2 = jnp.dot(h1, w2_ref[...], preferred_element_type=jnp.float32) + b2_ref[...]
    h2 = jnp.maximum(h2, 0.0)                                         # ReLU
    out = jnp.dot(h2, w3_ref[...], preferred_element_type=jnp.float32) + b3_ref[...]
    o_ref[...] = out * gate_ref[...]                                  # gate by data[:, 0:4]


def _round_up(x, m):
    return (x + m - 1) // m * m


def expand_params(w1, b1, w2, b2, w3, b3):
    """One-time expansion to block-diagonal, lane-packed form (cache in practice)."""
    eye = jnp.eye(G, dtype=jnp.float32)
    w1b = jnp.kron(eye, w1)            # (G*n_in,  G*n_hid)
    w2b = jnp.kron(eye, w2)            # (G*n_hid, G*n_hid)
    w3b = jnp.kron(eye, w3)            # (G*n_hid, G*n_out)
    b1b = jnp.tile(b1, (1, G))         # (1, G*n_hid)
    b2b = jnp.tile(b2, (1, G))
    b3b = jnp.tile(b3, (1, G))         # (1, G*n_out) == (1, 128)
    return w1b, b1b, w2b, b2b, w3b, b3b


def controlnet_forward(data, w1, b1, w2, b2, w3, b3, *, tb=2048):
    """data: (B, n_input) f32; W_i stored pre-transposed as (in, out); b_i as (1, out)."""
    B, n_in = data.shape
    n_hid = w1.shape[1]
    n_out = w3.shape[1]
    # The gate `out * data[:, 0:4]` only broadcasts correctly when n_output == 4.
    assert n_out == 4 and n_in >= 4, "ControlNet gate requires n_output == 4 and n_input >= 4"
    assert G * n_out == 128  # packed output row == exactly one 128-lane vreg row

    # Batch tile: multiple of 256 rows (=> packed sublanes are a multiple of 8);
    # for small batches this collapses to a single grid step.
    tb = max(256, (tb // 256) * 256)
    tb = min(tb, _round_up(B, 256))
    B_pad = _round_up(B, tb)
    if B_pad != B:
        data = jnp.pad(data, ((0, B_pad - B), (0, 0)))  # padded rows gate to 0, dropped below

    # Lane-dense packed views (row-major layout identical to the (B, n) originals).
    x_packed = data.reshape(B_pad // G, G * n_in)                    # (B/G, G*n_in)
    gate_packed = data[:, :n_out].reshape(B_pad // G, G * n_out)     # (B/G, 128)
    w1b, b1b, w2b, b2b, w3b, b3b = expand_params(w1, b1, w2, b2, w3, b3)

    grid = (B_pad // tb,)
    tbp = tb // G                                                    # packed rows per tile
    rep = lambda i: (0, 0)  # constant index_map -> weights DMA'd once, kept resident
    # (pl.Buffered(1) on the weight specs would halve their VMEM; not needed at ~11 MiB.)

    out_packed = pl.pallas_call(
        controlnet_kernel,
        out_shape=jax.ShapeDtypeStruct((B_pad // G, G * n_out), jnp.float32),
        grid_spec=pltpu.PrefetchScalarGridSpec(
            num_scalar_prefetch=0,
            grid=grid,
            in_specs=[
                pl.BlockSpec((tbp, G * n_in), lambda i: (i, 0)),     # packed data tile
                pl.BlockSpec((tbp, G * n_out), lambda i: (i, 0)),    # packed gate tile
                pl.BlockSpec((G * n_in, G * n_hid), rep),            # W1 (block-diagonal)
                pl.BlockSpec((1, G * n_hid), rep),                   # b1
                pl.BlockSpec((G * n_hid, G * n_hid), rep),           # W2 (block-diagonal)
                pl.BlockSpec((1, G * n_hid), rep),                   # b2
                pl.BlockSpec((G * n_hid, G * n_out), rep),           # W3 (block-diagonal)
                pl.BlockSpec((1, G * n_out), rep),                   # b3
            ],
            out_specs=pl.BlockSpec((tbp, G * n_out), lambda i: (i, 0)),
        ),
        compiler_params=pltpu.CompilerParams(
            dimension_semantics=("parallel",),        # batch grid shards across TCs (v7x)
            vmem_limit_bytes=32 * 1024 * 1024,        # headroom for resident expanded weights
        ),
    )(x_packed, gate_packed, w1b, b1b, w2b, b2b, w3b, b3b)

    # Free view back to (B, n_output); drop batch padding.
    return out_packed.reshape(B_pad, n_out)[:B]


def init_linear_params(key, fan_in, fan_out):
    # Deterministic init mimicking torch.nn.Linear (U[-1/sqrt(fan_in), 1/sqrt(fan_in)]).
    kw, kb = jax.random.split(key)
    bound = 1.0 / jnp.sqrt(jnp.float32(fan_in))
    # Stored as (in, out) == PyTorch weight (out, in) transposed.
    w = jax.random.uniform(kw, (fan_in, fan_out), jnp.float32, -bound, bound)
    b = jax.random.uniform(kb, (1, fan_out), jnp.float32, -bound, bound)
    return w, b


def controlnet_ref(data, w1, b1, w2, b2, w3, b3):
    h1 = jnp.maximum(data @ w1 + b1, 0.0)
    h2 = jnp.maximum(h1 @ w2 + b2, 0.0)
    out = h2 @ w3 + b3
    return out * data[:, 0:4]


if __name__ == "__main__":
    # Small shapes consistent with the module; n_output must be 4 (out * data[:, 0:4]).
    B, n_input, n_hidden, n_output = 1024, 8, 32, 4

    key = jax.random.PRNGKey(0)
    k_x, k1, k2, k3 = jax.random.split(key, 4)

    data = jax.random.normal(k_x, (B, n_input), jnp.float32)
    w1, b1 = init_linear_params(k1, n_input, n_hidden)
    w2, b2 = init_linear_params(k2, n_hidden, n_hidden)
    w3, b3 = init_linear_params(k3, n_hidden, n_output)

    # tb=256 -> grid of 4 batch tiles (exercises the pipelined / megacore path).
    out = controlnet_forward(data, w1, b1, w2, b2, w3, b3, tb=256)
    out = jax.block_until_ready(out)

    ref = controlnet_ref(data, w1, b1, w2, b2, w3, b3)
    assert out.shape == (B, n_output)
    # The block-diagonal packed formulation accumulates the same products with
    # interleaved exact zeros; 1e-4 leaves margin for TPU matmul pass ordering.
    assert jnp.allclose(out, ref, atol=1e-4, rtol=1e-4), "Pallas kernel mismatch vs JAX reference"

    print("KERNEL_OK")
</pallas_src>

<mosaic_0001>
module attributes {stable_mosaic.version = 11 : i64} {
  func.func @controlnet_kernel(%arg0: i32, %arg1: memref<8x256xf32, #tpu.memory_space<vmem>>, %arg2: memref<8x128xf32, #tpu.memory_space<vmem>>, %arg3: memref<256x1024xf32, #tpu.memory_space<vmem>>, %arg4: memref<1x1024xf32, #tpu.memory_space<vmem>>, %arg5: memref<1024x1024xf32, #tpu.memory_space<vmem>>, %arg6: memref<1x1024xf32, #tpu.memory_space<vmem>>, %arg7: memref<1024x128xf32, #tpu.memory_space<vmem>>, %arg8: memref<1x128xf32, #tpu.memory_space<vmem>>, %arg9: memref<8x128xf32, #tpu.memory_space<vmem>>) attributes {dimension_semantics = [#tpu.dimension_semantics<parallel>], iteration_bounds = array<i64: 4>, scalar_prefetch = 0 : i64, scratch_operands = 0 : i64, tpu.core_type = #tpu.core_type<tc>, window_params = [{transform_indices = @transform_0, window_bounds = array<i64: 8, 256>}, {transform_indices = @transform_1, window_bounds = array<i64: 8, 128>}, {pipeline_mode = #tpu.pipeline_mode<synchronous>, transform_indices = @transform_2, window_bounds = array<i64: 256, 1024>}, {pipeline_mode = #tpu.pipeline_mode<synchronous>, transform_indices = @transform_3, window_bounds = array<i64: 1, 1024>}, {pipeline_mode = #tpu.pipeline_mode<synchronous>, transform_indices = @transform_4, window_bounds = array<i64: 1024, 1024>}, {pipeline_mode = #tpu.pipeline_mode<synchronous>, transform_indices = @transform_5, window_bounds = array<i64: 1, 1024>}, {pipeline_mode = #tpu.pipeline_mode<synchronous>, transform_indices = @transform_6, window_bounds = array<i64: 1024, 128>}, {pipeline_mode = #tpu.pipeline_mode<synchronous>, transform_indices = @transform_7, window_bounds = array<i64: 1, 128>}, {transform_indices = @transform_8, window_bounds = array<i64: 8, 128>}]} {
    %c0 = arith.constant 0 : index
    %c0_0 = arith.constant 0 : index
    %0 = vector.load %arg1[%c0, %c0_0] : memref<8x256xf32, #tpu.memory_space<vmem>>, vector<8x256xf32>
    %c0_1 = arith.constant 0 : index
    %c0_2 = arith.constant 0 : index
    %1 = vector.load %arg3[%c0_1, %c0_2] : memref<256x1024xf32, #tpu.memory_space<vmem>>, vector<256x1024xf32>
    %cst = arith.constant dense<0.000000e+00> : vector<8x1024xf32>
    %2 = tpu.matmul %0, %1, %cst {dimension_numbers = #tpu.dot_dimension_numbers<[1], [0], [0], [1], [0, 0, 1, 1], [], []>} : vector<8x256xf32>, vector<256x1024xf32>, vector<8x1024xf32> -> vector<8x1024xf32>
    %c0_3 = arith.constant 0 : index
    %c0_4 = arith.constant 0 : index
    %3 = vector.load %arg4[%c0_3, %c0_4] : memref<1x1024xf32, #tpu.memory_space<vmem>>, vector<1x1024xf32>
    %4 = vector.broadcast %3 : vector<1x1024xf32> to vector<8x1024xf32>
    %5 = arith.addf %2, %4 : vector<8x1024xf32>
    %cst_5 = arith.constant 0.000000e+00 : f32
    %6 = vector.broadcast %cst_5 : f32 to vector<8x1024xf32>
    %7 = arith.maximumf %5, %6 : vector<8x1024xf32>
    %c0_6 = arith.constant 0 : index
    %c0_7 = arith.constant 0 : index
    %8 = vector.load %arg5[%c0_6, %c0_7] : memref<1024x1024xf32, #tpu.memory_space<vmem>>, vector<1024x1024xf32>
    %cst_8 = arith.constant dense<0.000000e+00> : vector<8x1024xf32>
    %9 = tpu.matmul %7, %8, %cst_8 {dimension_numbers = #tpu.dot_dimension_numbers<[1], [0], [0], [1], [0, 0, 1, 1], [], []>} : vector<8x1024xf32>, vector<1024x1024xf32>, vector<8x1024xf32> -> vector<8x1024xf32>
    %c0_9 = arith.constant 0 : index
    %c0_10 = arith.constant 0 : index
    %10 = vector.load %arg6[%c0_9, %c0_10] : memref<1x1024xf32, #tpu.memory_space<vmem>>, vector<1x1024xf32>
    %11 = vector.broadcast %10 : vector<1x1024xf32> to vector<8x1024xf32>
    %12 = arith.addf %9, %11 : vector<8x1024xf32>
    %cst_11 = arith.constant 0.000000e+00 : f32
    %13 = vector.broadcast %cst_11 : f32 to vector<8x1024xf32>
    %14 = arith.maximumf %12, %13 : vector<8x1024xf32>
    %c0_12 = arith.constant 0 : index
    %c0_13 = arith.constant 0 : index
    %15 = vector.load %arg7[%c0_12, %c0_13] : memref<1024x128xf32, #tpu.memory_space<vmem>>, vector<1024x128xf32>
    %cst_14 = arith.constant dense<0.000000e+00> : vector<8x128xf32>
    %16 = tpu.matmul %14, %15, %cst_14 {dimension_numbers = #tpu.dot_dimension_numbers<[1], [0], [0], [1], [0, 0, 1, 1], [], []>} : vector<8x1024xf32>, vector<1024x128xf32>, vector<8x128xf32> -> vector<8x128xf32>
    %c0_15 = arith.constant 0 : index
    %c0_16 = arith.constant 0 : index
    %17 = vector.load %arg8[%c0_15, %c0_16] : memref<1x128xf32, #tpu.memory_space<vmem>>, vector<1x128xf32>
    %18 = vector.broadcast %17 : vector<1x128xf32> to vector<8x128xf32>
    %19 = arith.addf %16, %18 : vector<8x128xf32>
    %c0_17 = arith.constant 0 : index
    %c0_18 = arith.constant 0 : index
    %20 = vector.load %arg2[%c0_17, %c0_18] : memref<8x128xf32, #tpu.memory_space<vmem>>, vector<8x128xf32>
    %21 = arith.mulf %19, %20 : vector<8x128xf32>
    %c0_19 = arith.constant 0 : index
    %c0_20 = arith.constant 0 : index
    %22 = vector.load %arg9[%c0_19, %c0_20] : memref<8x128xf32, #tpu.memory_space<vmem>>, vector<8x128xf32>
    tpu.vector_store %arg9[%c0_19, %c0_20], %21 {strides = array<i32>} : memref<8x128xf32, #tpu.memory_space<vmem>>, vector<8x128xf32>,
    return
  }
  func.func @transform_0(%arg0: i32) -> (i32, i32) {
    %c0_i32 = arith.constant 0 : i32
    %c0_i32_0 = arith.constant 0 : i32
    return %arg0, %c0_i32 : i32, i32
  }
  func.func @transform_1(%arg0: i32) -> (i32, i32) {
    %c0_i32 = arith.constant 0 : i32
    %c0_i32_0 = arith.constant 0 : i32
    return %arg0, %c0_i32 : i32, i32
  }
  func.func @transform_2(%arg0: i32) -> (i32, i32) {
    %c0_i32 = arith.constant 0 : i32
    %c0_i32_0 = arith.constant 0 : i32
    %c0_i32_1 = arith.constant 0 : i32
    return %c0_i32, %c0_i32_0 : i32, i32
  }
  func.func @transform_3(%arg0: i32) -> (i32, i32) {
    %c0_i32 = arith.constant 0 : i32
    %c0_i32_0 = arith.constant 0 : i32
    %c0_i32_1 = arith.constant 0 : i32
    return %c0_i32, %c0_i32_0 : i32, i32
  }
  func.func @transform_4(%arg0: i32) -> (i32, i32) {
    %c0_i32 = arith.constant 0 : i32
    %c0_i32_0 = arith.constant 0 : i32
    %c0_i32_1 = arith.constant 0 : i32
    return %c0_i32, %c0_i32_0 : i32, i32
  }
  func.func @transform_5(%arg0: i32) -> (i32, i32) {
    %c0_i32 = arith.constant 0 : i32
    %c0_i32_0 = arith.constant 0 : i32
    %c0_i32_1 = arith.constant 0 : i32
    return %c0_i32, %c0_i32_0 : i32, i32
  }
  func.func @transform_6(%arg0: i32) -> (i32, i32) {
    %c0_i32 = arith.constant 0 : i32
    %c0_i32_0 = arith.constant 0 : i32
    %c0_i32_1 = arith.constant 0 : i32
    return %c0_i32, %c0_i32_0 : i32, i32
  }
  func.func @transform_7(%arg0: i32) -> (i32, i32) {
    %c0_i32 = arith.constant 0 : i32
    %c0_i32_0 = arith.constant 0 : i32
    %c0_i32_1 = arith.constant 0 : i32
    return %c0_i32, %c0_i32_0 : i32, i32
  }
  func.func @transform_8(%arg0: i32) -> (i32, i32) {
    %c0_i32 = arith.constant 0 : i32
    %c0_i32_0 = arith.constant 0 : i32
    return %arg0, %c0_i32 : i32, i32
  }
}

</mosaic_0001>

<bundles_post_ra>
// kernel: tpu_custom_call.1
= control target key start
LH: loop header
LB: loop body
LE: loop exit
PB: predicated region body
PF: predicated region fallthrough
CT: control target
= control target key end

     0   :  { %s6453_s0 = inlined_call_operand.hbm [shape: f32[32,256], index: 0, kind: input, shape index: {}]   ;;  %s6454_s1 = inlined_call_operand.hbm [shape: f32[32,128], index: 1, kind: input, shape index: {}]   ;;  %s6455_s2 = inlined_call_operand.hbm [shape: f32[256,1024], index: 2, kind: input, shape index: {}]   ;;  %s6456_s3 = inlined_call_operand.hbm [shape: f32[1,1024], index: 3, kind: input, shape index: {}]   ;;  %s6457_s4 = inlined_call_operand.hbm [shape: f32[1024,1024], index: 4, kind: input, shape index: {}]   ;;  %s6458_s5 = inlined_call_operand.hbm [shape: f32[1,1024], index: 5, kind: input, shape index: {}]   ;;  %s6459_s6 = inlined_call_operand.hbm [shape: f32[1024,128], index: 6, kind: input, shape index: {}]   ;;  %s6460_s7 = inlined_call_operand.hbm [shape: f32[1,128], index: 7, kind: input, shape index: {}]   ;;  %s6461_s8 = inlined_call_operand.hbm [shape: f32[32,128], index: 8, kind: output, shape index: {}]  }
   0x1   :  { %6467 = sst [smem:[#allocation24_spill]] %s6453_s0 }
   0x2   :  { %6468 = sst [smem:[#allocation25_spill]] %s6455_s2 }
   0x3   :  { %6469 = sst [smem:[#allocation26_spill]] %s6456_s3 }
   0x4   :  { %6470 = sst [smem:[#allocation27_spill]] %s6457_s4 }
   0x5   :  { %13 = vsyncpa [#allocation3], 0 }
   0x6   :  { %15 = vsyncpa [#allocation3 + $0x1], 0 }
   0x7   :  { %16 = vsyncpa [#allocation6], 0 }
   0x8   :  { %18 = vsyncpa [#allocation6 + $0x1], 0 }
   0x9   :  { %19 = vsyncpa [#allocation9], 0 }
   0xa   :  { %20 = vsyncpa [#allocation12], 0 }
   0xb   :  { %21 = vsyncpa [#allocation15], 0 }
   0xc   :  { %22 = vsyncpa [#allocation4], 0 }
   0xd   :  { %24 = vsyncpa [#allocation4 + $0x1], 0  ;;  %s5925_s27 = smov 0   ;;  %s5927_s28 = smov 0  }
   0xe   :  { %s5929_s29 = smov 0   ;;  %s5931_s30 = smov 0  }
   0xf LB: > { %s5867_s9 = smov [#allocation7]   ;;  %s5946_s11 = sadd.s32 4294967295, %s5865_s30   ;;  %s5865_s30 = sphi %s5931_s30, %s6501_s30   ;;  %s5861_s29 = sphi %s5929_s29, %s6500_s29   ;;  %s5857_s28 = sphi %s5927_s28, %s6499_s28   ;;  %s5853_s27 = sphi %s5925_s27, %s6498_s27  }
  0x10   : > { %s251_s10 = sshll.u32 %s5867_s9, 4  ;;  %p3825_p0 = scmp.ge.s32.totalorder %s5865_s30, 1  ;;  %s5951_s10 = int_to_ptr.vmem [resolvable:$true] %s251_s10 }
  0x11   : > { %p6463_p1 = scmp.eq.s32.totalorder %s5946_s11, 0  ;;  %p239_p2 = scmp.lt.s32.totalorder %s5865_s30, 5 }
  0x12   : > { %s5868_s13 = smov [#allocation8]   ;;  %s5869_s16 = smov [#allocation11]  }
  0x13   : > { %p5953_p3 = pnand %p3825_p0, %p239_p2  ;;  %s265_s14 = sshll.u32 %s5868_s13, 4  ;;  %s5965_s14 = int_to_ptr.vmem [resolvable:$true] %s265_s14 }
  0x14   : > { %s289_s17 = sshll.u32 %s5869_s16, 4  ;;  %s6473_s2 = sld [smem:[#allocation25_spill]]  ;;  %s5967_s17 = int_to_ptr.vmem [resolvable:$true] %s289_s17 }
  0x15   : > { %s6471_s12 = scalar_select %p5953_p3, 1, 0 }
  0x16   : > { %p5464_p4 = pneg %p5953_p3 }
  0x18   : > { %p5961_p5 = pnand %p5464_p4, %p6463_p1 }
  0x1a   : > { %s5551_s20 = scalar_lea.hbm %s6473_s2, 32768  ;;  %p5977_p7 = pneg %p5961_p5 }
  0x1b   : > { %p5552_p6 = scmp.ne.s32.totalorder %s6473_s2, %s5551_s20  ;;  %p5558_p10 = scmp.lt.u32.totalorder %s5551_s20, %s6473_s2 }
  0x1d   : > { %p5554_p8 = pnand %p5977_p7, %p5552_p6 }
  0x1f   : > { %p5555_p9 = pneg %p5554_p8 }
  0x21   : > { %p5560_p11 = pnand %p5558_p10, %p5555_p9 }
  0x23   : > { %5563 = shalt.err (!%p5560_p11)
}
  0x24   : > { %s5564_s26 = scalar_lea.vmem %s5951_s10, 32768  ;;  %p5572_p2 = scmp.lt.s32.totalorder %s5951_s10, %s5951_s10 }
  0x25   : > { %p5565_p12 = scmp.ne.s32.totalorder %s5951_s10, %s5564_s26  ;;  %p5573_p4 = scmp.lt.s32.totalorder %s5564_s26, %s5564_s26 }
  0x27   : > { %p5567_p13 = pnand %p5565_p12, %p5977_p7  ;;  %p5574_p6 = por %p5573_p4, %p5572_p2 }
  0x29   : > { %p5568_p0 = pneg %p5567_p13 }
  0x2b   : > { %p5575_p8 = pnand %p5574_p6, %p5568_p0 }
  0x2d   : > { %5578 = shalt.err (!%p5575_p8)
}
  0x2e   : > { %s6462_s9 = smov 1024   ;;  %s5871_s13 = smov 64  }
  0x2f   : > { %5467 = dma.hbm_to_vmem [thread:$0]  (!%p5961_p5), %s6473_s2, 32768, %s5951_s10, [#allocation6], %s6462_s9, %s6462_s9, %s5871_s13  }
  0x30   : > { %s6475_s3 = sld [smem:[#allocation26_spill]] }
  0x36   : > { %s5579_s21 = scalar_lea.hbm %s6475_s3, 128 }
  0x37   : > { %p5580_p9 = scmp.ne.s32.totalorder %s6475_s3, %s5579_s21  ;;  %p5586_p12 = scmp.lt.u32.totalorder %s5579_s21, %s6475_s3 }
  0x39   : > { %p5582_p10 = pnand %p5580_p9, %p5977_p7 }
  0x3b   : > { %p5583_p11 = pneg %p5582_p10 }
  0x3d   : > { %p5588_p13 = pnand %p5586_p12, %p5583_p11 }
  0x3f   : > { %5591 = shalt.err (!%p5588_p13)
}
  0x40   : > { %s5592_s10 = scalar_lea.vmem %s5965_s14, 128  ;;  %p5600_p6 = scmp.lt.s32.totalorder %s5965_s14, %s5965_s14 }
  0x41   : > { %p5593_p0 = scmp.ne.s32.totalorder %s5965_s14, %s5592_s10  ;;  %p5601_p8 = scmp.lt.s32.totalorder %s5592_s10, %s5592_s10 }
  0x43   : > { %p5595_p2 = pnand %p5593_p0, %p5977_p7  ;;  %p5602_p9 = por %p5601_p8, %p5600_p6 }
  0x45   : > { %p5596_p4 = pneg %p5595_p2 }
  0x47   : > { %p5603_p10 = pnand %p5602_p9, %p5596_p4 }
  0x49   : > { %5606 = shalt.err (!%p5603_p10)
}
  0x4a   : > { %5470 = dma.hbm_to_vmem [thread:$0]  (!%p5961_p5), %s6475_s3, 128, %s5965_s14, [#allocation9]  }
  0x4b   : > { %s5607_s21 = scalar_lea.hbm %s6458_s5, 128 }
  0x4c   : > { %p5608_p11 = scmp.ne.s32.totalorder %s6458_s5, %s5607_s21  ;;  %p5614_p0 = scmp.lt.u32.totalorder %s5607_s21, %s6458_s5 }
  0x4e   : > { %p5610_p12 = pnand %p5608_p11, %p5977_p7 }
  0x50   : > { %p5611_p13 = pneg %p5610_p12 }
  0x52   : > { %p5616_p2 = pnand %p5614_p0, %p5611_p13 }
  0x54   : > { %5619 = shalt.err (!%p5616_p2)
}
  0x55   : > { %s5620_s14 = scalar_lea.vmem %s5967_s17, 128  ;;  %p5628_p9 = scmp.lt.s32.totalorder %s5967_s17, %s5967_s17 }
  0x56   : > { %p5621_p4 = scmp.ne.s32.totalorder %s5967_s17, %s5620_s14  ;;  %p5629_p10 = scmp.lt.s32.totalorder %s5620_s14, %s5620_s14 }
  0x58   : > { %p5623_p6 = pnand %p5621_p4, %p5977_p7  ;;  %p5630_p11 = por %p5629_p10, %p5628_p9 }
  0x5a   : > { %p5624_p8 = pneg %p5623_p6 }
  0x5c   : > { %p5631_p12 = pnand %p5630_p11, %p5624_p8 }
  0x5e   : > { %5634 = shalt.err (!%p5631_p12)
}
  0x5f   : > { %5476 = dma.hbm_to_vmem [thread:$0]  (!%p5961_p5), %s6458_s5, 128, %s5967_s17, [#allocation12]  }
  0x60   : > { %s5872_s18 = smov [#allocation10]   ;;  %s5873_s20 = smov [#allocation13]  }
  0x61   : > { %s275_s19 = sshll.u32 %s5872_s18, 4  ;;  %s299_s21 = sshll.u32 %s5873_s20, 4  ;;  %s276_s19 = int_to_ptr.vmem [resolvable:$true] %s275_s19  ;;  %s300_s21 = int_to_ptr.vmem [resolvable:$true] %s299_s21 }
  0x62   : > { %s6476_s4 = sld [smem:[#allocation27_spill]] }
  0x68   : > { %s5635_s25 = scalar_lea.hbm %s6476_s4, 131072 }
  0x69   : > { %p5636_p13 = scmp.ne.s32.totalorder %s6476_s4, %s5635_s25  ;;  %p5642_p4 = scmp.lt.u32.totalorder %s5635_s25, %s6476_s4 }
  0x6b   : > { %p5638_p0 = pnand %p5636_p13, %p5977_p7 }
  0x6d   : > { %p5639_p2 = pneg %p5638_p0 }
  0x6f   : > { %p5644_p6 = pnand %p5642_p4, %p5639_p2 }
  0x71   : > { %5647 = shalt.err (!%p5644_p6)
}
  0x72   : > { %s5648_s17 = scalar_lea.vmem %s276_s19, 131072  ;;  %p5656_p11 = scmp.lt.s32.totalorder %s276_s19, %s276_s19 }
  0x73   : > { %p5649_p8 = scmp.ne.s32.totalorder %s276_s19, %s5648_s17  ;;  %p5657_p12 = scmp.lt.s32.totalorder %s5648_s17, %s5648_s17 }
  0x75   : > { %p5651_p9 = pnand %p5649_p8, %p5977_p7  ;;  %p5658_p1 = por %p5657_p12, %p5656_p11 }
  0x77   : > { %p5652_p10 = pneg %p5651_p9 }
  0x79   : > { %p5659_p3 = pnand %p5658_p1, %p5652_p10 }
  0x7b   : > { %5662 = shalt.err (!%p5659_p3)
}
  0x7c   : > { %s6477_s16 = smov 1024   ;;  %s5663_s24 = scalar_lea.hbm %s6459_s6, 16384 }
  0x7d   : > { %5473 = dma.hbm_to_vmem [thread:$0]  (!%p5961_p5), %s6476_s4, 131072, %s276_s19, [#allocation9], %s6477_s16, %s6477_s16, %s5871_s13  }
  0x7e   : > { %p5664_p1 = scmp.ne.s32.totalorder %s6459_s6, %s5663_s24  ;;  %p5670_p0 = scmp.lt.u32.totalorder %s5663_s24, %s6459_s6 }
  0x80   : > { %p5666_p3 = pnand %p5664_p1, %p5977_p7 }
  0x82   : > { %p5667_p13 = pneg %p5666_p3 }
  0x84   : > { %p5672_p2 = pnand %p5670_p0, %p5667_p13 }
  0x86   : > { %5675 = shalt.err (!%p5672_p2)
}
  0x87   : > { %s5676_s17 = scalar_lea.vmem %s300_s21, 16384  ;;  %p5684_p9 = scmp.lt.s32.totalorder %s300_s21, %s300_s21 }
  0x88   : > { %p5677_p4 = scmp.ne.s32.totalorder %s300_s21, %s5676_s17  ;;  %p5685_p10 = scmp.lt.s32.totalorder %s5676_s17, %s5676_s17 }
  0x8a   : > { %p5679_p6 = pnand %p5677_p4, %p5977_p7  ;;  %p5686_p11 = por %p5685_p10, %p5684_p9 }
  0x8c   : > { %p5680_p8 = pneg %p5679_p6 }
  0x8e   : > { %p5687_p12 = pnand %p5686_p11, %p5680_p8 }
  0x90   : > { %5690 = shalt.err (!%p5687_p12)
}
  0x91   : > { %s5874_s13 = smov 128   ;;  %s5875_s19 = smov 8  }
  0x92   : > { %5479 = dma.hbm_to_vmem [thread:$0]  (!%p5961_p5), %s6459_s6, 16384, %s300_s21, [#allocation12], %s5874_s13, %s5874_s13, %s5875_s19  }
  0x93   : > { %s5876_s18 = smov [#allocation14]   ;;  %s5691_s25 = scalar_lea.hbm %s6460_s7, 16 }
  0x94   : > { %s313_s20 = sshll.u32 %s5876_s18, 4  ;;  %p5692_p1 = scmp.ne.s32.totalorder %s6460_s7, %s5691_s25  ;;  %s314_s20 = int_to_ptr.vmem [resolvable:$true] %s313_s20 }
  0x95   : > { %p5698_p0 = scmp.lt.u32.totalorder %s5691_s25, %s6460_s7 }
  0x96   : > { %p5694_p3 = pnand %p5692_p1, %p5977_p7 }
  0x98   : > { %p5695_p13 = pneg %p5694_p3 }
  0x9a   : > { %p5700_p2 = pnand %p5698_p0, %p5695_p13 }
  0x9c   : > { %5703 = shalt.err (!%p5700_p2)
}
  0x9d   : > { %s5704_s21 = scalar_lea.vmem %s314_s20, 16  ;;  %s5711_s13 = scalar_lea.vmem %s314_s20, 32 }
  0x9e   : > { %p5705_p4 = scmp.ne.s32.totalorder %s314_s20, %s5704_s21  ;;  %p5712_p9 = scmp.lt.s32.totalorder %s314_s20, %s314_s20 }
  0x9f   : > { %p5713_p10 = scmp.lt.s32.totalorder %s5711_s13, %s5704_s21 }
  0xa0   : > { %p5707_p6 = pnand %p5705_p4, %p5977_p7 }
  0xa1   : > { %p5714_p11 = por %p5713_p10, %p5712_p9 }
  0xa2   : > { %p5708_p8 = pneg %p5707_p6 }
  0xa4   : > { %p5715_p12 = pnand %p5714_p11, %p5708_p8 }
  0xa6   : > { %5718 = shalt.err (!%p5715_p12)
}
  0xa7   : > { %5482 = dma.hbm_to_vmem [thread:$0]  (!%p5961_p5), %s6460_s7, 16, %s314_s20, [#allocation15]  }
  0xa8   : > { %s3824_s23 = sadd.s32 4294967294, %s5865_s30   ;;  %s6106_s15 = sadd.s32 1, %s5865_s30  }
  0xa9   : > { %s34_s9 = ssub.s32 %s5865_s30, %s6106_s15  ;;  %s37_s18 = sadd.s32 1, %s5861_s29 }
  0xaa   : > { %p35_p7 = scmp.eq.s32.totalorder %s34_s9, 0  ;;  %p44_p1 = scmp.ne.s32.totalorder %s5861_s29, %s5857_s28 }
  0xab   : > { %p45_p3 = scmp.eq.s32.totalorder %s5865_s30, 0  ;;  %p50_p13 = scmp.ne.s32.totalorder %s5857_s28, %s5853_s27 }
  0xac   : > { %s6117_s22 = scalar_select %p35_p7, %s5861_s29, %s37_s18  }
  0xad   : > { %p6119_p0 = por %p45_p3, %p44_p1  ;;  %p6479_p2 = scmp.eq.s32.totalorder %s5946_s11, 0 }
  0xae   : > { %p226_p4 = scmp.eq.s32.totalorder %s5946_s11, 3  ;;  %p232_p6 = scmp.eq.s32.totalorder %s3824_s23, 3 }
  0xaf   : > { %p6125_p5 = por %p6479_p2, %p50_p13  ;;  %p5500_p8 = scmp.lt.s32.totalorder %s5865_s30, 4 }
  0xb0   : > { %s6132_s25 = sand.u32 1, %s5861_s29   ;;  %p6134_p9 = por %p226_p4, %p44_p1 }
  0xb1   : > { %s6480_s20 = scalar_select %p6125_p5, 1, 0 }
  0xb2   : > { %s6481_s26 = scalar_select %p6134_p9, 1, 0 }
  0xb3   : > { %p6138_p10 = por %p232_p6, %p50_p13  ;;  %s3833_s10 = sshll.u32 %s6132_s25, 4 }
  0xb4   : > { %s3853_s17 = sshll.u32 %s5865_s30, 8  ;;  %s6483_s0 = sld [smem:[#allocation24_spill]] }
  0xb5   : > { %s6482_s14 = scalar_select %p6138_p10, 1, 0 }
  0xb6   : > { %s328_s16 = scalar_lea.vmem [#allocation2], %s3833_s10  ;;  %p6153_p11 = pnand %p5500_p8, %p6119_p0 }
  0xb7   : > { %s336_s23 = sshll.u32 %s328_s16, 4  ;;  %s3836_s2 = sshll.u32 %s6132_s25, 3  ;;  %s6149_s23 = int_to_ptr.vmem [resolvable:$true] %s336_s23 }
  0xb8   : > { %s325_s21 = scalar_lea.sflag [#allocation3], %s6132_s25  ;;  %p5721_p7 = pneg %p6153_p11 }
  0xba   : > { %s6147_s19 = scalar_lea.hbm %s6483_s0, %s3853_s17  ;;  %s5724_s24 = scalar_lea.hbm %s6483_s0, 1024 }
  0xbb   : > { %s5719_s17 = scalar_lea.hbm %s6147_s19, 256  ;;  %p5725_p13 = scmp.lt.u32.totalorder %s6147_s19, %s6483_s0 }
  0xbc   : > { %p5720_p12 = scmp.ne.s32.totalorder %s6147_s19, %s5719_s17  ;;  %p5726_p0 = scmp.lt.u32.totalorder %s5724_s24, %s5719_s17 }
  0xbd   : > { %p5728_p4 = scmp.lt.u32.totalorder %s5719_s17, %s6147_s19 }
  0xbe   : > { %p5722_p1 = pnand %p5721_p7, %p5720_p12  ;;  %p5727_p2 = por %p5726_p0, %p5725_p13 }
  0xc0   : > { %p5723_p3 = pneg %p5722_p1  ;;  %p5729_p6 = por %p5728_p4, %p5727_p2 }
  0xc2   : > { %p5730_p8 = pnand %p5729_p6, %p5723_p3 }
  0xc4   : > { %5733 = shalt.err (!%p5730_p8)
}
  0xc5   : > { %s5734_s18 = scalar_lea.vmem %s6149_s23, 256  ;;  %s5877_s10 = smov [#allocation2]  }
  0xc6   : > { %p5735_p12 = scmp.ne.s32.totalorder %s6149_s23, %s5734_s18  ;;  %s5739_s13 = sshll.u32 %s5877_s10, 4  ;;  %s5740_s13 = int_to_ptr.vmem [resolvable:$false] %s5739_s13 }
  0xc7   : > { %s5741_s3 = scalar_lea.vmem %s5740_s13, 512  ;;  %p5742_p9 = scmp.lt.s32.totalorder %s6149_s23, %s5740_s13 }
  0xc8   : > { %p5737_p1 = pnand %p5735_p12, %p5721_p7  ;;  %p5743_p13 = scmp.lt.s32.totalorder %s5741_s3, %s5734_s18 }
  0xca   : > { %p5738_p10 = pneg %p5737_p1  ;;  %p5744_p0 = por %p5743_p13, %p5742_p9 }
  0xcc   : > { %p5745_p2 = pnand %p5744_p0, %p5738_p10 }
  0xce   : > { %5748 = shalt.err (!%p5745_p2)
}
  0xcf   : > { %5486 = dma.hbm_to_vmem [thread:$0]  (!%p6153_p11), %s6147_s19, 256, %s6149_s23, %s325_s21  }
  0xd0   : > { %s3837_s17 = sshll.u32 %s5865_s30, 7  ;;  %s347_s18 = scalar_lea.vmem [#allocation5], %s3836_s2 }
  0xd1   : > { %s6189_s10 = scalar_lea.hbm %s6454_s1, %s3837_s17  ;;  %s354_s13 = sshll.u32 %s347_s18, 4  ;;  %s355_s13 = int_to_ptr.vmem [resolvable:$true] %s354_s13 }
  0xd2   : > { %s6485_s3 = sand.u32 1, %s5865_s30   ;;  %s5749_s4 = scalar_lea.hbm %s6189_s10, 128 }
  0xd3   : > { %s344_s0 = scalar_lea.sflag [#allocation6], %s6485_s3  ;;  %p5750_p9 = scmp.ne.s32.totalorder %s6189_s10, %s5749_s4 }
  0xd4   : > { %s5754_s21 = scalar_lea.hbm %s6454_s1, 512  ;;  %p5755_p4 = scmp.lt.u32.totalorder %s6189_s10, %s6454_s1 }
  0xd5   : > { %p5752_p10 = pnand %p5750_p9, %p5721_p7  ;;  %p5756_p6 = scmp.lt.u32.totalorder %s5754_s21, %s5749_s4 }
  0xd6   : > { %p5758_p12 = scmp.lt.u32.totalorder %s5749_s4, %s6189_s10 }
  0xd7   : > { %p5753_p3 = pneg %p5752_p10  ;;  %p5757_p8 = por %p5756_p6, %p5755_p4 }
  0xd9   : > { %p5759_p1 = por %p5758_p12, %p5757_p8 }
  0xdb   : > { %p5760_p13 = pnand %p5759_p1, %p5753_p3 }
  0xdd   : > { %5763 = shalt.err (!%p5760_p13)
}
  0xde   : > { %s5764_s2 = scalar_lea.vmem %s355_s13, 128  ;;  %s5878_s24 = smov [#allocation5]  }
  0xdf   : > { %p5765_p0 = scmp.ne.s32.totalorder %s355_s13, %s5764_s2  ;;  %s5769_s16 = sshll.u32 %s5878_s24, 4  ;;  %s5770_s16 = int_to_ptr.vmem [resolvable:$false] %s5769_s16 }
  0xe0   : > { %s5771_s18 = scalar_lea.vmem %s5770_s16, 256  ;;  %p5772_p10 = scmp.lt.s32.totalorder %s355_s13, %s5770_s16 }
  0xe1   : > { %p5767_p2 = pnand %p5765_p0, %p5721_p7  ;;  %p5773_p5 = scmp.lt.s32.totalorder %s5771_s18, %s5764_s2 }
  0xe3   : > { %p5768_p9 = pneg %p5767_p2  ;;  %p5774_p4 = por %p5773_p5, %p5772_p10 }
  0xe5   : > { %p5775_p6 = pnand %p5774_p4, %p5768_p9 }
  0xe7   : > { %5778 = shalt.err (!%p5775_p6)
}
  0xe8   : > { %5489 = dma.hbm_to_vmem [thread:$0]  (!%p6153_p11), %s6189_s10, 128, %s355_s13, %s344_s0  }
  0xe9   : > { %p6486_p3 = scmp.ne.s32.totalorder %s6471_s12, 0 }
  0xea   : > { %s6217_s4 = sand.u32 (!%p6486_p3), 1, %s5857_s28   ;;  %p6487_p5 = scmp.ne.s32.totalorder (!%p6486_p3), %s6480_s20, 0 }
  0xeb   : > { %363 = sbr.rel (%p6486_p3) target bundleno = 1446 (0x5a6), region = 52  ;;  %s3839_s3 = sshll.u32 (!%p6486_p3), %s6217_s4, 4 }
  0xec   : > { %s366_s19 = scalar_lea.sflag (!%p6486_p3), [#allocation3], %s6217_s4  ;;  %s6221_s23 = scalar_lea.vmem (!%p6486_p3), [#allocation2], %s3839_s3 }
  0xf2   : > { %5824 = dma.done.wait (%p6487_p5), %s366_s19, 256  }
  0xf3   : > { %5826 = vsyncadd (%p6487_p5), %s366_s19, 4294967040  ;;  %s374_s0 = sand.u32 1, %s5946_s11   ;;  %s3840_s12 = sshll.u32 %s6217_s4, 3 }
  0xf4   : > { %s375_s9 = scalar_lea.sflag [#allocation6], %s374_s0  ;;  %s6231_s10 = scalar_lea.vmem [#allocation5], %s3840_s12 }
  0xf5   : > { %5828 = dma.done.wait (%p6487_p5), %s375_s9, 128  }
  0xf6   : > { %5830 = vsyncadd (%p6487_p5), %s375_s9, 4294967168  ;;  %p6488_p11 = scmp.eq.s32.totalorder %s5946_s11, 0 }
  0xf8   : > { %5832 = dma.done.wait (%p6488_p11), [#allocation6], 32768   ;;  %p6489_p7 = pmov %p6488_p11 }
  0xfa   : > { %5834 = vsyncadd (%p6489_p7), [#allocation6], 4294934528  ;;  %p6490_p8 = pmov %p6489_p7 }
  0xfb   : > { %p6491_p12 = pmov %p6489_p7 }
  0xfc   : > { %5836 = dma.done.wait (%p6490_p8), [#allocation9], 131200  }
  0xfd   : > { %5838 = vsyncadd (%p6491_p12), [#allocation9], 4294836096  ;;  %p6492_p1 = pmov %p6489_p7 }
  0xff   : > { %5840 = dma.done.wait (%p6492_p1), [#allocation12], 16512   ;;  %p6493_p13 = pmov %p6492_p1 }
 0x100   : > { %p6494_p0 = pmov %p6492_p1 }
 0x101   : > { %5842 = vsyncadd (%p6493_p13), [#allocation12], 4294950784 }
 0x102   : > { %5844 = dma.done.wait (%p6494_p0), [#allocation15], 16   ;;  %p6495_p2 = pmov %p6494_p0 }
 0x103   : > { %v443_v0 = vld [vmem:[#allocation7 + $0x8] sm:$0xff]  ;;  %v442_v2 = vld [vmem:[#allocation7] sm:$0xff]  ;;  %v445_v43 = vld [vmem:[#allocation7 + $0x18] sm:$0xff]  ;;  %s3850_s20 = sshll.u32 %s5946_s11, 7  ;;  %s439_s13 = scalar_lea.vmem [#allocation16], %s3840_s12 }
 0x104   : > { %5846 = vsyncadd (%p6495_p2), [#allocation15], 4294967280  ;;  %v451_v1 = vld [vmem:[#allocation7 + $0x48] sm:$0xff]  ;;  %v450_v4 = vld [vmem:[#allocation7 + $0x40] sm:$0xff]  ;;  %s3674_s21 = sshll.u32 %s439_s13, 4  ;;  %s6410_s2 = scalar_lea.hbm %s6461_s8, %s3850_s20  ;;  %s6412_s21 = int_to_ptr.vmem [resolvable:$true] %s3674_s21 }
 0x105   : > { %v3994_v3 = vpack.c.bf16 %v451_v1, %v443_v0  ;;  %v459_v5 = vld [vmem:[#allocation7 + $0x88] sm:$0xff]  ;;  %v3996_v7 = vpack.c.bf16 %v450_v4, %v442_v2  ;;  %v458_v9 = vld [vmem:[#allocation7 + $0x80] sm:$0xff]  ;;  %v453_v45 = vld [vmem:[#allocation7 + $0x58] sm:$0xff]  ;;  %s3661_s24 = scalar_lea.sflag [#allocation4], %s6217_s4  ;;  %s5779_s16 = scalar_lea.vmem %s6412_s21, 128 }
 0x106   : > { %v467_v6 = vld [vmem:[#allocation7 + $0xc8] sm:$0xff]  ;;  %v466_v10 = vld [vmem:[#allocation7 + $0xc0] sm:$0xff]  ;;  %v444_v46 = vld [vmem:[#allocation7 + $0x10] sm:$0xff]  ;;  %v4058_v47 = vpack.c.bf16 %v453_v45, %v445_v43  ;;  %p5780_p9 = scmp.ne.s32.totalorder %s6412_s21, %s5779_s16  ;;  %p6496_p10 = scmp.ne.s32.totalorder %s6481_s26, 0 }
 0x107   : > { %v3998_v8 = vpack.c.bf16 %v467_v6, %v459_v5  ;;  %v475_v11 = vld [vmem:[#allocation7 + $0x108] sm:$0xff]  ;;  %3995 = vmatprep.subr.bf16.mxu0 %v3994_v3  ;;  %v4000_v13 = vpack.c.bf16 %v466_v10, %v458_v9  ;;  %v474_v15 = vld [vmem:[#allocation7 + $0x100] sm:$0xff]  ;;  %v452_v48 = vld [vmem:[#allocation7 + $0x50] sm:$0xff]  ;;  %s5879_s11 = smov [#allocation16]  }
 0x108   : > { %v483_v12 = vld [vmem:[#allocation7 + $0x148] sm:$0xff]  ;;  %3997 = vmatpush1.bf16.msra.mxu0 %v3996_v7  ;;  %v482_v16 = vld [vmem:[#allocation7 + $0x140] sm:$0xff]  ;;  %v461_v49 = vld [vmem:[#allocation7 + $0x98] sm:$0xff]  ;;  %v4060_v52 = vpack.c.bf16 %v452_v48, %v444_v46  ;;  %4059 = vmatprep.subr.bf16.mxu1 %v4058_v47  ;;  %p5781_p4 = pnand %p5780_p9, %p6496_p10  ;;  %s5783_s18 = sshll.u32 %s5879_s11, 4  ;;  %s5784_s18 = int_to_ptr.vmem [resolvable:$false] %s5783_s18 }
 0x109   : > { %3999 = vmatprep.subr.bf16.mxu0 %v3998_v8  ;;  %v4002_v14 = vpack.c.bf16 %v483_v12, %v475_v11  ;;  %v491_v17 = vld [vmem:[#allocation7 + $0x188] sm:$0xff]  ;;  %v4004_v19 = vpack.c.bf16 %v482_v16, %v474_v15  ;;  %v490_v21 = vld [vmem:[#allocation7 + $0x180] sm:$0xff]  ;;  %v469_v50 = vld [vmem:[#allocation7 + $0xd8] sm:$0xff]  ;;  %s5785_s3 = scalar_lea.vmem %s5784_s18, 256  ;;  %p5786_p3 = scmp.lt.s32.totalorder %s6412_s21, %s5784_s18 }
 0x10a   : > { %v499_v18 = vld [vmem:[#allocation7 + $0x1c8] sm:$0xff]  ;;  %v498_v22 = vld [vmem:[#allocation7 + $0x1c0] sm:$0xff]  ;;  %v4062_v53 = vpack.c.bf16 %v469_v50, %v461_v49  ;;  %v460_v54 = vld [vmem:[#allocation7 + $0x90] sm:$0xff]  ;;  %4061 = vmatpush1.bf16.msra.mxu1 %v4060_v52  ;;  %p5782_p6 = pneg %p5781_p4  ;;  %p5787_p5 = scmp.lt.s32.totalorder %s5785_s3, %s5779_s16 }
 0x10b   : > { %v4006_v20 = vpack.c.bf16 %v499_v18, %v491_v17  ;;  %v507_v23 = vld [vmem:[#allocation7 + $0x208] sm:$0xff]  ;;  %v4008_v25 = vpack.c.bf16 %v498_v22, %v490_v21  ;;  %v506_v27 = vld [vmem:[#allocation7 + $0x200] sm:$0xff]  ;;  %v468_v55 = vld [vmem:[#allocation7 + $0xd0] sm:$0xff] }
 0x10c   : > { %4001 = vmatpush1.bf16.msra.mxu0 %v4000_v13  ;;  %v515_v24 = vld [vmem:[#allocation7 + $0x248] sm:$0xff]  ;;  %v514_v28 = vld [vmem:[#allocation7 + $0x240] sm:$0xff]  ;;  %v477_v56 = vld [vmem:[#allocation7 + $0x118] sm:$0xff]  ;;  %v4064_v63 = vpack.c.bf16 %v468_v55, %v460_v54  ;;  %4063 = vmatprep.subr.bf16.mxu1 %v4062_v53  ;;  %p5788_p11 = por %p5787_p5, %p5786_p3 }
 0x10d   : > { %4003 = vmatprep.subr.bf16.mxu0 %v4002_v14  ;;  %v4010_v26 = vpack.c.bf16 %v515_v24, %v507_v23  ;;  %v523_v29 = vld [vmem:[#allocation7 + $0x288] sm:$0xff]  ;;  %v4012_v31 = vpack.c.bf16 %v514_v28, %v506_v27  ;;  %v522_v33 = vld [vmem:[#allocation7 + $0x280] sm:$0xff]  ;;  %v485_v60 = vld [vmem:[#allocation7 + $0x158] sm:$0xff] }
 0x10e   : > { %v531_v30 = vld [vmem:[#allocation7 + $0x2c8] sm:$0xff]  ;;  %v530_v34 = vld [vmem:[#allocation7 + $0x2c0] sm:$0xff]  ;;  %v4066_v0 = vpack.c.bf16 %v485_v60, %v477_v56  ;;  %v476_v1 = vld [vmem:[#allocation7 + $0x110] sm:$0xff]  ;;  %4065 = vmatpush1.bf16.msra.mxu1 %v4064_v63  ;;  %p5789_p7 = pnand %p5788_p11, %p5782_p6 }
 0x10f   : > { %v4014_v32 = vpack.c.bf16 %v531_v30, %v523_v29  ;;  %v539_v35 = vld [vmem:[#allocation7 + $0x308] sm:$0xff]  ;;  %v4016_v37 = vpack.c.bf16 %v530_v34, %v522_v33  ;;  %v538_v38 = vld [vmem:[#allocation7 + $0x300] sm:$0xff]  ;;  %v484_v2 = vld [vmem:[#allocation7 + $0x150] sm:$0xff] }
 0x110   : > { %4005 = vmatpush1.bf16.msra.mxu0 %v4004_v19  ;;  %v547_v36 = vld [vmem:[#allocation7 + $0x348] sm:$0xff]  ;;  %v546_v39 = vld [vmem:[#allocation7 + $0x340] sm:$0xff]  ;;  %v493_v4 = vld [vmem:[#allocation7 + $0x198] sm:$0xff]  ;;  %v4068_v11 = vpack.c.bf16 %v484_v2, %v476_v1  ;;  %4067 = vmatprep.subr.bf16.mxu1 %v4066_v0 }
 0x111   : > { %4007 = vmatprep.subr.bf16.mxu0 %v4006_v20  ;;  %v4018_v40 = vpack.c.bf16 %v547_v36, %v539_v35  ;;  %v555_v41 = vld [vmem:[#allocation7 + $0x388] sm:$0xff]  ;;  %v4020_v51 = vpack.c.bf16 %v546_v39, %v538_v38  ;;  %v554_v58 = vld [vmem:[#allocation7 + $0x380] sm:$0xff]  ;;  %v501_v5 = vld [vmem:[#allocation7 + $0x1d8] sm:$0xff] }
 0x112   : > { %v6254_v42 = vld [vmem:[%s6221_s23 + $0x8] sm:$0xff]  ;;  %v562_v59 = vld [vmem:[#allocation7 + $0x3c0] sm:$0xff]  ;;  %v4070_v12 = vpack.c.bf16 %v501_v5, %v493_v4  ;;  %v492_v13 = vld [vmem:[#allocation7 + $0x190] sm:$0xff]  ;;  %4069 = vmatpush1.bf16.msra.mxu1 %v4068_v11 }
 0x113   : > { %v563_v44 = vld [vmem:[#allocation7 + $0x3c8] sm:$0xff]  ;;  %804 = vmatprep.mubr.f32.mxu0 %v6254_v42  ;;  %875 = vmatprep.mubr.f32.mxu1 %v6254_v42  ;;  %v4024_v3 = vpack.c.bf16 %v562_v59, %v554_v58  ;;  %v570_v7 = vld [vmem:[#allocation7 + $0x400] sm:$0xff]  ;;  %v500_v14 = vld [vmem:[#allocation7 + $0x1d0] sm:$0xff] }
 0x114   : > { %4009 = vmatpush1.bf16.msra.mxu0 %v4008_v25  ;;  %v4022_v57 = vpack.c.bf16 %v563_v44, %v555_v41  ;;  %v571_v61 = vld [vmem:[#allocation7 + $0x408] sm:$0xff]  ;;  %v578_v8 = vld [vmem:[#allocation7 + $0x440] sm:$0xff]  ;;  %v509_v16 = vld [vmem:[#allocation7 + $0x218] sm:$0xff]  ;;  %v4072_v23 = vpack.c.bf16 %v500_v14, %v492_v13  ;;  %4071 = vmatprep.subr.bf16.mxu1 %v4070_v12 }
 0x115   : > { %4011 = vmatprep.subr.bf16.mxu0 %v4010_v26  ;;  %v579_v62 = vld [vmem:[#allocation7 + $0x448] sm:$0xff]  ;;  %v4028_v15 = vpack.c.bf16 %v578_v8, %v570_v7  ;;  %v517_v17 = vld [vmem:[#allocation7 + $0x258] sm:$0xff]  ;;  %v586_v19 = vld [vmem:[#allocation7 + $0x480] sm:$0xff] }
 0x116   : > { %v4026_v6 = vpack.c.bf16 %v579_v62, %v571_v61  ;;  %v587_v9 = vld [vmem:[#allocation7 + $0x488] sm:$0xff]  ;;  %v594_v20 = vld [vmem:[#allocation7 + $0x4c0] sm:$0xff]  ;;  %v4074_v24 = vpack.c.bf16 %v517_v17, %v509_v16  ;;  %v508_v25 = vld [vmem:[#allocation7 + $0x210] sm:$0xff]  ;;  %4073 = vmatpush1.bf16.msra.mxu1 %v4072_v23 }
 0x117   : > { %v595_v10 = vld [vmem:[#allocation7 + $0x4c8] sm:$0xff]  ;;  %v516_v26 = vld [vmem:[#allocation7 + $0x250] sm:$0xff]  ;;  %v4032_v27 = vpack.c.bf16 %v594_v20, %v586_v19  ;;  %v525_v28 = vld [vmem:[#allocation7 + $0x298] sm:$0xff] }
 0x118   : > { %4013 = vmatpush1.bf16.msra.mxu0 %v4012_v31  ;;  %v4030_v18 = vpack.c.bf16 %v595_v10, %v587_v9  ;;  %v603_v21 = vld [vmem:[#allocation7 + $0x508] sm:$0xff]  ;;  %v533_v29 = vld [vmem:[#allocation7 + $0x2d8] sm:$0xff]  ;;  %v602_v31 = vld [vmem:[#allocation7 + $0x500] sm:$0xff]  ;;  %v4076_v35 = vpack.c.bf16 %v516_v26, %v508_v25  ;;  %4075 = vmatprep.subr.bf16.mxu1 %v4074_v24 }
 0x119   : > { %4015 = vmatprep.subr.bf16.mxu0 %v4014_v32  ;;  %v611_v22 = vld [vmem:[#allocation7 + $0x548] sm:$0xff]  ;;  %v610_v32 = vld [vmem:[#allocation7 + $0x540] sm:$0xff]  ;;  %v4078_v36 = vpack.c.bf16 %v533_v29, %v525_v28  ;;  %v532_v38 = vld [vmem:[#allocation7 + $0x2d0] sm:$0xff] }
 0x11a   : > { %v4034_v30 = vpack.c.bf16 %v611_v22, %v603_v21  ;;  %v619_v33 = vld [vmem:[#allocation7 + $0x588] sm:$0xff]  ;;  %v4036_v39 = vpack.c.bf16 %v610_v32, %v602_v31  ;;  %v549_v41 = vld [vmem:[#allocation7 + $0x358] sm:$0xff]  ;;  %v618_v44 = vld [vmem:[#allocation7 + $0x580] sm:$0xff]  ;;  %4077 = vmatpush1.bf16.msra.mxu1 %v4076_v35 }
 0x11b   : > { %v627_v34 = vld [vmem:[#allocation7 + $0x5c8] sm:$0xff]  ;;  %v626_v45 = vld [vmem:[#allocation7 + $0x5c0] sm:$0xff]  ;;  %4079 = vmatprep.subr.bf16.mxu1 %v4078_v36  ;;  %v540_v50 = vld [vmem:[#allocation7 + $0x310] sm:$0xff] }
 0x11c   : > { %4017 = vmatpush1.bf16.msra.mxu0 %v4016_v37  ;;  %v524_v37 = vld [vmem:[#allocation7 + $0x290] sm:$0xff]  ;;  %v4038_v43 = vpack.c.bf16 %v627_v34, %v619_v33  ;;  %v635_v46 = vld [vmem:[#allocation7 + $0x608] sm:$0xff]  ;;  %v4040_v52 = vpack.c.bf16 %v626_v45, %v618_v44  ;;  %v557_v53 = vld [vmem:[#allocation7 + $0x398] sm:$0xff] }
 0x11d   : > { %4019 = vmatprep.subr.bf16.mxu0 %v4018_v40  ;;  %v541_v40 = vld [vmem:[#allocation7 + $0x318] sm:$0xff]  ;;  %v643_v47 = vld [vmem:[#allocation7 + $0x648] sm:$0xff]  ;;  %v4080_v48 = vpack.c.bf16 %v532_v38, %v524_v37  ;;  %v634_v56 = vld [vmem:[#allocation7 + $0x600] sm:$0xff] }
 0x11e   : > { %v4082_v49 = vpack.c.bf16 %v549_v41, %v541_v40  ;;  %v565_v54 = vld [vmem:[#allocation7 + $0x3d8] sm:$0xff]  ;;  %v4042_v55 = vpack.c.bf16 %v643_v47, %v635_v46  ;;  %v651_v58 = vld [vmem:[#allocation7 + $0x688] sm:$0xff]  ;;  %v556_v62 = vld [vmem:[#allocation7 + $0x390] sm:$0xff] }
 0x11f   : > { %v659_v59 = vld [vmem:[#allocation7 + $0x6c8] sm:$0xff]  ;;  %4081 = vmatpush1.bf16.msra.mxu1 %v4080_v48  ;;  %v4086_v61 = vpack.c.bf16 %v565_v54, %v557_v53  ;;  %v564_v63 = vld [vmem:[#allocation7 + $0x3d0] sm:$0xff]  ;;  %v573_v1 = vld [vmem:[#allocation7 + $0x418] sm:$0xff] }
 0x120   : > { %4021 = vmatpush1.bf16.msra.mxu0 %v4020_v51  ;;  %v548_v51 = vld [vmem:[#allocation7 + $0x350] sm:$0xff]  ;;  %4083 = vmatprep.subr.bf16.mxu1 %v4082_v49  ;;  %v581_v2 = vld [vmem:[#allocation7 + $0x458] sm:$0xff]  ;;  %v650_v4 = vld [vmem:[#allocation7 + $0x680] sm:$0xff]  ;;  %v4088_v8 = vpack.c.bf16 %v564_v63, %v556_v62 }
 0x121   : > { %4023 = vmatprep.subr.bf16.mxu0 %v4022_v57  ;;  %v642_v57 = vld [vmem:[#allocation7 + $0x640] sm:$0xff]  ;;  %v4084_v60 = vpack.c.bf16 %v548_v51, %v540_v50  ;;  %v675_v7 = vld [vmem:[#allocation7 + $0x748] sm:$0xff]  ;;  %v4090_v9 = vpack.c.bf16 %v581_v2, %v573_v1  ;;  %v572_v10 = vld [vmem:[#allocation7 + $0x410] sm:$0xff] }
 0x122   : > { %v4044_v0 = vpack.c.bf16 %v642_v57, %v634_v56  ;;  %v658_v5 = vld [vmem:[#allocation7 + $0x6c0] sm:$0xff]  ;;  %v580_v11 = vld [vmem:[#allocation7 + $0x450] sm:$0xff]  ;;  %v589_v13 = vld [vmem:[#allocation7 + $0x498] sm:$0xff] }
 0x123   : > { %4085 = vmatpush1.bf16.msra.mxu1 %v4084_v60  ;;  %v4048_v12 = vpack.c.bf16 %v658_v5, %v650_v4  ;;  %v597_v14 = vld [vmem:[#allocation7 + $0x4d8] sm:$0xff]  ;;  %v666_v16 = vld [vmem:[#allocation7 + $0x700] sm:$0xff]  ;;  %v691_v19 = vld [vmem:[#allocation7 + $0x7c8] sm:$0xff]  ;;  %v4092_v20 = vpack.c.bf16 %v580_v11, %v572_v10 }
 0x124   : > { %4025 = vmatpush1.bf16.msra.mxu0 %v4024_v3  ;;  %v4046_v3 = vpack.c.bf16 %v659_v59, %v651_v58  ;;  %4087 = vmatprep.subr.bf16.mxu1 %v4086_v61  ;;  %v674_v17 = vld [vmem:[#allocation7 + $0x740] sm:$0xff]  ;;  %v4094_v21 = vpack.c.bf16 %v597_v14, %v589_v13  ;;  %v588_v22 = vld [vmem:[#allocation7 + $0x490] sm:$0xff]  ;;  %v605_v25 = vld [vmem:[#allocation7 + $0x518] sm:$0xff] }
 0x125   : > { %4027 = vmatprep.subr.bf16.mxu0 %v4026_v6  ;;  %v667_v6 = vld [vmem:[#allocation7 + $0x708] sm:$0xff]  ;;  %v596_v23 = vld [vmem:[#allocation7 + $0x4d0] sm:$0xff]  ;;  %v4052_v24 = vpack.c.bf16 %v674_v17, %v666_v16  ;;  %v613_v26 = vld [vmem:[#allocation7 + $0x558] sm:$0xff] }
 0x126   : > { %v682_v28 = vld [vmem:[#allocation7 + $0x780] sm:$0xff]  ;;  %v447_v31 = vld [vmem:[#allocation7 + $0x28] sm:$0xff]  ;;  %v4098_v33 = vpack.c.bf16 %v613_v26, %v605_v25  ;;  %v604_v34 = vld [vmem:[#allocation7 + $0x510] sm:$0xff] }
 0x127   : > { %4089 = vmatpush1.bf16.msra.mxu1 %v4088_v8  ;;  %v690_v29 = vld [vmem:[#allocation7 + $0x7c0] sm:$0xff]  ;;  %v455_v32 = vld [vmem:[#allocation7 + $0x68] sm:$0xff]  ;;  %v612_v35 = vld [vmem:[#allocation7 + $0x550] sm:$0xff] }
 0x128   : > { %4029 = vmatpush1.bf16.msra.mxu0 %v4028_v15  ;;  %v4050_v15 = vpack.c.bf16 %v675_v7, %v667_v6  ;;  %4091 = vmatprep.subr.bf16.mxu1 %v4090_v9  ;;  %v4056_v36 = vpack.c.bf16 %v690_v29, %v682_v28  ;;  %v621_v37 = vld [vmem:[#allocation7 + $0x598] sm:$0xff]  ;;  %v446_v40 = vld [vmem:[#allocation7 + $0x20] sm:$0xff]  ;;  %v463_v44 = vld [vmem:[#allocation7 + $0xa8] sm:$0xff] }
 0x129   : > { %4031 = vmatprep.subr.bf16.mxu0 %v4030_v18  ;;  %v683_v18 = vld [vmem:[#allocation7 + $0x788] sm:$0xff]  ;;  %v629_v38 = vld [vmem:[#allocation7 + $0x5d8] sm:$0xff]  ;;  %v454_v41 = vld [vmem:[#allocation7 + $0x60] sm:$0xff] }
 0x12a   : > { %v471_v45 = vld [vmem:[#allocation7 + $0xe8] sm:$0xff]  ;;  %v4102_v46 = vpack.c.bf16 %v629_v38, %v621_v37  ;;  %v620_v47 = vld [vmem:[#allocation7 + $0x590] sm:$0xff]  ;;  %v637_v50 = vld [vmem:[#allocation7 + $0x618] sm:$0xff] }
 0x12b   : > { %4093 = vmatpush1.bf16.msra.mxu1 %v4092_v20  ;;  %v628_v48 = vld [vmem:[#allocation7 + $0x5d0] sm:$0xff]  ;;  %v645_v51 = vld [vmem:[#allocation7 + $0x658] sm:$0xff]  ;;  %v4126_v53 = vpack.c.bf16 %v471_v45, %v463_v44  ;;  %v462_v54 = vld [vmem:[#allocation7 + $0xa0] sm:$0xff] }
 0x12c   : > { %4033 = vmatpush1.bf16.msra.mxu0 %v4032_v27  ;;  %v4054_v27 = vpack.c.bf16 %v691_v19, %v683_v18  ;;  %4095 = vmatprep.subr.bf16.mxu1 %v4094_v21  ;;  %v6259_v49 = vld [vmem:[%s6221_s23] sm:$0xff]  ;;  %v4104_v56 = vpack.c.bf16 %v628_v48, %v620_v47  ;;  %v479_v57 = vld [vmem:[#allocation7 + $0x128] sm:$0xff]  ;;  %v4106_v59 = vpack.c.bf16 %v645_v51, %v637_v50  ;;  %v653_v62 = vld [vmem:[#allocation7 + $0x698] sm:$0xff] }
 0x12d   : > { %4035 = vmatprep.subr.bf16.mxu0 %v4034_v30  ;;  %v4096_v30 = vpack.c.bf16 %v596_v23, %v588_v22  ;;  %v487_v58 = vld [vmem:[#allocation7 + $0x168] sm:$0xff]  ;;  %v636_v60 = vld [vmem:[#allocation7 + $0x610] sm:$0xff]  ;;  %v661_v63 = vld [vmem:[#allocation7 + $0x6d8] sm:$0xff] }
 0x12e   : > { %v644_v61 = vld [vmem:[#allocation7 + $0x650] sm:$0xff]  ;;  %v4130_v1 = vpack.c.bf16 %v487_v58, %v479_v57  ;;  %v478_v2 = vld [vmem:[#allocation7 + $0x120] sm:$0xff]  ;;  %v495_v5 = vld [vmem:[#allocation7 + $0x1a8] sm:$0xff]  ;;  %v4110_v7 = vpack.c.bf16 %v661_v63, %v653_v62 }
 0x12f   : > { %4097 = vmatpush1.bf16.msra.mxu1 %v4096_v30  ;;  %v4108_v4 = vpack.c.bf16 %v644_v61, %v636_v60  ;;  %v503_v6 = vld [vmem:[#allocation7 + $0x1e8] sm:$0xff]  ;;  %v652_v8 = vld [vmem:[#allocation7 + $0x690] sm:$0xff]  ;;  %v669_v10 = vld [vmem:[#allocation7 + $0x718] sm:$0xff] }
 0x130   : > { %4037 = vmatpush1.bf16.msra.mxu0 %v4036_v39  ;;  %v4122_v39 = vpack.c.bf16 %v455_v32, %v447_v31  ;;  %4099 = vmatprep.subr.bf16.mxu1 %v4098_v33  ;;  %v660_v9 = vld [vmem:[#allocation7 + $0x6d0] sm:$0xff]  ;;  %v677_v11 = vld [vmem:[#allocation7 + $0x758] sm:$0xff]  ;;  %v4134_v13 = vpack.c.bf16 %v503_v6, %v495_v5  ;;  %v494_v14 = vld [vmem:[#allocation7 + $0x1a0] sm:$0xff] }
 0x131   : > { %4039 = vmatprep.subr.bf16.mxu0 %v4038_v43  ;;  %v4100_v43 = vpack.c.bf16 %v612_v35, %v604_v34  ;;  %v4112_v16 = vpack.c.bf16 %v660_v9, %v652_v8  ;;  %v511_v17 = vld [vmem:[#allocation7 + $0x228] sm:$0xff]  ;;  %v4114_v19 = vpack.c.bf16 %v677_v11, %v669_v10  ;;  %v668_v20 = vld [vmem:[#allocation7 + $0x710] sm:$0xff]  ;;  %v685_v22 = vld [vmem:[#allocation7 + $0x798] sm:$0xff] }
 0x132   : > { %v519_v18 = vld [vmem:[#allocation7 + $0x268] sm:$0xff]  ;;  %v676_v21 = vld [vmem:[#allocation7 + $0x750] sm:$0xff]  ;;  %v693_v23 = vld [vmem:[#allocation7 + $0x7d8] sm:$0xff] }
 0x133   : > { %4101 = vmatpush1.bf16.msra.mxu1 %v4100_v43  ;;  %v4138_v25 = vpack.c.bf16 %v519_v18, %v511_v17  ;;  %v510_v26 = vld [vmem:[#allocation7 + $0x220] sm:$0xff]  ;;  %v4116_v28 = vpack.c.bf16 %v676_v21, %v668_v20  ;;  %v527_v29 = vld [vmem:[#allocation7 + $0x2a8] sm:$0xff]  ;;  %v4118_v31 = vpack.c.bf16 %v693_v23, %v685_v22  ;;  %v684_v32 = vld [vmem:[#allocation7 + $0x790] sm:$0xff] }
 0x134   : > { %4041 = vmatpush1.bf16.msra.mxu0 %v4040_v52  ;;  %v4124_v52 = vpack.c.bf16 %v454_v41, %v446_v40  ;;  %4103 = vmatprep.subr.bf16.mxu1 %v4102_v46  ;;  %v535_v30 = vld [vmem:[#allocation7 + $0x2e8] sm:$0xff]  ;;  %v692_v33 = vld [vmem:[#allocation7 + $0x7d0] sm:$0xff]  ;;  %v449_v35 = vld [vmem:[#allocation7 + $0x38] sm:$0xff] }
 0x135   : > { %4043 = vmatprep.subr.bf16.mxu0 %v4042_v55  ;;  %v470_v55 = vld [vmem:[#allocation7 + $0xe0] sm:$0xff]  ;;  %v4142_v37 = vpack.c.bf16 %v535_v30, %v527_v29  ;;  %v4120_v40 = vpack.c.bf16 %v692_v33, %v684_v32  ;;  %v543_v41 = vld [vmem:[#allocation7 + $0x328] sm:$0xff]  ;;  %v448_v45 = vld [vmem:[#allocation7 + $0x30] sm:$0xff] }
 0x136   : > { %v526_v38 = vld [vmem:[#allocation7 + $0x2a0] sm:$0xff]  ;;  %v551_v43 = vld [vmem:[#allocation7 + $0x368] sm:$0xff]  ;;  %v456_v46 = vld [vmem:[#allocation7 + $0x70] sm:$0xff] }
 0x137   : > { %4105 = vmatpush1.bf16.msra.mxu1 %v4104_v56  ;;  %v465_v48 = vld [vmem:[#allocation7 + $0xb8] sm:$0xff]  ;;  %v4146_v51 = vpack.c.bf16 %v551_v43, %v543_v41  ;;  %v567_v56 = vld [vmem:[#allocation7 + $0x3e8] sm:$0xff]  ;;  %v464_v58 = vld [vmem:[#allocation7 + $0xb0] sm:$0xff] }
 0x138   : > { %4045 = vmatpush1.bf16.msra.mxu0 %v4044_v0  ;;  %v4128_v0 = vpack.c.bf16 %v470_v55, %v462_v54  ;;  %4107 = vmatprep.subr.bf16.mxu1 %v4106_v59  ;;  %v473_v50 = vld [vmem:[#allocation7 + $0xf8] sm:$0xff]  ;;  %v4188_v54 = vpack.c.bf16 %v456_v46, %v448_v45  ;;  %v559_v55 = vld [vmem:[#allocation7 + $0x3a8] sm:$0xff]  ;;  %v472_v59 = vld [vmem:[#allocation7 + $0xf0] sm:$0xff] }
 0x139   : > { %4047 = vmatprep.subr.bf16.mxu0 %v4046_v3  ;;  %v486_v3 = vld [vmem:[#allocation7 + $0x160] sm:$0xff]  ;;  %v4190_v57 = vpack.c.bf16 %v473_v50, %v465_v48  ;;  %v481_v61 = vld [vmem:[#allocation7 + $0x138] sm:$0xff]  ;;  %v4150_v63 = vpack.c.bf16 %v567_v56, %v559_v55  ;;  %v480_v6 = vld [vmem:[#allocation7 + $0x130] sm:$0xff] }
 0x13a   : > { %v489_v62 = vld [vmem:[#allocation7 + $0x178] sm:$0xff]  ;;  %v496_v18 = vld [vmem:[#allocation7 + $0x1b0] sm:$0xff]  ;;  %v590_v23 = vld [vmem:[#allocation7 + $0x4a0] sm:$0xff] }
 0x13b   : > { %4109 = vmatpush1.bf16.msra.mxu1 %v4108_v4  ;;  %v583_v4 = vld [vmem:[#allocation7 + $0x468] sm:$0xff]  ;;  %v4194_v5 = vpack.c.bf16 %v489_v62, %v481_v61  ;;  %v497_v9 = vld [vmem:[#allocation7 + $0x1b8] sm:$0xff]  ;;  %v512_v29 = vld [vmem:[#allocation7 + $0x230] sm:$0xff] }
 0x13c   : > { %4049 = vmatpush1.bf16.msra.mxu0 %v4048_v12  ;;  %v4132_v12 = vpack.c.bf16 %v486_v3, %v478_v2  ;;  %4111 = vmatprep.subr.bf16.mxu1 %v4110_v7  ;;  %v4192_v2 = vpack.c.bf16 %v472_v59, %v464_v58  ;;  %v575_v3 = vld [vmem:[#allocation7 + $0x428] sm:$0xff]  ;;  %v488_v7 = vld [vmem:[#allocation7 + $0x170] sm:$0xff]  ;;  %v505_v10 = vld [vmem:[#allocation7 + $0x1f8] sm:$0xff] }
 0x13d   : > { %4051 = vmatprep.subr.bf16.mxu0 %v4050_v15  ;;  %v502_v15 = vld [vmem:[#allocation7 + $0x1e0] sm:$0xff]  ;;  %v4154_v11 = vpack.c.bf16 %v583_v4, %v575_v3  ;;  %v4198_v17 = vpack.c.bf16 %v505_v10, %v497_v9  ;;  %v513_v20 = vld [vmem:[#allocation7 + $0x238] sm:$0xff]  ;;  %v520_v30 = vld [vmem:[#allocation7 + $0x270] sm:$0xff] }
 0x13e   : > { %v521_v21 = vld [vmem:[#allocation7 + $0x278] sm:$0xff]  ;;  %v528_v41 = vld [vmem:[#allocation7 + $0x2b0] sm:$0xff]  ;;  %v622_v48 = vld [vmem:[#allocation7 + $0x5a0] sm:$0xff] }
 0x13f   : > { %4113 = vmatpush1.bf16.msra.mxu1 %v4112_v16  ;;  %v599_v16 = vld [vmem:[#allocation7 + $0x4e8] sm:$0xff]  ;;  %v529_v32 = vld [vmem:[#allocation7 + $0x2b8] sm:$0xff]  ;;  %v536_v43 = vld [vmem:[#allocation7 + $0x2f0] sm:$0xff] }
 0x140   : > { %4053 = vmatpush1.bf16.msra.mxu0 %v4052_v24  ;;  %v4136_v24 = vpack.c.bf16 %v502_v15, %v494_v14  ;;  %4115 = vmatprep.subr.bf16.mxu1 %v4114_v19  ;;  %v4196_v14 = vpack.c.bf16 %v488_v7, %v480_v6  ;;  %v591_v15 = vld [vmem:[#allocation7 + $0x4a8] sm:$0xff]  ;;  %v537_v33 = vld [vmem:[#allocation7 + $0x2f8] sm:$0xff]  ;;  %v630_v50 = vld [vmem:[#allocation7 + $0x5e0] sm:$0xff] }
 0x141   : > { %4055 = vmatprep.subr.bf16.mxu0 %v4054_v27  ;;  %v518_v27 = vld [vmem:[#allocation7 + $0x260] sm:$0xff]  ;;  %v4158_v22 = vpack.c.bf16 %v599_v16, %v591_v15  ;;  %v545_v45 = vld [vmem:[#allocation7 + $0x338] sm:$0xff]  ;;  %v544_v55 = vld [vmem:[#allocation7 + $0x330] sm:$0xff] }
 0x142   : > { %v4140_v34 = vpack.c.bf16 %v518_v27, %v510_v26  ;;  %v607_v26 = vld [vmem:[#allocation7 + $0x528] sm:$0xff]  ;;  %v553_v46 = vld [vmem:[#allocation7 + $0x378] sm:$0xff]  ;;  %v552_v56 = vld [vmem:[#allocation7 + $0x370] sm:$0xff] }
 0x143   : > { %4117 = vmatpush1.bf16.msra.mxu1 %v4116_v28  ;;  %v615_v27 = vld [vmem:[#allocation7 + $0x568] sm:$0xff]  ;;  %v4202_v28 = vpack.c.bf16 %v521_v21, %v513_v20  ;;  %v561_v58 = vld [vmem:[#allocation7 + $0x3b8] sm:$0xff]  ;;  %v638_v61 = vld [vmem:[#allocation7 + $0x620] sm:$0xff] }
 0x144   : > { %4057 = vmatpush1.bf16.msra.mxu0 %v4056_v36  ;;  %v457_v36 = vld [vmem:[#allocation7 + $0x78] sm:$0xff]  ;;  %4119 = vmatprep.subr.bf16.mxu1 %v4118_v31  ;;  %v646_v62 = vld [vmem:[#allocation7 + $0x660] sm:$0xff]  ;;  %v560_v3 = vld [vmem:[#allocation7 + $0x3b0] sm:$0xff] }
 0x145   : > { %4123 = vmatprep.subr.bf16.mxu0 %v4122_v39  ;;  %v534_v39 = vld [vmem:[#allocation7 + $0x2e0] sm:$0xff]  ;;  %v4186_v44 = vpack.c.bf16 %v457_v36, %v449_v35  ;;  %v569_v59 = vld [vmem:[#allocation7 + $0x3f8] sm:$0xff]  ;;  %v568_v4 = vld [vmem:[#allocation7 + $0x3f0] sm:$0xff] }
 0x146   : > { %v4144_v47 = vpack.c.bf16 %v534_v39, %v526_v38  ;;  %v606_v35 = vld [vmem:[#allocation7 + $0x520] sm:$0xff]  ;;  %v623_v38 = vld [vmem:[#allocation7 + $0x5a8] sm:$0xff]  ;;  %v577_v6 = vld [vmem:[#allocation7 + $0x438] sm:$0xff] }
 0x147   : > { %805 = vmatmul.mubr.f32.vlgmr.msra.gmra.mrb[0].mxu0 %v6259_v49  ;;  %4121 = vmatpush1.bf16.msra.mxu1 %v4120_v40  ;;  %v614_v36 = vld [vmem:[#allocation7 + $0x560] sm:$0xff]  ;;  %v631_v39 = vld [vmem:[#allocation7 + $0x5e8] sm:$0xff]  ;;  %v4206_v40 = vpack.c.bf16 %v537_v33, %v529_v32  ;;  %v585_v7 = vld [vmem:[#allocation7 + $0x478] sm:$0xff] }
 0x148   : > { %4125 = vmatpush1.bf16.msra.mxu0 %v4124_v52  ;;  %946 = vmatprep.mubr.f32.mxu0 %v6254_v42  ;;  %v542_v52 = vld [vmem:[#allocation7 + $0x320] sm:$0xff]  ;;  %v576_v15 = vld [vmem:[#allocation7 + $0x430] sm:$0xff] }
 0x149   : > { %4127 = vmatprep.subr.bf16.mxu0 %v4126_v53  ;;  %v550_v53 = vld [vmem:[#allocation7 + $0x360] sm:$0xff]  ;;  %4187 = vmatprep.subr.bf16.mxu1 %v4186_v44  ;;  %v4164_v44 = vpack.c.bf16 %v614_v36, %v606_v35  ;;  %v584_v16 = vld [vmem:[#allocation7 + $0x470] sm:$0xff] }
 0x14a   : > { %v4148_v60 = vpack.c.bf16 %v550_v53, %v542_v52  ;;  %876 = vmatmul.mubr.f32.vlgmr.msra.gmra.mrb[0].mxu1 %v6259_v49  ;;  %v639_v52 = vld [vmem:[#allocation7 + $0x628] sm:$0xff]  ;;  %v654_v9 = vld [vmem:[#allocation7 + $0x6a0] sm:$0xff]  ;;  %v1033_v35 = vld [vmem:[#allocation10 + $0x8] sm:$0xff] }
 0x14b   : > { %4189 = vmatpush1.bf16.msra.mxu1 %v4188_v54  ;;  %1017 = vmatprep.mubr.f32.mxu1 %v6254_v42  ;;  %v504_v42 = vld [vmem:[#allocation7 + $0x1f0] sm:$0xff]  ;;  %v647_v53 = vld [vmem:[#allocation7 + $0x668] sm:$0xff]  ;;  %v4210_v54 = vpack.c.bf16 %v553_v46, %v545_v45  ;;  %v662_v10 = vld [vmem:[#allocation7 + $0x6e0] sm:$0xff] }
 0x14c   : > { %4129 = vmatpush1.bf16.msra.mxu0 %v4128_v0  ;;  %v558_v0 = vld [vmem:[#allocation7 + $0x3a0] sm:$0xff]  ;;  %4191 = vmatprep.subr.bf16.mxu1 %v4190_v57  ;;  %v4168_v57 = vpack.c.bf16 %v630_v50, %v622_v48  ;;  %v1041_v36 = vld [vmem:[#allocation10 + $0x48] sm:$0xff]  ;;  %v1032_v45 = vld [vmem:[#allocation10] sm:$0xff] }
 0x14d   : > { %4131 = vmatprep.subr.bf16.mxu0 %v4130_v1  ;;  %v566_v1 = vld [vmem:[#allocation7 + $0x3e0] sm:$0xff]  ;;  %v1040_v46 = vld [vmem:[#allocation10 + $0x40] sm:$0xff]  ;;  %v1049_v48 = vld [vmem:[#allocation10 + $0x88] sm:$0xff] }
 0x14e   : > { %v4152_v8 = vpack.c.bf16 %v566_v1, %v558_v0  ;;  %v655_v0 = vld [vmem:[#allocation7 + $0x6a8] sm:$0xff]  ;;  %v670_v20 = vld [vmem:[#allocation7 + $0x720] sm:$0xff]  ;;  %v1057_v50 = vld [vmem:[#allocation10 + $0xc8] sm:$0xff] }
 0x14f   : > { %4193 = vmatpush1.bf16.msra.mxu1 %v4192_v2  ;;  %v663_v1 = vld [vmem:[#allocation7 + $0x6e8] sm:$0xff]  ;;  %v4214_v2 = vpack.c.bf16 %v569_v59, %v561_v58  ;;  %v678_v21 = vld [vmem:[#allocation7 + $0x760] sm:$0xff] }
 0x150   : > { %4133 = vmatpush1.bf16.msra.mxu0 %v4132_v12  ;;  %v574_v12 = vld [vmem:[#allocation7 + $0x420] sm:$0xff]  ;;  %4195 = vmatprep.subr.bf16.mxu1 %v4194_v5  ;;  %v4172_v5 = vpack.c.bf16 %v646_v62, %v638_v61  ;;  %v1048_v58 = vld [vmem:[#allocation10 + $0x80] sm:$0xff]  ;;  %v1065_v61 = vld [vmem:[#allocation10 + $0x108] sm:$0xff] }
 0x151   : > { %4135 = vmatprep.subr.bf16.mxu0 %v4134_v13  ;;  %v582_v13 = vld [vmem:[#allocation7 + $0x460] sm:$0xff]  ;;  %v1056_v59 = vld [vmem:[#allocation10 + $0xc0] sm:$0xff]  ;;  %v1073_v62 = vld [vmem:[#allocation10 + $0x148] sm:$0xff] }
 0x152   : > { %v4156_v19 = vpack.c.bf16 %v582_v13, %v574_v12  ;;  %v671_v12 = vld [vmem:[#allocation7 + $0x728] sm:$0xff]  ;;  %v686_v32 = vld [vmem:[#allocation7 + $0x7a0] sm:$0xff] }
 0x153   : > { %4197 = vmatpush1.bf16.msra.mxu1 %v4196_v14  ;;  %v679_v13 = vld [vmem:[#allocation7 + $0x768] sm:$0xff]  ;;  %v4218_v14 = vpack.c.bf16 %v585_v7, %v577_v6  ;;  %v694_v33 = vld [vmem:[#allocation7 + $0x7e0] sm:$0xff] }
 0x154   : > { %4137 = vmatpush1.bf16.msra.mxu0 %v4136_v24  ;;  %v598_v24 = vld [vmem:[#allocation7 + $0x4e0] sm:$0xff]  ;;  %4199 = vmatprep.subr.bf16.mxu1 %v4198_v17  ;;  %v4176_v17 = vpack.c.bf16 %v662_v10, %v654_v9  ;;  %v1064_v6 = vld [vmem:[#allocation10 + $0x100] sm:$0xff]  ;;  %v1081_v9 = vld [vmem:[#allocation10 + $0x188] sm:$0xff] }
 0x155   : > { %4139 = vmatprep.subr.bf16.mxu0 %v4138_v25  ;;  %v4200_v25 = vpack.c.bf16 %v504_v42, %v496_v18  ;;  %v4160_v31 = vpack.c.bf16 %v598_v24, %v590_v23  ;;  %v593_v18 = vld [vmem:[#allocation7 + $0x4b8] sm:$0xff]  ;;  %v687_v23 = vld [vmem:[#allocation7 + $0x7a8] sm:$0xff]  ;;  %v1089_v10 = vld [vmem:[#allocation10 + $0x1c8] sm:$0xff] }
 0x156   : > { %v601_v42 = vld [vmem:[#allocation7 + $0x4f8] sm:$0xff]  ;;  %v695_v24 = vld [vmem:[#allocation7 + $0x7e8] sm:$0xff] }
 0x157   : > { %4201 = vmatpush1.bf16.msra.mxu1 %v4200_v25  ;;  %v4222_v25 = vpack.c.bf16 %v601_v42, %v593_v18  ;;  %v1072_v7 = vld [vmem:[#allocation10 + $0x140] sm:$0xff] }
 0x158   : > { %4141 = vmatpush1.bf16.msra.mxu0 %v4140_v34  ;;  %v4162_v34 = vpack.c.bf16 %v615_v27, %v607_v26  ;;  %4203 = vmatprep.subr.bf16.mxu1 %v4202_v28  ;;  %v592_v26 = vld [vmem:[#allocation7 + $0x4b0] sm:$0xff]  ;;  %v4180_v28 = vpack.c.bf16 %v678_v21, %v670_v20  ;;  %v1080_v18 = vld [vmem:[#allocation10 + $0x180] sm:$0xff] }
 0x159   : > { %4143 = vmatprep.subr.bf16.mxu0 %v4142_v37  ;;  %v4204_v37 = vpack.c.bf16 %v520_v30, %v512_v29  ;;  %v600_v27 = vld [vmem:[#allocation7 + $0x4f0] sm:$0xff]  ;;  %v609_v29 = vld [vmem:[#allocation7 + $0x538] sm:$0xff]  ;;  %v1088_v42 = vld [vmem:[#allocation10 + $0x1c0] sm:$0xff] }
 0x15a   : > { %v617_v30 = vld [vmem:[#allocation7 + $0x578] sm:$0xff]  ;;  %v1097_v20 = vld [vmem:[#allocation10 + $0x208] sm:$0xff] }
 0x15b   : > { %4205 = vmatpush1.bf16.msra.mxu1 %v4204_v37  ;;  %v4226_v37 = vpack.c.bf16 %v617_v30, %v609_v29  ;;  %v1105_v21 = vld [vmem:[#allocation10 + $0x248] sm:$0xff]  ;;  %v1096_v29 = vld [vmem:[#allocation10 + $0x200] sm:$0xff] }
 0x15c   : > { %4145 = vmatpush1.bf16.msra.mxu0 %v4144_v47  ;;  %v4166_v47 = vpack.c.bf16 %v631_v39, %v623_v38  ;;  %4207 = vmatprep.subr.bf16.mxu1 %v4206_v40  ;;  %v608_v38 = vld [vmem:[#allocation7 + $0x530] sm:$0xff]  ;;  %v4184_v40 = vpack.c.bf16 %v694_v33, %v686_v32  ;;  %v1104_v30 = vld [vmem:[#allocation10 + $0x240] sm:$0xff] }
 0x15d   : > { %4147 = vmatprep.subr.bf16.mxu0 %v4146_v51  ;;  %v4208_v51 = vpack.c.bf16 %v536_v43, %v528_v41  ;;  %v616_v39 = vld [vmem:[#allocation7 + $0x570] sm:$0xff]  ;;  %v625_v41 = vld [vmem:[#allocation7 + $0x5b8] sm:$0xff] }
 0x15e   : > { %v633_v43 = vld [vmem:[#allocation7 + $0x5f8] sm:$0xff]  ;;  %v1113_v32 = vld [vmem:[#allocation10 + $0x288] sm:$0xff] }
 0x15f   : > { %4209 = vmatpush1.bf16.msra.mxu1 %v4208_v51  ;;  %v4230_v51 = vpack.c.bf16 %v633_v43, %v625_v41  ;;  %v1121_v33 = vld [vmem:[#allocation10 + $0x2c8] sm:$0xff]  ;;  %v1112_v41 = vld [vmem:[#allocation10 + $0x280] sm:$0xff] }
 0x160   : > { %4149 = vmatpush1.bf16.msra.mxu0 %v4148_v60  ;;  %v4170_v60 = vpack.c.bf16 %v647_v53, %v639_v52  ;;  %4211 = vmatprep.subr.bf16.mxu1 %v4210_v54  ;;  %v624_v52 = vld [vmem:[#allocation7 + $0x5b0] sm:$0xff]  ;;  %v641_v54 = vld [vmem:[#allocation7 + $0x638] sm:$0xff]  ;;  %v1120_v43 = vld [vmem:[#allocation10 + $0x2c0] sm:$0xff] }
 0x161   : > { %4151 = vmatprep.subr.bf16.mxu0 %v4150_v63  ;;  %v4212_v63 = vpack.c.bf16 %v552_v56, %v544_v55  ;;  %v632_v53 = vld [vmem:[#allocation7 + $0x5f0] sm:$0xff]  ;;  %v649_v55 = vld [vmem:[#allocation7 + $0x678] sm:$0xff]  ;;  %v4252_v56 = vpack.c.bf16 %v1040_v46, %v1032_v45 }
 0x162   : > { %v1129_v45 = vld [vmem:[#allocation10 + $0x308] sm:$0xff] }
 0x163   : > { %4213 = vmatpush1.bf16.msra.mxu1 %v4212_v63  ;;  %v4234_v63 = vpack.c.bf16 %v649_v55, %v641_v54  ;;  %v1137_v46 = vld [vmem:[#allocation10 + $0x348] sm:$0xff]  ;;  %v1128_v55 = vld [vmem:[#allocation10 + $0x300] sm:$0xff] }
 0x164   : > { %4153 = vmatpush1.bf16.msra.mxu0 %v4152_v8  ;;  %v4174_v8 = vpack.c.bf16 %v663_v1, %v655_v0  ;;  %4215 = vmatprep.subr.bf16.mxu1 %v4214_v2  ;;  %v640_v0 = vld [vmem:[#allocation7 + $0x630] sm:$0xff]  ;;  %v657_v2 = vld [vmem:[#allocation7 + $0x6b8] sm:$0xff]  ;;  %v4274_v54 = vpack.c.bf16 %v1137_v46, %v1129_v45  ;;  %v1131_v46 = vld [vmem:[#allocation10 + $0x318] sm:$0xff] }
 0x165   : > { %4155 = vmatprep.subr.bf16.mxu0 %v4154_v11  ;;  %v4216_v11 = vpack.c.bf16 %v568_v4, %v560_v3  ;;  %v648_v1 = vld [vmem:[#allocation7 + $0x670] sm:$0xff]  ;;  %v665_v3 = vld [vmem:[#allocation7 + $0x6f8] sm:$0xff]  ;;  %v4256_v4 = vpack.c.bf16 %v1056_v59, %v1048_v58 }
 0x166   : > { %v1145_v58 = vld [vmem:[#allocation10 + $0x388] sm:$0xff]  ;;  %v1122_v45 = vld [vmem:[#allocation10 + $0x2d0] sm:$0xff] }
 0x167   : > { %4217 = vmatpush1.bf16.msra.mxu1 %v4216_v11  ;;  %v4238_v11 = vpack.c.bf16 %v665_v3, %v657_v2  ;;  %v1153_v59 = vld [vmem:[#allocation10 + $0x3c8] sm:$0xff]  ;;  %v1144_v3 = vld [vmem:[#allocation10 + $0x380] sm:$0xff] }
 0x168   : > { %4157 = vmatpush1.bf16.msra.mxu0 %v4156_v19  ;;  %v4178_v19 = vpack.c.bf16 %v679_v13, %v671_v12  ;;  %4219 = vmatprep.subr.bf16.mxu1 %v4218_v14  ;;  %v656_v12 = vld [vmem:[#allocation7 + $0x6b0] sm:$0xff]  ;;  %v673_v14 = vld [vmem:[#allocation7 + $0x738] sm:$0xff]  ;;  %v4278_v2 = vpack.c.bf16 %v1153_v59, %v1145_v58  ;;  %v1147_v59 = vld [vmem:[#allocation10 + $0x398] sm:$0xff] }
 0x169   : > { %4159 = vmatprep.subr.bf16.mxu0 %v4158_v22  ;;  %v4220_v22 = vpack.c.bf16 %v584_v16, %v576_v15  ;;  %v664_v13 = vld [vmem:[#allocation7 + $0x6f0] sm:$0xff]  ;;  %v681_v15 = vld [vmem:[#allocation7 + $0x778] sm:$0xff]  ;;  %v4260_v16 = vpack.c.bf16 %v1072_v7, %v1064_v6 }
 0x16a   : > { %v1161_v6 = vld [vmem:[#allocation10 + $0x408] sm:$0xff]  ;;  %v1138_v58 = vld [vmem:[#allocation10 + $0x350] sm:$0xff] }
 0x16b   : > { %4221 = vmatpush1.bf16.msra.mxu1 %v4220_v22  ;;  %v4242_v22 = vpack.c.bf16 %v681_v15, %v673_v14  ;;  %v1169_v7 = vld [vmem:[#allocation10 + $0x448] sm:$0xff]  ;;  %v1160_v15 = vld [vmem:[#allocation10 + $0x400] sm:$0xff] }
 0x16c   : > { %4161 = vmatpush1.bf16.msra.mxu0 %v4160_v31  ;;  %v4182_v31 = vpack.c.bf16 %v695_v24, %v687_v23  ;;  %4223 = vmatprep.subr.bf16.mxu1 %v4222_v25  ;;  %v672_v23 = vld [vmem:[#allocation7 + $0x730] sm:$0xff]  ;;  %v689_v25 = vld [vmem:[#allocation7 + $0x7b8] sm:$0xff]  ;;  %v4282_v14 = vpack.c.bf16 %v1169_v7, %v1161_v6  ;;  %v1163_v7 = vld [vmem:[#allocation10 + $0x418] sm:$0xff] }
 0x16d   : > { %4163 = vmatprep.subr.bf16.mxu0 %v4162_v34  ;;  %v4224_v34 = vpack.c.bf16 %v600_v27, %v592_v26  ;;  %v680_v24 = vld [vmem:[#allocation7 + $0x770] sm:$0xff]  ;;  %v697_v26 = vld [vmem:[#allocation7 + $0x7f8] sm:$0xff]  ;;  %v4264_v27 = vpack.c.bf16 %v1088_v42, %v1080_v18 }
 0x16e   : > { %v1185_v18 = vld [vmem:[#allocation10 + $0x4c8] sm:$0xff]  ;;  %v1154_v6 = vld [vmem:[#allocation10 + $0x3d0] sm:$0xff] }
 0x16f   : > { %4225 = vmatpush1.bf16.msra.mxu1 %v4224_v34  ;;  %v4246_v34 = vpack.c.bf16 %v697_v26, %v689_v25  ;;  %v1176_v25 = vld [vmem:[#allocation10 + $0x480] sm:$0xff] }
 0x170   : > { %4165 = vmatpush1.bf16.msra.mxu0 %v4164_v44  ;;  %v4250_v44 = vpack.c.bf16 %v1041_v36, %v1033_v35  ;;  %4227 = vmatprep.subr.bf16.mxu1 %v4226_v37  ;;  %v688_v35 = vld [vmem:[#allocation7 + $0x7b0] sm:$0xff]  ;;  %v1035_v37 = vld [vmem:[#allocation10 + $0x18] sm:$0xff]  ;;  %v1184_v26 = vld [vmem:[#allocation10 + $0x4c0] sm:$0xff] }
 0x171   : > { %4167 = vmatprep.subr.bf16.mxu0 %v4166_v47  ;;  %v4228_v47 = vpack.c.bf16 %v616_v39, %v608_v38  ;;  %v696_v36 = vld [vmem:[#allocation7 + $0x7f0] sm:$0xff]  ;;  %v1043_v38 = vld [vmem:[#allocation10 + $0x58] sm:$0xff]  ;;  %v4268_v39 = vpack.c.bf16 %v1104_v30, %v1096_v29 }
 0x172   : > { %v1201_v29 = vld [vmem:[#allocation10 + $0x548] sm:$0xff] }
 0x173   : > { %4229 = vmatpush1.bf16.msra.mxu1 %v4228_v47  ;;  %v4506_v47 = vpack.c.bf16 %v1043_v38, %v1035_v37  ;;  %v1192_v37 = vld [vmem:[#allocation10 + $0x500] sm:$0xff] }
 0x174   : > { %4169 = vmatpush1.bf16.msra.mxu0 %v4168_v57  ;;  %v4254_v57 = vpack.c.bf16 %v1057_v50, %v1049_v48  ;;  %4231 = vmatprep.subr.bf16.mxu1 %v4230_v51  ;;  %v1034_v48 = vld [vmem:[#allocation10 + $0x10] sm:$0xff]  ;;  %v1051_v51 = vld [vmem:[#allocation10 + $0x98] sm:$0xff]  ;;  %v1200_v38 = vld [vmem:[#allocation10 + $0x540] sm:$0xff] }
 0x175   : > { %4171 = vmatprep.subr.bf16.mxu0 %v4170_v60  ;;  %v4232_v60 = vpack.c.bf16 %v632_v53, %v624_v52  ;;  %v1042_v50 = vld [vmem:[#allocation10 + $0x50] sm:$0xff]  ;;  %v1059_v52 = vld [vmem:[#allocation10 + $0xd8] sm:$0xff]  ;;  %v4272_v53 = vpack.c.bf16 %v1120_v43, %v1112_v41  ;;  %v1217_v41 = vld [vmem:[#allocation10 + $0x5c8] sm:$0xff] }
 0x177   : > { %4233 = vmatpush1.bf16.msra.mxu1 %v4232_v60  ;;  %v4510_v60 = vpack.c.bf16 %v1059_v52, %v1051_v51  ;;  %v1208_v51 = vld [vmem:[#allocation10 + $0x580] sm:$0xff] }
 0x178   : > { %4173 = vmatpush1.bf16.msra.mxu0 %v4172_v5  ;;  %v4258_v5 = vpack.c.bf16 %v1073_v62, %v1065_v61  ;;  %4235 = vmatprep.subr.bf16.mxu1 %v4234_v63  ;;  %v1050_v61 = vld [vmem:[#allocation10 + $0x90] sm:$0xff]  ;;  %v1067_v63 = vld [vmem:[#allocation10 + $0x118] sm:$0xff]  ;;  %v1216_v52 = vld [vmem:[#allocation10 + $0x5c0] sm:$0xff] }
 0x179   : > { %4175 = vmatprep.subr.bf16.mxu0 %v4174_v8  ;;  %v4236_v8 = vpack.c.bf16 %v648_v1, %v640_v0  ;;  %v1058_v62 = vld [vmem:[#allocation10 + $0xd0] sm:$0xff]  ;;  %v1075_v0 = vld [vmem:[#allocation10 + $0x158] sm:$0xff] }
 0x17b   : > { %4237 = vmatpush1.bf16.msra.mxu1 %v4236_v8  ;;  %v4514_v8 = vpack.c.bf16 %v1075_v0, %v1067_v63  ;;  %v1224_v63 = vld [vmem:[#allocation10 + $0x600] sm:$0xff] }
 0x17c   : > { %4177 = vmatpush1.bf16.msra.mxu0 %v4176_v17  ;;  %v4262_v17 = vpack.c.bf16 %v1089_v10, %v1081_v9  ;;  %4239 = vmatprep.subr.bf16.mxu1 %v4238_v11  ;;  %v1066_v9 = vld [vmem:[#allocation10 + $0x110] sm:$0xff]  ;;  %v1083_v11 = vld [vmem:[#allocation10 + $0x198] sm:$0xff]  ;;  %v1232_v0 = vld [vmem:[#allocation10 + $0x640] sm:$0xff] }
 0x17d   : > { %4179 = vmatprep.subr.bf16.mxu0 %v4178_v19  ;;  %v4240_v19 = vpack.c.bf16 %v664_v13, %v656_v12  ;;  %v1074_v10 = vld [vmem:[#allocation10 + $0x150] sm:$0xff]  ;;  %v1091_v12 = vld [vmem:[#allocation10 + $0x1d8] sm:$0xff] }
 0x17e   : > { %v4518_v42 = vpack.c.bf16 %v1091_v12, %v1083_v11  ;;  %v1240_v11 = vld [vmem:[#allocation10 + $0x680] sm:$0xff] }
 0x17f   : > { %4241 = vmatpush1.bf16.msra.mxu1 %v4240_v19  ;;  %v1082_v19 = vld [vmem:[#allocation10 + $0x190] sm:$0xff]  ;;  %v1248_v12 = vld [vmem:[#allocation10 + $0x6c0] sm:$0xff] }
 0x180   : > { %4181 = vmatpush1.bf16.msra.mxu0 %v4180_v28  ;;  %v4266_v28 = vpack.c.bf16 %v1105_v21, %v1097_v20  ;;  %4243 = vmatprep.subr.bf16.mxu1 %v4242_v22  ;;  %v1090_v20 = vld [vmem:[#allocation10 + $0x1d0] sm:$0xff]  ;;  %v1099_v21 = vld [vmem:[#allocation10 + $0x218] sm:$0xff] }
 0x181   : > { %4183 = vmatprep.subr.bf16.mxu0 %v4182_v31  ;;  %v4244_v31 = vpack.c.bf16 %v680_v24, %v672_v23  ;;  %v1107_v22 = vld [vmem:[#allocation10 + $0x258] sm:$0xff] }
 0x182   : > { %v4522_v30 = vpack.c.bf16 %v1107_v22, %v1099_v21  ;;  %v1256_v21 = vld [vmem:[#allocation10 + $0x700] sm:$0xff] }
 0x183   : > { %4245 = vmatpush1.bf16.msra.mxu1 %v4244_v31  ;;  %v1098_v31 = vld [vmem:[#allocation10 + $0x210] sm:$0xff]  ;;  %v1264_v22 = vld [vmem:[#allocation10 + $0x740] sm:$0xff] }
 0x184   : > { %4185 = vmatpush1.bf16.msra.mxu0 %v4184_v40  ;;  %v4270_v40 = vpack.c.bf16 %v1121_v33, %v1113_v32  ;;  %4247 = vmatprep.subr.bf16.mxu1 %v4246_v34  ;;  %v1106_v32 = vld [vmem:[#allocation10 + $0x250] sm:$0xff]  ;;  %v1115_v33 = vld [vmem:[#allocation10 + $0x298] sm:$0xff] }
 0x185   : > { %4251 = vmatprep.subr.bf16.mxu0 %v4250_v44  ;;  %v4248_v44 = vpack.c.bf16 %v696_v36, %v688_v35  ;;  %v1123_v34 = vld [vmem:[#allocation10 + $0x2d8] sm:$0xff]  ;;  %v4288_v35 = vpack.c.bf16 %v1184_v26, %v1176_v25  ;;  %v1281_v25 = vld [vmem:[#allocation10 + $0x7c8] sm:$0xff] }
 0x186   : > { %v4526_v43 = vpack.c.bf16 %v1123_v34, %v1115_v33  ;;  %v1272_v33 = vld [vmem:[#allocation10 + $0x780] sm:$0xff] }
 0x187   : > { %947 = vmatmul.mubr.f32.vlgmr.msra.gmra.mrb[2].mxu0 %v6259_v49  ;;  %4249 = vmatpush1.bf16.msra.mxu1 %v4248_v44  ;;  %v1114_v44 = vld [vmem:[#allocation10 + $0x290] sm:$0xff]  ;;  %v1280_v34 = vld [vmem:[#allocation10 + $0x7c0] sm:$0xff] }
 0x188   : > { %4253 = vmatpush1.bf16.msra.mxu0 %v4252_v56  ;;  %v1136_v56 = vld [vmem:[#allocation10 + $0x340] sm:$0xff]  ;;  %4507 = vmatprep.subr.bf16.mxu1 %v4506_v47  ;;  %v1139_v47 = vld [vmem:[#allocation10 + $0x358] sm:$0xff] }
 0x189   : > { %4255 = vmatprep.subr.bf16.mxu0 %v4254_v57  ;;  %v4508_v57 = vpack.c.bf16 %v1042_v50, %v1034_v48  ;;  %v4276_v1 = vpack.c.bf16 %v1136_v56, %v1128_v55  ;;  %v4292_v48 = vpack.c.bf16 %v1200_v38, %v1192_v37  ;;  %v1233_v55 = vld [vmem:[#allocation10 + $0x648] sm:$0xff]  ;;  %v4530_v56 = vpack.c.bf16 %v1139_v47, %v1131_v46 }
 0x18a   : > { %1018 = vmatmul.mubr.f32.vlgmr.msra.gmra.mrb[2].mxu1 %v6259_v49  ;;  %v1168_v49 = vld [vmem:[#allocation10 + $0x440] sm:$0xff]  ;;  %v1297_v37 = vld [vmem:[#allocation10 + $0x848] sm:$0xff] }
 0x18b   : > { %4509 = vmatpush1.bf16.msra.mxu1 %v4508_v57  ;;  %v4284_v23 = vpack.c.bf16 %v1168_v49, %v1160_v15  ;;  %v1130_v57 = vld [vmem:[#allocation10 + $0x310] sm:$0xff]  ;;  %v1265_v15 = vld [vmem:[#allocation10 + $0x748] sm:$0xff] }
 0x18c   : > { %4257 = vmatpush1.bf16.msra.mxu0 %v4256_v4  ;;  %v1152_v4 = vld [vmem:[#allocation10 + $0x3c0] sm:$0xff]  ;;  %4511 = vmatprep.subr.bf16.mxu1 %v4510_v60  ;;  %v1155_v60 = vld [vmem:[#allocation10 + $0x3d8] sm:$0xff] }
 0x18d   : > { %4259 = vmatprep.subr.bf16.mxu0 %v4258_v5  ;;  %v4512_v5 = vpack.c.bf16 %v1058_v62, %v1050_v61  ;;  %v4280_v13 = vpack.c.bf16 %v1152_v4, %v1144_v3  ;;  %v4296_v61 = vpack.c.bf16 %v1216_v52, %v1208_v51  ;;  %v1249_v3 = vld [vmem:[#allocation10 + $0x6c8] sm:$0xff]  ;;  %v4534_v4 = vpack.c.bf16 %v1155_v60, %v1147_v59  ;;  %v1227_v51 = vld [vmem:[#allocation10 + $0x618] sm:$0xff] }
 0x18e   : > { %v1235_v52 = vld [vmem:[#allocation10 + $0x658] sm:$0xff] }
 0x18f   : > { %4513 = vmatpush1.bf16.msra.mxu1 %v4512_v5  ;;  %v1146_v5 = vld [vmem:[#allocation10 + $0x390] sm:$0xff] }
 0x190   : > { %4261 = vmatpush1.bf16.msra.mxu0 %v4260_v16  ;;  %v4516_v16 = vpack.c.bf16 %v1074_v10, %v1066_v9  ;;  %4515 = vmatprep.subr.bf16.mxu1 %v4514_v8  ;;  %v1171_v8 = vld [vmem:[#allocation10 + $0x458] sm:$0xff]  ;;  %v4300_v9 = vpack.c.bf16 %v1232_v0, %v1224_v63 }
 0x191   : > { %4263 = vmatprep.subr.bf16.mxu0 %v4262_v17  ;;  %v1177_v17 = vld [vmem:[#allocation10 + $0x488] sm:$0xff]  ;;  %v4538_v49 = vpack.c.bf16 %v1171_v8, %v1163_v7  ;;  %v1259_v63 = vld [vmem:[#allocation10 + $0x718] sm:$0xff] }
 0x192   : > { %v4286_v24 = vpack.c.bf16 %v1185_v18, %v1177_v17  ;;  %v1170_v17 = vld [vmem:[#allocation10 + $0x450] sm:$0xff]  ;;  %v1179_v18 = vld [vmem:[#allocation10 + $0x498] sm:$0xff] }
 0x193   : > { %4517 = vmatpush1.bf16.msra.mxu1 %v4516_v16  ;;  %v1162_v16 = vld [vmem:[#allocation10 + $0x410] sm:$0xff]  ;;  %v1267_v0 = vld [vmem:[#allocation10 + $0x758] sm:$0xff] }
 0x194   : > { %4265 = vmatpush1.bf16.msra.mxu0 %v4264_v27  ;;  %v4520_v27 = vpack.c.bf16 %v1090_v20, %v1082_v19  ;;  %4519 = vmatprep.subr.bf16.mxu1 %v4518_v42  ;;  %v1187_v42 = vld [vmem:[#allocation10 + $0x4d8] sm:$0xff]  ;;  %v4304_v19 = vpack.c.bf16 %v1248_v12, %v1240_v11 }
 0x195   : > { %4267 = vmatprep.subr.bf16.mxu0 %v4266_v28  ;;  %v1193_v28 = vld [vmem:[#allocation10 + $0x508] sm:$0xff]  ;;  %v4542_v26 = vpack.c.bf16 %v1187_v42, %v1179_v18  ;;  %v1291_v11 = vld [vmem:[#allocation10 + $0x818] sm:$0xff] }
 0x196   : > { %v4290_v36 = vpack.c.bf16 %v1201_v29, %v1193_v28  ;;  %v1186_v28 = vld [vmem:[#allocation10 + $0x4d0] sm:$0xff]  ;;  %v1195_v29 = vld [vmem:[#allocation10 + $0x518] sm:$0xff] }
 0x197   : > { %4521 = vmatpush1.bf16.msra.mxu1 %v4520_v27  ;;  %v1178_v27 = vld [vmem:[#allocation10 + $0x490] sm:$0xff]  ;;  %v1299_v12 = vld [vmem:[#allocation10 + $0x858] sm:$0xff] }
 0x198   : > { %4269 = vmatpush1.bf16.msra.mxu0 %v4268_v39  ;;  %v4524_v39 = vpack.c.bf16 %v1106_v32, %v1098_v31  ;;  %4523 = vmatprep.subr.bf16.mxu1 %v4522_v30  ;;  %v1203_v30 = vld [vmem:[#allocation10 + $0x558] sm:$0xff]  ;;  %v4308_v31 = vpack.c.bf16 %v1264_v22, %v1256_v21  ;;  %v1288_v21 = vld [vmem:[#allocation10 + $0x800] sm:$0xff] }
 0x199   : > { %4271 = vmatprep.subr.bf16.mxu0 %v4270_v40  ;;  %v1209_v40 = vld [vmem:[#allocation10 + $0x588] sm:$0xff]  ;;  %v4546_v38 = vpack.c.bf16 %v1203_v30, %v1195_v29  ;;  %v1296_v22 = vld [vmem:[#allocation10 + $0x840] sm:$0xff]  ;;  %v1307_v30 = vld [vmem:[#allocation10 + $0x898] sm:$0xff] }
 0x19a   : > { %v4294_v50 = vpack.c.bf16 %v1217_v41, %v1209_v40  ;;  %v1202_v40 = vld [vmem:[#allocation10 + $0x550] sm:$0xff]  ;;  %v1211_v41 = vld [vmem:[#allocation10 + $0x598] sm:$0xff]  ;;  %v1313_v29 = vld [vmem:[#allocation10 + $0x8c8] sm:$0xff] }
 0x19b   : > { %4525 = vmatpush1.bf16.msra.mxu1 %v4524_v39  ;;  %v1194_v39 = vld [vmem:[#allocation10 + $0x510] sm:$0xff] }
 0x19c   : > { %4273 = vmatpush1.bf16.msra.mxu0 %v4272_v53  ;;  %v4528_v53 = vpack.c.bf16 %v1122_v45, %v1114_v44  ;;  %4527 = vmatprep.subr.bf16.mxu1 %v4526_v43  ;;  %v1219_v43 = vld [vmem:[#allocation10 + $0x5d8] sm:$0xff]  ;;  %v4312_v44 = vpack.c.bf16 %v1280_v34, %v1272_v33  ;;  %v4548_v46 = vpack.c.bf16 %v1202_v40, %v1194_v39  ;;  %v1306_v40 = vld [vmem:[#allocation10 + $0x890] sm:$0xff] }
 0x19d   : > { %4275 = vmatprep.subr.bf16.mxu0 %v4274_v54  ;;  %v1225_v54 = vld [vmem:[#allocation10 + $0x608] sm:$0xff]  ;;  %v4550_v47 = vpack.c.bf16 %v1219_v43, %v1211_v41  ;;  %v4316_v33 = vpack.c.bf16 %v1296_v22, %v1288_v21  ;;  %v1314_v41 = vld [vmem:[#allocation10 + $0x8d0] sm:$0xff]  ;;  %v1371_v21 = vld [vmem:[#allocation10 + $0xa98] sm:$0xff] }
 0x19e   : > { %v4298_v62 = vpack.c.bf16 %v1233_v55, %v1225_v54  ;;  %v4554_v54 = vpack.c.bf16 %v1235_v52, %v1227_v51  ;;  %v1226_v55 = vld [vmem:[#allocation10 + $0x610] sm:$0xff]  ;;  %v1321_v43 = vld [vmem:[#allocation10 + $0x908] sm:$0xff]  ;;  %v1328_v51 = vld [vmem:[#allocation10 + $0x940] sm:$0xff] }
 0x19f   : > { %4529 = vmatpush1.bf16.msra.mxu1 %v4528_v53  ;;  %v1379_v22 = vld [vmem:[#allocation10 + $0xad8] sm:$0xff] }
 0x1a0   : > { %4277 = vmatpush1.bf16.msra.mxu0 %v4276_v1  ;;  %v4532_v1 = vpack.c.bf16 %v1138_v58, %v1130_v57  ;;  %4531 = vmatprep.subr.bf16.mxu1 %v4530_v56  ;;  %v1234_v56 = vld [vmem:[#allocation10 + $0x650] sm:$0xff]  ;;  %v1243_v57 = vld [vmem:[#allocation10 + $0x698] sm:$0xff] }
 0x1a1   : > { %4279 = vmatprep.subr.bf16.mxu0 %v4278_v2  ;;  %v1241_v2 = vld [vmem:[#allocation10 + $0x688] sm:$0xff]  ;;  %v1251_v58 = vld [vmem:[#allocation10 + $0x6d8] sm:$0xff]  ;;  %v4556_v59 = vpack.c.bf16 %v1234_v56, %v1226_v55  ;;  %v1330_v55 = vld [vmem:[#allocation10 + $0x950] sm:$0xff] }
 0x1a2   : > { %v4302_v10 = vpack.c.bf16 %v1249_v3, %v1241_v2  ;;  %v4558_v60 = vpack.c.bf16 %v1251_v58, %v1243_v57  ;;  %v4562_v2 = vpack.c.bf16 %v1267_v0, %v1259_v63  ;;  %v1258_v3 = vld [vmem:[#allocation10 + $0x710] sm:$0xff]  ;;  %v1337_v56 = vld [vmem:[#allocation10 + $0x988] sm:$0xff]  ;;  %v1339_v58 = vld [vmem:[#allocation10 + $0x998] sm:$0xff] }
 0x1a3   : > { %4533 = vmatpush1.bf16.msra.mxu1 %v4532_v1  ;;  %v1345_v57 = vld [vmem:[#allocation10 + $0x9c8] sm:$0xff]  ;;  %v1344_v63 = vld [vmem:[#allocation10 + $0x9c0] sm:$0xff] }
 0x1a4   : > { %4281 = vmatpush1.bf16.msra.mxu0 %v4280_v13  ;;  %v4536_v13 = vpack.c.bf16 %v1154_v6, %v1146_v5  ;;  %4535 = vmatprep.subr.bf16.mxu1 %v4534_v4  ;;  %v1266_v4 = vld [vmem:[#allocation10 + $0x750] sm:$0xff]  ;;  %v1275_v5 = vld [vmem:[#allocation10 + $0x798] sm:$0xff]  ;;  %v4326_v0 = vpack.c.bf16 %v1345_v57, %v1337_v56 }
 0x1a5   : > { %4283 = vmatprep.subr.bf16.mxu0 %v4282_v14  ;;  %v1257_v14 = vld [vmem:[#allocation10 + $0x708] sm:$0xff]  ;;  %v1283_v6 = vld [vmem:[#allocation10 + $0x7d8] sm:$0xff]  ;;  %v4564_v7 = vpack.c.bf16 %v1266_v4, %v1258_v3  ;;  %v1346_v3 = vld [vmem:[#allocation10 + $0x9d0] sm:$0xff] }
 0x1a6   : > { %v4306_v20 = vpack.c.bf16 %v1265_v15, %v1257_v14  ;;  %v4566_v8 = vpack.c.bf16 %v1283_v6, %v1275_v5  ;;  %v4570_v14 = vpack.c.bf16 %v1299_v12, %v1291_v11  ;;  %v700_v15 = vlaneseq  ;;  %v1353_v4 = vld [vmem:[#allocation10 + $0xa08] sm:$0xff]  ;;  %v1355_v6 = vld [vmem:[#allocation10 + $0xa18] sm:$0xff]  ;;  %v1360_v11 = vld [vmem:[#allocation10 + $0xa40] sm:$0xff] }
 0x1a7   : > { %4537 = vmatpush1.bf16.msra.mxu1 %v4536_v13  ;;  %v1361_v5 = vld [vmem:[#allocation10 + $0xa48] sm:$0xff] }
 0x1a8   : > { %4285 = vmatpush1.bf16.msra.mxu0 %v4284_v23  ;;  %v4540_v23 = vpack.c.bf16 %v1170_v17, %v1162_v16  ;;  %4539 = vmatprep.subr.bf16.mxu1 %v4538_v49  ;;  %v6267_v49 = vshrl.u32 %v700_v15, 7  ;;  %v6270_v17 = vld [vmem:[#allocation8] sm:$0xff]  ;;  %v1354_v15 = vld [vmem:[#allocation10 + $0xa10] sm:$0xff] }
 0x1a9   : > { %4287 = vmatprep.subr.bf16.mxu0 %v4286_v24  ;;  %v1273_v24 = vld [vmem:[#allocation10 + $0x788] sm:$0xff] }
 0x1aa   : > { %v4310_v32 = vpack.c.bf16 %v1281_v25, %v1273_v24  ;;  %v702_v16 = vsub.s32 0, %v6267_v49  ;;  %v706_v18 = vsub.s32 1, %v6267_v49  ;;  %v1290_v25 = vld [vmem:[#allocation10 + $0x810] sm:$0xff]  ;;  %v714_v12 = vsub.s32 3, %v6267_v49 }
 0x1ab   : > { %4541 = vmatpush1.bf16.msra.mxu1 %v4540_v23 }
 0x1ac   : > { %4289 = vmatpush1.bf16.msra.mxu0 %v4288_v35  ;;  %v4544_v35 = vpack.c.bf16 %v1186_v28, %v1178_v27  ;;  %4543 = vmatprep.subr.bf16.mxu1 %v4542_v26  ;;  %v703_v42 = vrot.slane %v6270_v17, %v702_v16  ;;  %v1298_v26 = vld [vmem:[#allocation10 + $0x850] sm:$0xff]  ;;  %v1305_v27 = vld [vmem:[#allocation10 + $0x888] sm:$0xff] }
 0x1ad   : > { %4291 = vmatprep.subr.bf16.mxu0 %v4290_v36  ;;  %v1289_v36 = vld [vmem:[#allocation10 + $0x808] sm:$0xff]  ;;  %v4572_v34 = vpack.c.bf16 %v1298_v26, %v1290_v25  ;;  %v1368_v25 = vld [vmem:[#allocation10 + $0xa80] sm:$0xff] }
 0x1ae   : > { %v4314_v45 = vpack.c.bf16 %v1297_v37, %v1289_v36  ;;  %v1312_v36 = vld [vmem:[#allocation10 + $0x8c0] sm:$0xff] }
 0x1af   : > { %4545 = vmatpush1.bf16.msra.mxu1 %v4544_v35  ;;  %v1304_v35 = vld [vmem:[#allocation10 + $0x880] sm:$0xff] }
 0x1b0   : > { %4293 = vmatpush1.bf16.msra.mxu0 %v4292_v48  ;;  %4547 = vmatprep.subr.bf16.mxu1 %v4546_v38  ;;  %v1210_v48 = vld [vmem:[#allocation10 + $0x590] sm:$0xff]  ;;  %v4318_v38 = vpack.c.bf16 %v1313_v29, %v1305_v27  ;;  %v1376_v26 = vld [vmem:[#allocation10 + $0xac0] sm:$0xff]  ;;  %v715_v27 = vrot.slane %v6270_v17, %v714_v12  ;;  %v4590_v29 = vpack.c.bf16 %v1379_v22, %v1371_v21 }
 0x1b1   : > { %4295 = vmatprep.subr.bf16.mxu0 %v4294_v50  ;;  %v1218_v50 = vld [vmem:[#allocation10 + $0x5d0] sm:$0xff]  ;;  %v1432_v21 = vld [vmem:[#allocation10 + $0xc80] sm:$0xff] }
 0x1b2   : > { %v4552_v53 = vpack.c.bf16 %v1218_v50, %v1210_v48  ;;  %v4576_v48 = vpack.c.bf16 %v1314_v41, %v1306_v40  ;;  %v1320_v50 = vld [vmem:[#allocation10 + $0x900] sm:$0xff]  ;;  %v4336_v40 = vpack.c.bf16 %v1376_v26, %v1368_v25  ;;  %v1434_v25 = vld [vmem:[#allocation10 + $0xc90] sm:$0xff] }
 0x1b3   : > { %4549 = vmatpush1.bf16.msra.mxu1 %v4548_v46  ;;  %v1331_v46 = vld [vmem:[#allocation10 + $0x958] sm:$0xff]  ;;  %v1440_v22 = vld [vmem:[#allocation10 + $0xcc0] sm:$0xff]  ;;  %v1442_v26 = vld [vmem:[#allocation10 + $0xcd0] sm:$0xff] }
 0x1b4   : > { %4297 = vmatpush1.bf16.msra.mxu0 %v4296_v61  ;;  %4551 = vmatprep.subr.bf16.mxu1 %v4550_v47  ;;  %v1242_v61 = vld [vmem:[#allocation10 + $0x690] sm:$0xff]  ;;  %v4320_v47 = vpack.c.bf16 %v1312_v36, %v1304_v35  ;;  %v1387_v35 = vld [vmem:[#allocation10 + $0xb18] sm:$0xff] }
 0x1b5   : > { %4299 = vmatprep.subr.bf16.mxu0 %v4298_v62  ;;  %v1250_v62 = vld [vmem:[#allocation10 + $0x6d0] sm:$0xff]  ;;  %v1395_v36 = vld [vmem:[#allocation10 + $0xb58] sm:$0xff] }
 0x1b6   : > { %v4560_v1 = vpack.c.bf16 %v1250_v62, %v1242_v61  ;;  %v1336_v62 = vld [vmem:[#allocation10 + $0x980] sm:$0xff] }
 0x1b7   : > { %4553 = vmatpush1.bf16.msra.mxu1 %v4552_v53 }
 0x1b8   : > { %4301 = vmatpush1.bf16.msra.mxu0 %v4300_v9  ;;  %4555 = vmatprep.subr.bf16.mxu1 %v4554_v54  ;;  %v1274_v9 = vld [vmem:[#allocation10 + $0x790] sm:$0xff] }
 0x1b9   : > { %4303 = vmatprep.subr.bf16.mxu0 %v4302_v10  ;;  %v1282_v10 = vld [vmem:[#allocation10 + $0x7d0] sm:$0xff] }
 0x1ba   : > { %v4568_v13 = vpack.c.bf16 %v1282_v10, %v1274_v9  ;;  %v1322_v54 = vld [vmem:[#allocation10 + $0x910] sm:$0xff]  ;;  %v1352_v10 = vld [vmem:[#allocation10 + $0xa00] sm:$0xff] }
 0x1bb   : > { %4557 = vmatpush1.bf16.msra.mxu1 %v4556_v59  ;;  %v1347_v59 = vld [vmem:[#allocation10 + $0x9d8] sm:$0xff]  ;;  %v4580_v61 = vpack.c.bf16 %v1330_v55, %v1322_v54 }
 0x1bc   : > { %4305 = vmatpush1.bf16.msra.mxu0 %v4304_v19  ;;  %4559 = vmatprep.subr.bf16.mxu1 %v4558_v60  ;;  %v707_v19 = vrot.slane %v6270_v17, %v706_v18  ;;  %v4324_v60 = vpack.c.bf16 %v1328_v51, %v1320_v50  ;;  %v1394_v50 = vld [vmem:[#allocation10 + $0xb50] sm:$0xff]  ;;  %v1401_v51 = vld [vmem:[#allocation10 + $0xb88] sm:$0xff]  ;;  %v1411_v54 = vld [vmem:[#allocation10 + $0xbd8] sm:$0xff] }
 0x1bd   : > { %4307 = vmatprep.subr.bf16.mxu0 %v4306_v20 }
 0x1bf   : > { %4561 = vmatpush1.bf16.msra.mxu1 %v4560_v1  ;;  %v4582_v1 = vpack.c.bf16 %v1347_v59, %v1339_v58  ;;  %v1400_v58 = vld [vmem:[#allocation10 + $0xb80] sm:$0xff] }
 0x1c0   : > { %4309 = vmatpush1.bf16.msra.mxu0 %v4308_v31  ;;  %4563 = vmatprep.subr.bf16.mxu1 %v4562_v2  ;;  %v1315_v31 = vld [vmem:[#allocation10 + $0x8d8] sm:$0xff]  ;;  %v1338_v2 = vld [vmem:[#allocation10 + $0x990] sm:$0xff]  ;;  %v1408_v59 = vld [vmem:[#allocation10 + $0xbc0] sm:$0xff] }
 0x1c1   : > { %4311 = vmatprep.subr.bf16.mxu0 %v4310_v32  ;;  %v4574_v39 = vpack.c.bf16 %v1315_v31, %v1307_v30  ;;  %v4584_v9 = vpack.c.bf16 %v1346_v3, %v1338_v2  ;;  %v1370_v30 = vld [vmem:[#allocation10 + $0xa90] sm:$0xff]  ;;  %v1419_v2 = vld [vmem:[#allocation10 + $0xc18] sm:$0xff] }
 0x1c2   : > { %v1378_v31 = vld [vmem:[#allocation10 + $0xad0] sm:$0xff]  ;;  %v1427_v3 = vld [vmem:[#allocation10 + $0xc58] sm:$0xff] }
 0x1c3   : > { %4565 = vmatpush1.bf16.msra.mxu1 %v4564_v7  ;;  %v1363_v7 = vld [vmem:[#allocation10 + $0xa58] sm:$0xff]  ;;  %v4592_v41 = vpack.c.bf16 %v1378_v31, %v1370_v30  ;;  %v4352_v31 = vpack.c.bf16 %v1440_v22, %v1432_v21  ;;  %v1521_v21 = vld [vmem:[#allocation10 + $0xf48] sm:$0xff] }
 0x1c4   : > { %4313 = vmatpush1.bf16.msra.mxu0 %v4312_v44  ;;  %4567 = vmatprep.subr.bf16.mxu1 %v4566_v8  ;;  %v1329_v44 = vld [vmem:[#allocation10 + $0x948] sm:$0xff]  ;;  %v4328_v8 = vpack.c.bf16 %v1344_v63, %v1336_v62  ;;  %v1402_v62 = vld [vmem:[#allocation10 + $0xb90] sm:$0xff]  ;;  %v1459_v30 = vld [vmem:[#allocation10 + $0xd58] sm:$0xff] }
 0x1c5   : > { %4315 = vmatprep.subr.bf16.mxu0 %v4314_v45  ;;  %v1323_v45 = vld [vmem:[#allocation10 + $0x918] sm:$0xff]  ;;  %v4322_v52 = vpack.c.bf16 %v1329_v44, %v1321_v43  ;;  %v1384_v43 = vld [vmem:[#allocation10 + $0xb00] sm:$0xff]  ;;  %v1410_v63 = vld [vmem:[#allocation10 + $0xbd0] sm:$0xff] }
 0x1c6   : > { %v4578_v53 = vpack.c.bf16 %v1331_v46, %v1323_v45  ;;  %v1392_v44 = vld [vmem:[#allocation10 + $0xb40] sm:$0xff]  ;;  %v1515_v22 = vld [vmem:[#allocation10 + $0xf18] sm:$0xff] }
 0x1c7   : > { %4569 = vmatpush1.bf16.msra.mxu1 %v4568_v13  ;;  %v4330_v13 = vpack.c.bf16 %v1361_v5, %v1353_v4  ;;  %v4340_v56 = vpack.c.bf16 %v1392_v44, %v1384_v43  ;;  %v4344_v4 = vpack.c.bf16 %v1408_v59, %v1400_v58  ;;  %v4600_v5 = vpack.c.bf16 %v1410_v63, %v1402_v62  ;;  %v1465_v43 = vld [vmem:[#allocation10 + $0xd88] sm:$0xff]  ;;  %v1483_v59 = vld [vmem:[#allocation10 + $0xe18] sm:$0xff]  ;;  %v1480_v63 = vld [vmem:[#allocation10 + $0xe00] sm:$0xff] }
 0x1c8   : > { %4571 = vmatprep.subr.bf16.mxu1 %v4570_v14  ;;  %v4586_v14 = vpack.c.bf16 %v1363_v7, %v1355_v6  ;;  %v1416_v6 = vld [vmem:[#allocation10 + $0xc00] sm:$0xff]  ;;  %v1473_v44 = vld [vmem:[#allocation10 + $0xdc8] sm:$0xff] }
 0x1c9   : > { %v1424_v7 = vld [vmem:[#allocation10 + $0xc40] sm:$0xff]  ;;  %v1489_v58 = vld [vmem:[#allocation10 + $0xe48] sm:$0xff] }
 0x21a   : > { %v806_v20 = vpop.f32.mrb[0].mxu0 }
 0x21b   : > { %v807_v23 = vadd.f32 %v806_v20, %v703_v42  ;;  %v808_v24 = vpop.f32.mrb[1].mxu0  ;;  %v1362_v42 = vld [vmem:[#allocation10 + $0xa50] sm:$0xff]  ;;  %v1377_v20 = vld [vmem:[#allocation10 + $0xac8] sm:$0xff] }
 0x21c   : > { %v809_v28 = vadd.f32 %v808_v24, %v707_v19  ;;  %v1369_v19 = vld [vmem:[#allocation10 + $0xa88] sm:$0xff]  ;;  %v4588_v24 = vpack.c.bf16 %v1362_v42, %v1354_v15  ;;  %v1435_v15 = vld [vmem:[#allocation10 + $0xc98] sm:$0xff] }
 0x21d   : > { %v6281_v37 = vmax.f32 %v807_v23, 0.0  ;;  %v4332_v23 = vpack.c.bf16 %v1360_v11, %v1352_v10  ;;  %v1418_v10 = vld [vmem:[#allocation10 + $0xc10] sm:$0xff]  ;;  %v1443_v42 = vld [vmem:[#allocation10 + $0xcd8] sm:$0xff] }
 0x21e   : > { %v6279_v32 = vmax.f32 %v809_v28, 0.0  ;;  %v4334_v28 = vpack.c.bf16 %v1377_v20, %v1369_v19  ;;  %v1426_v11 = vld [vmem:[#allocation10 + $0xc50] sm:$0xff]  ;;  %v4348_v19 = vpack.c.bf16 %v1424_v7, %v1416_v6  ;;  %v1505_v6 = vld [vmem:[#allocation10 + $0xec8] sm:$0xff]  ;;  %v1499_v7 = vld [vmem:[#allocation10 + $0xe98] sm:$0xff] }
 0x21f   : > { %v4604_v20 = vpack.c.bf16 %v1426_v11, %v1418_v10  ;;  %v1496_v11 = vld [vmem:[#allocation10 + $0xe80] sm:$0xff] }
 0x220   : > { %2162 = vmatprep.mubr.f32.mxu0 %v6279_v32  ;;  %2446 = vmatprep.mubr.f32.mxu1 %v6279_v32 }
 0x221   : > { %2163 = vmatmul.mubr.f32.vlgmr.msra.gmra.mrb[4].mxu0 %v6281_v37  ;;  %2447 = vmatmul.mubr.f32.vlgmr.msra.gmra.mrb[4].mxu1 %v6281_v37 }
 0x222   : > { %4317 = vmatpush1.bf16.msra.mxu0 %v4316_v33  ;;  %4573 = vmatpush1.bf16.msra.mxu1 %v4572_v34  ;;  %v1385_v33 = vld [vmem:[#allocation10 + $0xb08] sm:$0xff] }
 0x223   : > { %4319 = vmatprep.subr.bf16.mxu0 %v4318_v38  ;;  %4575 = vmatprep.subr.bf16.mxu1 %v4574_v39  ;;  %v1393_v34 = vld [vmem:[#allocation10 + $0xb48] sm:$0xff]  ;;  %v6291_v38 = vpop.f32.mrb[0].mxu1 }
 0x224   : > { %v879_v39 = vpop.f32.mrb[1].mxu1  ;;  %v4338_v46 = vpack.c.bf16 %v1393_v34, %v1385_v33  ;;  %v4608_v33 = vpack.c.bf16 %v1442_v26, %v1434_v25  ;;  %v1448_v34 = vld [vmem:[#allocation10 + $0xd00] sm:$0xff] }
 0x225   : > { %v880_v45 = vadd.f32 %v879_v39, %v715_v27  ;;  %v1449_v27 = vld [vmem:[#allocation10 + $0xd08] sm:$0xff] }
 0x226   : > { %4321 = vmatpush1.bf16.msra.mxu0 %v4320_v47  ;;  %4577 = vmatpush1.bf16.msra.mxu1 %v4576_v48  ;;  %v4594_v47 = vpack.c.bf16 %v1395_v36, %v1387_v35  ;;  %v1386_v48 = vld [vmem:[#allocation10 + $0xb10] sm:$0xff]  ;;  %v1456_v35 = vld [vmem:[#allocation10 + $0xd40] sm:$0xff] }
 0x227   : > { %4323 = vmatprep.subr.bf16.mxu0 %v4322_v52  ;;  %4579 = vmatprep.subr.bf16.mxu1 %v4578_v53  ;;  %v1409_v52 = vld [vmem:[#allocation10 + $0xbc8] sm:$0xff]  ;;  %v1403_v53 = vld [vmem:[#allocation10 + $0xb98] sm:$0xff]  ;;  %v6293_v55 = vmax.f32 %v880_v45, 0.0  ;;  %v4596_v57 = vpack.c.bf16 %v1394_v50, %v1386_v48  ;;  %v1464_v50 = vld [vmem:[#allocation10 + $0xd80] sm:$0xff] }
 0x228   : > { %v1467_v45 = vld [vmem:[#allocation10 + $0xd98] sm:$0xff] }
 0x229   : > { %2233 = vmatprep.mubr.f32.mxu0 %v6293_v55  ;;  %2517 = vmatprep.mubr.f32.mxu1 %v6293_v55 }
 0x22a   : > { %4325 = vmatpush1.bf16.msra.mxu0 %v4324_v60  ;;  %4581 = vmatpush1.bf16.msra.mxu1 %v4580_v61  ;;  %v4342_v60 = vpack.c.bf16 %v1409_v52, %v1401_v51  ;;  %v4598_v61 = vpack.c.bf16 %v1411_v54, %v1403_v53  ;;  %v1472_v51 = vld [vmem:[#allocation10 + $0xdc0] sm:$0xff]  ;;  %v4358_v52 = vpack.c.bf16 %v1473_v44, %v1465_v43  ;;  %v1466_v54 = vld [vmem:[#allocation10 + $0xd90] sm:$0xff] }
 0x22b   : > { %4327 = vmatprep.subr.bf16.mxu0 %v4326_v0  ;;  %4583 = vmatprep.subr.bf16.mxu1 %v4582_v1  ;;  %v1417_v0 = vld [vmem:[#allocation10 + $0xc08] sm:$0xff] }
 0x22c   : > { %v1425_v1 = vld [vmem:[#allocation10 + $0xc48] sm:$0xff] }
 0x22e   : > { %4329 = vmatpush1.bf16.msra.mxu0 %v4328_v8  ;;  %4585 = vmatpush1.bf16.msra.mxu1 %v4584_v9  ;;  %v4346_v8 = vpack.c.bf16 %v1425_v1, %v1417_v0  ;;  %v4602_v9 = vpack.c.bf16 %v1427_v3, %v1419_v2  ;;  %v1488_v0 = vld [vmem:[#allocation10 + $0xe40] sm:$0xff]  ;;  %v1482_v3 = vld [vmem:[#allocation10 + $0xe10] sm:$0xff] }
 0x22f   : > { %4331 = vmatprep.subr.bf16.mxu0 %v4330_v13  ;;  %4587 = vmatprep.subr.bf16.mxu1 %v4586_v14  ;;  %v1433_v13 = vld [vmem:[#allocation10 + $0xc88] sm:$0xff] }
 0x230   : > { %v1441_v14 = vld [vmem:[#allocation10 + $0xcc8] sm:$0xff] }
 0x232   : > { %4333 = vmatpush1.bf16.msra.mxu0 %v4332_v23  ;;  %4589 = vmatpush1.bf16.msra.mxu1 %v4588_v24  ;;  %v4350_v23 = vpack.c.bf16 %v1441_v14, %v1433_v13  ;;  %v4606_v24 = vpack.c.bf16 %v1443_v42, %v1435_v15  ;;  %v1504_v13 = vld [vmem:[#allocation10 + $0xec0] sm:$0xff]  ;;  %v1498_v42 = vld [vmem:[#allocation10 + $0xe90] sm:$0xff] }
 0x233   : > { %4335 = vmatprep.subr.bf16.mxu0 %v4334_v28  ;;  %4591 = vmatprep.subr.bf16.mxu1 %v4590_v29  ;;  %v1457_v28 = vld [vmem:[#allocation10 + $0xd48] sm:$0xff]  ;;  %v1451_v29 = vld [vmem:[#allocation10 + $0xd18] sm:$0xff]  ;;  %v4368_v25 = vpack.c.bf16 %v1504_v13, %v1496_v11  ;;  %v1560_v11 = vld [vmem:[#allocation10 + $0x1080] sm:$0xff] }
 0x234   : > { %v4354_v36 = vpack.c.bf16 %v1457_v28, %v1449_v27  ;;  %v4610_v39 = vpack.c.bf16 %v1459_v30, %v1451_v29  ;;  %v1512_v27 = vld [vmem:[#allocation10 + $0xf00] sm:$0xff] }
 0x235   : > { %v1520_v28 = vld [vmem:[#allocation10 + $0xf40] sm:$0xff] }
 0x236   : > { %4337 = vmatpush1.bf16.msra.mxu0 %v4336_v40  ;;  %4593 = vmatpush1.bf16.msra.mxu1 %v4592_v41  ;;  %v1450_v40 = vld [vmem:[#allocation10 + $0xd10] sm:$0xff]  ;;  %v4372_v43 = vpack.c.bf16 %v1520_v28, %v1512_v27  ;;  %v1568_v13 = vld [vmem:[#allocation10 + $0x10c0] sm:$0xff] }
 0x237   : > { %4339 = vmatprep.subr.bf16.mxu0 %v4338_v46  ;;  %4595 = vmatprep.subr.bf16.mxu1 %v4594_v47  ;;  %v1458_v41 = vld [vmem:[#allocation10 + $0xd50] sm:$0xff]  ;;  %v1475_v46 = vld [vmem:[#allocation10 + $0xdd8] sm:$0xff]  ;;  %v4356_v47 = vpack.c.bf16 %v1456_v35, %v1448_v34  ;;  %v1529_v34 = vld [vmem:[#allocation10 + $0xf88] sm:$0xff] }
 0x238   : > { %v4612_v48 = vpack.c.bf16 %v1458_v41, %v1450_v40  ;;  %v4614_v53 = vpack.c.bf16 %v1475_v46, %v1467_v45  ;;  %v1537_v35 = vld [vmem:[#allocation10 + $0xfc8] sm:$0xff]  ;;  %v722_v40 = vsub.s32 5, %v6267_v49  ;;  %v1528_v45 = vld [vmem:[#allocation10 + $0xf80] sm:$0xff] }
 0x239   : > { %v1536_v46 = vld [vmem:[#allocation10 + $0xfc0] sm:$0xff] }
 0x23a   : > { %4341 = vmatpush1.bf16.msra.mxu0 %v4340_v56  ;;  %4597 = vmatpush1.bf16.msra.mxu1 %v4596_v57  ;;  %v1474_v56 = vld [vmem:[#allocation10 + $0xdd0] sm:$0xff]  ;;  %v1481_v57 = vld [vmem:[#allocation10 + $0xe08] sm:$0xff]  ;;  %v1576_v28 = vld [vmem:[#allocation10 + $0x1100] sm:$0xff] }
 0x23b   : > { %4343 = vmatprep.subr.bf16.mxu0 %v4342_v60  ;;  %4599 = vmatprep.subr.bf16.mxu1 %v4598_v61  ;;  %v1491_v60 = vld [vmem:[#allocation10 + $0xe58] sm:$0xff]  ;;  %v4360_v61 = vpack.c.bf16 %v1472_v51, %v1464_v50  ;;  %v4616_v62 = vpack.c.bf16 %v1474_v56, %v1466_v54  ;;  %v4362_v1 = vpack.c.bf16 %v1489_v58, %v1481_v57  ;;  %v1530_v50 = vld [vmem:[#allocation10 + $0xf90] sm:$0xff] }
 0x23c   : > { %v4618_v2 = vpack.c.bf16 %v1491_v60, %v1483_v59  ;;  %v1538_v51 = vld [vmem:[#allocation10 + $0xfd0] sm:$0xff]  ;;  %v1547_v54 = vld [vmem:[#allocation10 + $0x1018] sm:$0xff]  ;;  %v723_v57 = vrot.slane %v6270_v17, %v722_v40  ;;  %v4376_v59 = vpack.c.bf16 %v1536_v46, %v1528_v45  ;;  %v1592_v45 = vld [vmem:[#allocation10 + $0x1180] sm:$0xff] }
 0x23d   : > { %v1555_v56 = vld [vmem:[#allocation10 + $0x1058] sm:$0xff]  ;;  %v4632_v60 = vpack.c.bf16 %v1538_v51, %v1530_v50  ;;  %v1600_v46 = vld [vmem:[#allocation10 + $0x11c0] sm:$0xff]  ;;  %v1594_v50 = vld [vmem:[#allocation10 + $0x1190] sm:$0xff] }
 0x23e   : > { %4345 = vmatpush1.bf16.msra.mxu0 %v4344_v4  ;;  %4601 = vmatpush1.bf16.msra.mxu1 %v4600_v5  ;;  %v1490_v4 = vld [vmem:[#allocation10 + $0xe50] sm:$0xff]  ;;  %v1497_v5 = vld [vmem:[#allocation10 + $0xe88] sm:$0xff] }
 0x23f   : > { %4347 = vmatprep.subr.bf16.mxu0 %v4346_v8  ;;  %4603 = vmatprep.subr.bf16.mxu1 %v4602_v9  ;;  %v1507_v8 = vld [vmem:[#allocation10 + $0xed8] sm:$0xff]  ;;  %v4364_v9 = vpack.c.bf16 %v1488_v0, %v1480_v63  ;;  %v4620_v10 = vpack.c.bf16 %v1490_v4, %v1482_v3  ;;  %v4366_v14 = vpack.c.bf16 %v1505_v6, %v1497_v5  ;;  %v1554_v3 = vld [vmem:[#allocation10 + $0x1050] sm:$0xff]  ;;  %v1561_v4 = vld [vmem:[#allocation10 + $0x1088] sm:$0xff] }
 0x240   : > { %v4622_v15 = vpack.c.bf16 %v1507_v8, %v1499_v7  ;;  %v1569_v6 = vld [vmem:[#allocation10 + $0x10c8] sm:$0xff]  ;;  %v1571_v7 = vld [vmem:[#allocation10 + $0x10d8] sm:$0xff]  ;;  %v1602_v51 = vld [vmem:[#allocation10 + $0x11d0] sm:$0xff] }
 0x242   : > { %4349 = vmatpush1.bf16.msra.mxu0 %v4348_v19  ;;  %4605 = vmatpush1.bf16.msra.mxu1 %v4604_v20  ;;  %v1506_v19 = vld [vmem:[#allocation10 + $0xed0] sm:$0xff]  ;;  %v1513_v20 = vld [vmem:[#allocation10 + $0xf08] sm:$0xff] }
 0x243   : > { %4351 = vmatprep.subr.bf16.mxu0 %v4350_v23  ;;  %4607 = vmatprep.subr.bf16.mxu1 %v4606_v24  ;;  %v1523_v23 = vld [vmem:[#allocation10 + $0xf58] sm:$0xff]  ;;  %v710_v24 = vsub.s32 2, %v6267_v49  ;;  %v4624_v26 = vpack.c.bf16 %v1506_v19, %v1498_v42  ;;  %v4370_v29 = vpack.c.bf16 %v1521_v21, %v1513_v20  ;;  %v1562_v42 = vld [vmem:[#allocation10 + $0x1090] sm:$0xff]  ;;  %v1577_v20 = vld [vmem:[#allocation10 + $0x1108] sm:$0xff] }
 0x244   : > { %v4626_v30 = vpack.c.bf16 %v1523_v23, %v1515_v22  ;;  %v1570_v19 = vld [vmem:[#allocation10 + $0x10d0] sm:$0xff]  ;;  %v1585_v21 = vld [vmem:[#allocation10 + $0x1148] sm:$0xff]  ;;  %v1579_v22 = vld [vmem:[#allocation10 + $0x1118] sm:$0xff] }
 0x245   : > { %v711_v41 = vrot.slane %v6270_v17, %v710_v24  ;;  %v1563_v17 = vld [vmem:[#allocation10 + $0x1098] sm:$0xff]  ;;  %v4640_v27 = vpack.c.bf16 %v1570_v19, %v1562_v42 }
 0x246   : > { %4353 = vmatpush1.bf16.msra.mxu0 %v4352_v31  ;;  %4609 = vmatpush1.bf16.msra.mxu1 %v4608_v33  ;;  %v1514_v31 = vld [vmem:[#allocation10 + $0xf10] sm:$0xff]  ;;  %v1587_v23 = vld [vmem:[#allocation10 + $0x1158] sm:$0xff] }
 0x247   : > { %4355 = vmatprep.subr.bf16.mxu0 %v4354_v36  ;;  %4611 = vmatprep.subr.bf16.mxu1 %v4610_v39  ;;  %v1522_v33 = vld [vmem:[#allocation10 + $0xf50] sm:$0xff]  ;;  %v1531_v36 = vld [vmem:[#allocation10 + $0xf98] sm:$0xff]  ;;  %v878_v58 = vadd.f32 %v6291_v38, %v711_v41 }
 0x248   : > { %v1539_v39 = vld [vmem:[#allocation10 + $0xfd8] sm:$0xff]  ;;  %v4628_v44 = vpack.c.bf16 %v1522_v33, %v1514_v31  ;;  %v4642_v31 = vpack.c.bf16 %v1587_v23, %v1579_v22  ;;  %v1578_v33 = vld [vmem:[#allocation10 + $0x1110] sm:$0xff] }
 0x249   : > { %v6308_v8 = vmax.f32 %v878_v58, 0.0  ;;  %v1603_v41 = vld [vmem:[#allocation10 + $0x11d8] sm:$0xff]  ;;  %v4648_v58 = vpack.c.bf16 %v1602_v51, %v1594_v50  ;;  %v1673_v50 = vld [vmem:[#allocation10 + $0x1408] sm:$0xff] }
 0x24a   : > { %4357 = vmatpush1.bf16.msra.mxu0 %v4356_v47  ;;  %4613 = vmatpush1.bf16.msra.mxu1 %v4612_v48  ;;  %v4374_v47 = vpack.c.bf16 %v1537_v35, %v1529_v34  ;;  %v4630_v48 = vpack.c.bf16 %v1539_v39, %v1531_v36  ;;  %v1586_v34 = vld [vmem:[#allocation10 + $0x1150] sm:$0xff]  ;;  %v1593_v35 = vld [vmem:[#allocation10 + $0x1188] sm:$0xff]  ;;  %v1595_v39 = vld [vmem:[#allocation10 + $0x1198] sm:$0xff] }
 0x24b   : > { %4359 = vmatprep.subr.bf16.mxu0 %v4358_v52  ;;  %4615 = vmatprep.subr.bf16.mxu1 %v4614_v53  ;;  %v1545_v52 = vld [vmem:[#allocation10 + $0x1008] sm:$0xff]  ;;  %v1643_v42 = vld [vmem:[#allocation10 + $0x1318] sm:$0xff] }
 0x24c   : > { %v1553_v53 = vld [vmem:[#allocation10 + $0x1048] sm:$0xff]  ;;  %v1651_v19 = vld [vmem:[#allocation10 + $0x1358] sm:$0xff] }
 0x24d   : > { %v4378_v0 = vpack.c.bf16 %v1553_v53, %v1545_v52  ;;  %v1601_v36 = vld [vmem:[#allocation10 + $0x11c8] sm:$0xff] }
 0x24e   : > { %4361 = vmatpush1.bf16.msra.mxu0 %v4360_v61  ;;  %4617 = vmatpush1.bf16.msra.mxu1 %v4616_v62  ;;  %v1544_v61 = vld [vmem:[#allocation10 + $0x1000] sm:$0xff]  ;;  %v1609_v52 = vld [vmem:[#allocation10 + $0x1208] sm:$0xff] }
 0x24f   : > { %4363 = vmatprep.subr.bf16.mxu0 %v4362_v1  ;;  %4619 = vmatprep.subr.bf16.mxu1 %v4618_v2  ;;  %v1552_v62 = vld [vmem:[#allocation10 + $0x1040] sm:$0xff]  ;;  %v4634_v1 = vpack.c.bf16 %v1555_v56, %v1547_v54  ;;  %v1546_v2 = vld [vmem:[#allocation10 + $0x1010] sm:$0xff]  ;;  %v1617_v53 = vld [vmem:[#allocation10 + $0x1248] sm:$0xff] }
 0x250   : > { %v1611_v54 = vld [vmem:[#allocation10 + $0x1218] sm:$0xff]  ;;  %v1681_v51 = vld [vmem:[#allocation10 + $0x1448] sm:$0xff] }
 0x251   : > { %v1619_v56 = vld [vmem:[#allocation10 + $0x1258] sm:$0xff] }
 0x252   : > { %4365 = vmatpush1.bf16.msra.mxu0 %v4364_v9  ;;  %4621 = vmatpush1.bf16.msra.mxu1 %v4620_v10  ;;  %v4380_v9 = vpack.c.bf16 %v1552_v62, %v1544_v61  ;;  %v4636_v10 = vpack.c.bf16 %v1554_v3, %v1546_v2  ;;  %v4394_v61 = vpack.c.bf16 %v1617_v53, %v1609_v52  ;;  %v1625_v2 = vld [vmem:[#allocation10 + $0x1288] sm:$0xff]  ;;  %v1675_v52 = vld [vmem:[#allocation10 + $0x1418] sm:$0xff] }
 0x253   : > { %4367 = vmatprep.subr.bf16.mxu0 %v4366_v14  ;;  %4623 = vmatprep.subr.bf16.mxu1 %v4622_v15  ;;  %v4382_v14 = vpack.c.bf16 %v1569_v6, %v1561_v4  ;;  %v4638_v15 = vpack.c.bf16 %v1571_v7, %v1563_v17  ;;  %v4650_v62 = vpack.c.bf16 %v1619_v56, %v1611_v54  ;;  %v1633_v3 = vld [vmem:[#allocation10 + $0x12c8] sm:$0xff]  ;;  %v1627_v4 = vld [vmem:[#allocation10 + $0x1298] sm:$0xff]  ;;  %v1624_v7 = vld [vmem:[#allocation10 + $0x1280] sm:$0xff] }
 0x254   : > { %v1683_v53 = vld [vmem:[#allocation10 + $0x1458] sm:$0xff] }
 0x256   : > { %4369 = vmatpush1.bf16.msra.mxu0 %v4368_v25  ;;  %4625 = vmatpush1.bf16.msra.mxu1 %v4624_v26  ;;  %v4384_v26 = vpack.c.bf16 %v1568_v13, %v1560_v11  ;;  %v1626_v11 = vld [vmem:[#allocation10 + $0x1290] sm:$0xff] }
 0x257   : > { %4371 = vmatprep.subr.bf16.mxu0 %v4370_v29  ;;  %4627 = vmatprep.subr.bf16.mxu1 %v4626_v30  ;;  %v1584_v29 = vld [vmem:[#allocation10 + $0x1140] sm:$0xff]  ;;  %v4386_v30 = vpack.c.bf16 %v1585_v21, %v1577_v20  ;;  %v1634_v13 = vld [vmem:[#allocation10 + $0x12d0] sm:$0xff] }
 0x258   : > { %v4656_v23 = vpack.c.bf16 %v1634_v13, %v1626_v11  ;;  %v1705_v11 = vld [vmem:[#allocation10 + $0x1508] sm:$0xff] }
 0x259   : > { %v1713_v13 = vld [vmem:[#allocation10 + $0x1548] sm:$0xff] }
 0x25a   : > { %4373 = vmatpush1.bf16.msra.mxu0 %v4372_v43  ;;  %4629 = vmatpush1.bf16.msra.mxu1 %v4628_v44  ;;  %v6306_v63 = vpop.f32.mrb[2].mxu0  ;;  %v4388_v43 = vpack.c.bf16 %v1584_v29, %v1576_v28  ;;  %v4644_v44 = vpack.c.bf16 %v1586_v34, %v1578_v33  ;;  %v4658_v29 = vpack.c.bf16 %v1651_v19, %v1643_v42  ;;  %v1657_v33 = vld [vmem:[#allocation10 + $0x1388] sm:$0xff] }
 0x25b   : > { %4375 = vmatprep.subr.bf16.mxu0 %v4374_v47  ;;  %4631 = vmatprep.subr.bf16.mxu1 %v4630_v48  ;;  %v950_v5 = vpop.f32.mrb[3].mxu0  ;;  %v4390_v47 = vpack.c.bf16 %v1601_v36, %v1593_v35  ;;  %v4646_v48 = vpack.c.bf16 %v1603_v41, %v1595_v39  ;;  %v1665_v34 = vld [vmem:[#allocation10 + $0x13c8] sm:$0xff]  ;;  %v1659_v35 = vld [vmem:[#allocation10 + $0x1398] sm:$0xff] }
 0x25c   : > { %v951_v38 = vadd.f32 %v950_v5, %v723_v57  ;;  %v4392_v57 = vpack.c.bf16 %v1600_v46, %v1592_v45  ;;  %v1635_v5 = vld [vmem:[#allocation10 + $0x12d8] sm:$0xff]  ;;  %v4406_v45 = vpack.c.bf16 %v1665_v34, %v1657_v33 }
 0x25d   : > { %v6316_v20 = vpop.f32.mrb[2].mxu1  ;;  %v1667_v36 = vld [vmem:[#allocation10 + $0x13d8] sm:$0xff] }
 0x25e   : > { %4377 = vmatpush1.bf16.msra.mxu0 %v4376_v59  ;;  %4633 = vmatpush1.bf16.msra.mxu1 %v4632_v60  ;;  %v6310_v25 = vmax.f32 %v951_v38, 0.0  ;;  %v1608_v59 = vld [vmem:[#allocation10 + $0x1200] sm:$0xff]  ;;  %v6318_v21 = vpop.f32.mrb[3].mxu1  ;;  %v4662_v46 = vpack.c.bf16 %v1667_v36, %v1659_v35  ;;  %v1723_v33 = vld [vmem:[#allocation10 + $0x1598] sm:$0xff] }
 0x25f   : > { %4379 = vmatprep.subr.bf16.mxu0 %v4378_v0  ;;  %4635 = vmatprep.subr.bf16.mxu1 %v4634_v1  ;;  %v1616_v60 = vld [vmem:[#allocation10 + $0x1240] sm:$0xff]  ;;  %v1610_v0 = vld [vmem:[#allocation10 + $0x1210] sm:$0xff]  ;;  %v1731_v34 = vld [vmem:[#allocation10 + $0x15d8] sm:$0xff] }
 0x260   : > { %v1618_v1 = vld [vmem:[#allocation10 + $0x1250] sm:$0xff]  ;;  %v4396_v6 = vpack.c.bf16 %v1616_v60, %v1608_v59  ;;  %v1632_v38 = vld [vmem:[#allocation10 + $0x12c0] sm:$0xff]  ;;  %v4410_v59 = vpack.c.bf16 %v1681_v51, %v1673_v50  ;;  %v4666_v60 = vpack.c.bf16 %v1683_v53, %v1675_v52  ;;  %v1739_v50 = vld [vmem:[#allocation10 + $0x1618] sm:$0xff] }
 0x261   : > { %2234 = vmatmul.mubr.f32.vlgmr.msra.gmra.mrb[4].mxu0 %v6308_v8  ;;  %2518 = vmatmul.mubr.f32.vlgmr.msra.gmra.mrb[4].mxu1 %v6308_v8  ;;  %v4652_v17 = vpack.c.bf16 %v1618_v1, %v1610_v0  ;;  %v4400_v22 = vpack.c.bf16 %v1632_v38, %v1624_v7  ;;  %v1689_v0 = vld [vmem:[#allocation10 + $0x1488] sm:$0xff]  ;;  %v1747_v51 = vld [vmem:[#allocation10 + $0x1658] sm:$0xff] }
 0x262   : > { %4381 = vmatpush1.bf16.msra.mxu0 %v4380_v9  ;;  %4637 = vmatpush1.bf16.msra.mxu1 %v4636_v10  ;;  %v4398_v9 = vpack.c.bf16 %v1633_v3, %v1625_v2  ;;  %v4654_v10 = vpack.c.bf16 %v1635_v5, %v1627_v4  ;;  %v1697_v1 = vld [vmem:[#allocation10 + $0x14c8] sm:$0xff]  ;;  %v1691_v2 = vld [vmem:[#allocation10 + $0x1498] sm:$0xff] }
 0x263   : > { %4383 = vmatprep.subr.bf16.mxu0 %v4382_v14  ;;  %4639 = vmatprep.subr.bf16.mxu1 %v4638_v15  ;;  %v1641_v14 = vld [vmem:[#allocation10 + $0x1308] sm:$0xff]  ;;  %v1699_v3 = vld [vmem:[#allocation10 + $0x14d8] sm:$0xff]  ;;  %v4414_v7 = vpack.c.bf16 %v1697_v1, %v1689_v0 }
 0x264   : > { %2304 = vmatprep.mubr.f32.mxu0 %v6310_v25  ;;  %2588 = vmatprep.mubr.f32.mxu1 %v6310_v25  ;;  %v1649_v15 = vld [vmem:[#allocation10 + $0x1348] sm:$0xff]  ;;  %v4670_v38 = vpack.c.bf16 %v1699_v3, %v1691_v2  ;;  %v1755_v0 = vld [vmem:[#allocation10 + $0x1698] sm:$0xff] }
 0x265   : > { %v4402_v28 = vpack.c.bf16 %v1649_v15, %v1641_v14  ;;  %v1707_v14 = vld [vmem:[#allocation10 + $0x1518] sm:$0xff] }
 0x266   : > { %4385 = vmatpush1.bf16.msra.mxu0 %v4384_v26  ;;  %4641 = vmatpush1.bf16.msra.mxu1 %v4640_v27  ;;  %v1640_v26 = vld [vmem:[#allocation10 + $0x1300] sm:$0xff]  ;;  %v1715_v15 = vld [vmem:[#allocation10 + $0x1558] sm:$0xff] }
 0x267   : > { %4387 = vmatprep.subr.bf16.mxu0 %v4386_v30  ;;  %4643 = vmatprep.subr.bf16.mxu1 %v4642_v31  ;;  %v1648_v27 = vld [vmem:[#allocation10 + $0x1340] sm:$0xff]  ;;  %v1642_v30 = vld [vmem:[#allocation10 + $0x1310] sm:$0xff]  ;;  %v1763_v1 = vld [vmem:[#allocation10 + $0x16d8] sm:$0xff] }
 0x268   : > { %v1650_v31 = vld [vmem:[#allocation10 + $0x1350] sm:$0xff]  ;;  %v4404_v39 = vpack.c.bf16 %v1648_v27, %v1640_v26  ;;  %v4418_v26 = vpack.c.bf16 %v1713_v13, %v1705_v11  ;;  %v4674_v27 = vpack.c.bf16 %v1715_v15, %v1707_v14  ;;  %v1771_v11 = vld [vmem:[#allocation10 + $0x1718] sm:$0xff]  ;;  %v718_v14 = vsub.s32 4, %v6267_v49 }
 0x269   : > { %v4660_v41 = vpack.c.bf16 %v1650_v31, %v1642_v30  ;;  %v1721_v30 = vld [vmem:[#allocation10 + $0x1588] sm:$0xff]  ;;  %v1779_v13 = vld [vmem:[#allocation10 + $0x1758] sm:$0xff] }
 0x26a   : > { %4389 = vmatpush1.bf16.msra.mxu0 %v4388_v43  ;;  %4645 = vmatpush1.bf16.msra.mxu1 %v4644_v44  ;;  %v1656_v43 = vld [vmem:[#allocation10 + $0x1380] sm:$0xff]  ;;  %v1729_v31 = vld [vmem:[#allocation10 + $0x15c8] sm:$0xff] }
 0x26b   : > { %4391 = vmatprep.subr.bf16.mxu0 %v4390_v47  ;;  %4647 = vmatprep.subr.bf16.mxu1 %v4646_v48  ;;  %v1664_v44 = vld [vmem:[#allocation10 + $0x13c0] sm:$0xff]  ;;  %v1658_v47 = vld [vmem:[#allocation10 + $0x1390] sm:$0xff] }
 0x26c   : > { %v1666_v48 = vld [vmem:[#allocation10 + $0x13d0] sm:$0xff]  ;;  %v4408_v54 = vpack.c.bf16 %v1664_v44, %v1656_v43  ;;  %v4422_v43 = vpack.c.bf16 %v1729_v31, %v1721_v30  ;;  %v4678_v44 = vpack.c.bf16 %v1731_v34, %v1723_v33  ;;  %v1793_v30 = vld [vmem:[#allocation10 + $0x17c8] sm:$0xff]  ;;  %v1787_v31 = vld [vmem:[#allocation10 + $0x1798] sm:$0xff]  ;;  %v730_v34 = vsub.s32 7, %v6267_v49 }
 0x26d   : > { %v4664_v56 = vpack.c.bf16 %v1666_v48, %v1658_v47  ;;  %v1737_v47 = vld [vmem:[#allocation10 + $0x1608] sm:$0xff]  ;;  %v1795_v33 = vld [vmem:[#allocation10 + $0x17d8] sm:$0xff] }
 0x26e   : > { %4393 = vmatpush1.bf16.msra.mxu0 %v4392_v57  ;;  %4649 = vmatpush1.bf16.msra.mxu1 %v4648_v58  ;;  %v1672_v57 = vld [vmem:[#allocation10 + $0x1400] sm:$0xff]  ;;  %v1745_v48 = vld [vmem:[#allocation10 + $0x1648] sm:$0xff] }
 0x26f   : > { %4395 = vmatprep.subr.bf16.mxu0 %v4394_v61  ;;  %4651 = vmatprep.subr.bf16.mxu1 %v4650_v62  ;;  %v1680_v58 = vld [vmem:[#allocation10 + $0x1440] sm:$0xff]  ;;  %v1674_v61 = vld [vmem:[#allocation10 + $0x1410] sm:$0xff] }
 0x270   : > { %v1682_v62 = vld [vmem:[#allocation10 + $0x1450] sm:$0xff]  ;;  %v4412_v4 = vpack.c.bf16 %v1680_v58, %v1672_v57  ;;  %v4426_v57 = vpack.c.bf16 %v1745_v48, %v1737_v47  ;;  %v4682_v58 = vpack.c.bf16 %v1747_v51, %v1739_v50  ;;  %v1801_v50 = vld [vmem:[#allocation10 + $0x1808] sm:$0xff] }
 0x271   : > { %v4668_v5 = vpack.c.bf16 %v1682_v62, %v1674_v61  ;;  %v1753_v61 = vld [vmem:[#allocation10 + $0x1688] sm:$0xff]  ;;  %v1786_v47 = vld [vmem:[#allocation10 + $0x1790] sm:$0xff] }
 0x272   : > { %4397 = vmatpush1.bf16.msra.mxu0 %v4396_v6  ;;  %4653 = vmatpush1.bf16.msra.mxu1 %v4652_v17  ;;  %v1688_v6 = vld [vmem:[#allocation10 + $0x1480] sm:$0xff]  ;;  %v1761_v62 = vld [vmem:[#allocation10 + $0x16c8] sm:$0xff]  ;;  %v1794_v48 = vld [vmem:[#allocation10 + $0x17d0] sm:$0xff] }
 0x273   : > { %4399 = vmatprep.subr.bf16.mxu0 %v4398_v9  ;;  %4655 = vmatprep.subr.bf16.mxu1 %v4654_v10  ;;  %v1696_v17 = vld [vmem:[#allocation10 + $0x14c0] sm:$0xff]  ;;  %v1690_v9 = vld [vmem:[#allocation10 + $0x1490] sm:$0xff]  ;;  %v1809_v51 = vld [vmem:[#allocation10 + $0x1848] sm:$0xff] }
 0x274   : > { %v1698_v10 = vld [vmem:[#allocation10 + $0x14d0] sm:$0xff]  ;;  %v4416_v42 = vpack.c.bf16 %v1696_v17, %v1688_v6  ;;  %v4430_v6 = vpack.c.bf16 %v1761_v62, %v1753_v61  ;;  %v4686_v17 = vpack.c.bf16 %v1763_v1, %v1755_v0  ;;  %v4442_v61 = vpack.c.bf16 %v1809_v51, %v1801_v50 }
 0x275   : > { %v4672_v19 = vpack.c.bf16 %v1698_v10, %v1690_v9  ;;  %v1769_v9 = vld [vmem:[#allocation10 + $0x1708] sm:$0xff]  ;;  %v1802_v0 = vld [vmem:[#allocation10 + $0x1810] sm:$0xff] }
 0x276   : > { %4401 = vmatpush1.bf16.msra.mxu0 %v4400_v22  ;;  %4657 = vmatpush1.bf16.msra.mxu1 %v4656_v23  ;;  %v1704_v22 = vld [vmem:[#allocation10 + $0x1500] sm:$0xff]  ;;  %v1777_v10 = vld [vmem:[#allocation10 + $0x1748] sm:$0xff]  ;;  %v1810_v1 = vld [vmem:[#allocation10 + $0x1850] sm:$0xff] }
 0x277   : > { %4403 = vmatprep.subr.bf16.mxu0 %v4402_v28  ;;  %4659 = vmatprep.subr.bf16.mxu1 %v4658_v29  ;;  %v1712_v23 = vld [vmem:[#allocation10 + $0x1540] sm:$0xff]  ;;  %v1706_v28 = vld [vmem:[#allocation10 + $0x1510] sm:$0xff] }
 0x278   : > { %v1714_v29 = vld [vmem:[#allocation10 + $0x1550] sm:$0xff]  ;;  %v4420_v35 = vpack.c.bf16 %v1712_v23, %v1704_v22  ;;  %v1776_v22 = vld [vmem:[#allocation10 + $0x1740] sm:$0xff]  ;;  %v4434_v23 = vpack.c.bf16 %v1777_v10, %v1769_v9 }
 0x279   : > { %v4676_v36 = vpack.c.bf16 %v1714_v29, %v1706_v28  ;;  %v1778_v28 = vld [vmem:[#allocation10 + $0x1750] sm:$0xff]  ;;  %v1785_v29 = vld [vmem:[#allocation10 + $0x1788] sm:$0xff]  ;;  %v1824_v9 = vld [vmem:[#allocation10 + $0x18c0] sm:$0xff] }
 0x27a   : > { %4405 = vmatpush1.bf16.msra.mxu0 %v4404_v39  ;;  %4661 = vmatpush1.bf16.msra.mxu1 %v4660_v41  ;;  %v1720_v39 = vld [vmem:[#allocation10 + $0x1580] sm:$0xff] }
 0x27b   : > { %4407 = vmatprep.subr.bf16.mxu0 %v4406_v45  ;;  %4663 = vmatprep.subr.bf16.mxu1 %v4662_v46  ;;  %v1728_v41 = vld [vmem:[#allocation10 + $0x15c0] sm:$0xff]  ;;  %v1722_v45 = vld [vmem:[#allocation10 + $0x1590] sm:$0xff] }
 0x27c   : > { %v1730_v46 = vld [vmem:[#allocation10 + $0x15d0] sm:$0xff]  ;;  %v4424_v52 = vpack.c.bf16 %v1728_v41, %v1720_v39 }
 0x27d   : > { %v4680_v53 = vpack.c.bf16 %v1730_v46, %v1722_v45  ;;  %v4438_v45 = vpack.c.bf16 %v1793_v30, %v1785_v29  ;;  %v4694_v46 = vpack.c.bf16 %v1795_v33, %v1787_v31  ;;  %v1840_v29 = vld [vmem:[#allocation10 + $0x1940] sm:$0xff]  ;;  %v1834_v33 = vld [vmem:[#allocation10 + $0x1910] sm:$0xff] }
 0x27e   : > { %4409 = vmatpush1.bf16.msra.mxu0 %v4408_v54  ;;  %4665 = vmatpush1.bf16.msra.mxu1 %v4664_v56  ;;  %v1736_v54 = vld [vmem:[#allocation10 + $0x1600] sm:$0xff] }
 0x27f   : > { %4411 = vmatprep.subr.bf16.mxu0 %v4410_v59  ;;  %4667 = vmatprep.subr.bf16.mxu1 %v4666_v60  ;;  %v1744_v56 = vld [vmem:[#allocation10 + $0x1640] sm:$0xff]  ;;  %v1738_v59 = vld [vmem:[#allocation10 + $0x1610] sm:$0xff] }
 0x280   : > { %v1746_v60 = vld [vmem:[#allocation10 + $0x1650] sm:$0xff]  ;;  %v4428_v2 = vpack.c.bf16 %v1744_v56, %v1736_v54 }
 0x281   : > { %v4684_v3 = vpack.c.bf16 %v1746_v60, %v1738_v59  ;;  %v1800_v59 = vld [vmem:[#allocation10 + $0x1800] sm:$0xff] }
 0x282   : > { %4413 = vmatpush1.bf16.msra.mxu0 %v4412_v4  ;;  %4669 = vmatpush1.bf16.msra.mxu1 %v4668_v5  ;;  %v1752_v4 = vld [vmem:[#allocation10 + $0x1680] sm:$0xff] }
 0x283   : > { %4415 = vmatprep.subr.bf16.mxu0 %v4414_v7  ;;  %4671 = vmatprep.subr.bf16.mxu1 %v4670_v38  ;;  %v1760_v5 = vld [vmem:[#allocation10 + $0x16c0] sm:$0xff]  ;;  %v1754_v7 = vld [vmem:[#allocation10 + $0x1690] sm:$0xff] }
 0x284   : > { %v1762_v38 = vld [vmem:[#allocation10 + $0x16d0] sm:$0xff]  ;;  %v4432_v15 = vpack.c.bf16 %v1760_v5, %v1752_v4  ;;  %v1808_v60 = vld [vmem:[#allocation10 + $0x1840] sm:$0xff]  ;;  %v1819_v4 = vld [vmem:[#allocation10 + $0x1898] sm:$0xff] }
 0x285   : > { %v1827_v5 = vld [vmem:[#allocation10 + $0x18d8] sm:$0xff] }
 0x286   : > { %4417 = vmatpush1.bf16.msra.mxu0 %v4416_v42  ;;  %4673 = vmatpush1.bf16.msra.mxu1 %v4672_v19  ;;  %v4688_v42 = vpack.c.bf16 %v1762_v38, %v1754_v7  ;;  %v1768_v19 = vld [vmem:[#allocation10 + $0x1700] sm:$0xff]  ;;  %v4700_v7 = vpack.c.bf16 %v1810_v1, %v1802_v0 }
 0x287   : > { %4419 = vmatprep.subr.bf16.mxu0 %v4418_v26  ;;  %4675 = vmatprep.subr.bf16.mxu1 %v4674_v27  ;;  %v4690_v26 = vpack.c.bf16 %v1779_v13, %v1771_v11  ;;  %v1770_v27 = vld [vmem:[#allocation10 + $0x1710] sm:$0xff]  ;;  %v4436_v39 = vpack.c.bf16 %v1776_v22, %v1768_v19  ;;  %v1816_v38 = vld [vmem:[#allocation10 + $0x1880] sm:$0xff]  ;;  %v4702_v11 = vpack.c.bf16 %v1827_v5, %v1819_v4  ;;  %v1841_v19 = vld [vmem:[#allocation10 + $0x1948] sm:$0xff] }
 0x288   : > { %v4692_v41 = vpack.c.bf16 %v1778_v28, %v1770_v27  ;;  %v1818_v13 = vld [vmem:[#allocation10 + $0x1890] sm:$0xff]  ;;  %v1835_v22 = vld [vmem:[#allocation10 + $0x1918] sm:$0xff]  ;;  %v1832_v28 = vld [vmem:[#allocation10 + $0x1900] sm:$0xff] }
 0x289   : > { %v1881_v4 = vld [vmem:[#allocation10 + $0x1a88] sm:$0xff] }
 0x28a   : > { %4421 = vmatpush1.bf16.msra.mxu0 %v4420_v35  ;;  %4677 = vmatpush1.bf16.msra.mxu1 %v4676_v36  ;;  %v6322_v35 = vld [vmem:[#allocation8] sm:$0xff]  ;;  %v1889_v5 = vld [vmem:[#allocation10 + $0x1ac8] sm:$0xff] }
 0x28b   : > { %4423 = vmatprep.subr.bf16.mxu0 %v4422_v43  ;;  %4679 = vmatprep.subr.bf16.mxu1 %v4678_v44  ;;  %v719_v36 = vrot.slane %v6322_v35, %v718_v14  ;;  %v1784_v43 = vld [vmem:[#allocation10 + $0x1780] sm:$0xff]  ;;  %v731_v54 = vrot.slane %v6322_v35, %v730_v34 }
 0x28c   : > { %v1792_v44 = vld [vmem:[#allocation10 + $0x17c0] sm:$0xff] }
 0x28d   : > { %v949_v56 = vadd.f32 %v6306_v63, %v719_v36  ;;  %v4444_v63 = vpack.c.bf16 %v1808_v60, %v1800_v59  ;;  %v1842_v36 = vld [vmem:[#allocation10 + $0x1950] sm:$0xff] }
 0x28e   : > { %4425 = vmatpush1.bf16.msra.mxu0 %v4424_v52  ;;  %4681 = vmatpush1.bf16.msra.mxu1 %v4680_v53  ;;  %v1803_v52 = vld [vmem:[#allocation10 + $0x1818] sm:$0xff] }
 0x28f   : > { %4427 = vmatprep.subr.bf16.mxu0 %v4426_v57  ;;  %4683 = vmatprep.subr.bf16.mxu1 %v4682_v58  ;;  %v1811_v53 = vld [vmem:[#allocation10 + $0x1858] sm:$0xff]  ;;  %v4440_v57 = vpack.c.bf16 %v1792_v44, %v1784_v43  ;;  %v4696_v58 = vpack.c.bf16 %v1794_v48, %v1786_v47  ;;  %v1848_v47 = vld [vmem:[#allocation10 + $0x1980] sm:$0xff] }
 0x290   : > { %v4698_v62 = vpack.c.bf16 %v1811_v53, %v1803_v52  ;;  %v1851_v43 = vld [vmem:[#allocation10 + $0x1998] sm:$0xff]  ;;  %v1856_v48 = vld [vmem:[#allocation10 + $0x19c0] sm:$0xff]  ;;  %v1850_v52 = vld [vmem:[#allocation10 + $0x1990] sm:$0xff] }
 0x291   : > { %v1859_v44 = vld [vmem:[#allocation10 + $0x19d8] sm:$0xff]  ;;  %v1858_v53 = vld [vmem:[#allocation10 + $0x19d0] sm:$0xff]  ;;  %v4456_v59 = vpack.c.bf16 %v1856_v48, %v1848_v47  ;;  %v1912_v48 = vld [vmem:[#allocation10 + $0x1b80] sm:$0xff] }
 0x292   : > { %4429 = vmatpush1.bf16.msra.mxu0 %v4428_v2  ;;  %4685 = vmatpush1.bf16.msra.mxu1 %v4684_v3  ;;  %v1817_v2 = vld [vmem:[#allocation10 + $0x1888] sm:$0xff]  ;;  %v4710_v51 = vpack.c.bf16 %v1859_v44, %v1851_v43  ;;  %v4712_v60 = vpack.c.bf16 %v1858_v53, %v1850_v52  ;;  %v1915_v44 = vld [vmem:[#allocation10 + $0x1b98] sm:$0xff]  ;;  %v1914_v53 = vld [vmem:[#allocation10 + $0x1b90] sm:$0xff] }
 0x293   : > { %4431 = vmatprep.subr.bf16.mxu0 %v4430_v6  ;;  %4687 = vmatprep.subr.bf16.mxu1 %v4686_v17  ;;  %v1825_v3 = vld [vmem:[#allocation10 + $0x18c8] sm:$0xff]  ;;  %v1022_v6 = vadd.f32 %v6318_v21, %v731_v54  ;;  %v6332_v17 = vmax.f32 %v949_v56, 0.0  ;;  %v4448_v21 = vpack.c.bf16 %v1824_v9, %v1816_v38  ;;  %v1880_v9 = vld [vmem:[#allocation10 + $0x1a80] sm:$0xff] }
 0x294   : > { %v4446_v10 = vpack.c.bf16 %v1825_v3, %v1817_v2  ;;  %v1865_v54 = vld [vmem:[#allocation10 + $0x1a08] sm:$0xff]  ;;  %v1866_v2 = vld [vmem:[#allocation10 + $0x1a10] sm:$0xff] }
 0x295   : > { %v1873_v56 = vld [vmem:[#allocation10 + $0x1a48] sm:$0xff]  ;;  %v1874_v3 = vld [vmem:[#allocation10 + $0x1a50] sm:$0xff] }
 0x296   : > { %4433 = vmatpush1.bf16.msra.mxu0 %v4432_v15  ;;  %4689 = vmatpush1.bf16.msra.mxu1 %v4688_v42  ;;  %v1826_v15 = vld [vmem:[#allocation10 + $0x18d0] sm:$0xff]  ;;  %v1833_v42 = vld [vmem:[#allocation10 + $0x1908] sm:$0xff]  ;;  %v4458_v0 = vpack.c.bf16 %v1873_v56, %v1865_v54  ;;  %v4716_v38 = vpack.c.bf16 %v1874_v3, %v1866_v2 }
 0x297   : > { %4435 = vmatprep.subr.bf16.mxu0 %v4434_v23  ;;  %4691 = vmatprep.subr.bf16.mxu1 %v4690_v26  ;;  %v1843_v23 = vld [vmem:[#allocation10 + $0x1958] sm:$0xff]  ;;  %v6334_v26 = vmax.f32 %v1022_v6, 0.0  ;;  %v4704_v27 = vpack.c.bf16 %v1826_v15, %v1818_v13  ;;  %v4450_v30 = vpack.c.bf16 %v1841_v19, %v1833_v42  ;;  %v1882_v15 = vld [vmem:[#allocation10 + $0x1a90] sm:$0xff]  ;;  %v1897_v19 = vld [vmem:[#allocation10 + $0x1b08] sm:$0xff] }
 0x298   : > { %v4706_v31 = vpack.c.bf16 %v1843_v23, %v1835_v22  ;;  %v1883_v6 = vld [vmem:[#allocation10 + $0x1a98] sm:$0xff]  ;;  %v1890_v42 = vld [vmem:[#allocation10 + $0x1ad0] sm:$0xff]  ;;  %v1905_v22 = vld [vmem:[#allocation10 + $0x1b48] sm:$0xff] }
 0x299   : > { %v1899_v23 = vld [vmem:[#allocation10 + $0x1b18] sm:$0xff]  ;;  %v1921_v43 = vld [vmem:[#allocation10 + $0x1bc8] sm:$0xff]  ;;  %v1922_v54 = vld [vmem:[#allocation10 + $0x1bd0] sm:$0xff] }
 0x29a   : > { %4437 = vmatpush1.bf16.msra.mxu0 %v4436_v39  ;;  %4693 = vmatpush1.bf16.msra.mxu1 %v4692_v41  ;;  %v1849_v39 = vld [vmem:[#allocation10 + $0x1988] sm:$0xff]  ;;  %v1930_v3 = vld [vmem:[#allocation10 + $0x1c10] sm:$0xff] }
 0x29b   : > { %4439 = vmatprep.subr.bf16.mxu0 %v4438_v45  ;;  %4695 = vmatprep.subr.bf16.mxu1 %v4694_v46  ;;  %v1857_v41 = vld [vmem:[#allocation10 + $0x19c8] sm:$0xff]  ;;  %v4452_v45 = vpack.c.bf16 %v1840_v29, %v1832_v28  ;;  %v4708_v46 = vpack.c.bf16 %v1842_v36, %v1834_v33  ;;  %v4720_v28 = vpack.c.bf16 %v1890_v42, %v1882_v15  ;;  %v1896_v29 = vld [vmem:[#allocation10 + $0x1b00] sm:$0xff]  ;;  %v1898_v36 = vld [vmem:[#allocation10 + $0x1b10] sm:$0xff] }
 0x29c   : > { %v4454_v50 = vpack.c.bf16 %v1857_v41, %v1849_v39  ;;  %v1906_v39 = vld [vmem:[#allocation10 + $0x1b50] sm:$0xff]  ;;  %v1913_v41 = vld [vmem:[#allocation10 + $0x1b88] sm:$0xff] }
 0x29d   : > { %v4724_v47 = vpack.c.bf16 %v1906_v39, %v1898_v36  ;;  %v1929_v56 = vld [vmem:[#allocation10 + $0x1c08] sm:$0xff]  ;;  %v1946_v42 = vld [vmem:[#allocation10 + $0x1c90] sm:$0xff] }
 0x29e   : > { %4441 = vmatpush1.bf16.msra.mxu0 %v4440_v57  ;;  %4697 = vmatpush1.bf16.msra.mxu1 %v4696_v58  ;;  %v1867_v57 = vld [vmem:[#allocation10 + $0x1a18] sm:$0xff]  ;;  %v1962_v39 = vld [vmem:[#allocation10 + $0x1d10] sm:$0xff] }
 0x29f   : > { %4443 = vmatprep.subr.bf16.mxu0 %v4442_v61  ;;  %4699 = vmatprep.subr.bf16.mxu1 %v4698_v62  ;;  %v1875_v58 = vld [vmem:[#allocation10 + $0x1a58] sm:$0xff]  ;;  %v1864_v61 = vld [vmem:[#allocation10 + $0x1a00] sm:$0xff] }
 0x2a0   : > { %v1872_v62 = vld [vmem:[#allocation10 + $0x1a40] sm:$0xff]  ;;  %v4714_v1 = vpack.c.bf16 %v1875_v58, %v1867_v57  ;;  %v1937_v57 = vld [vmem:[#allocation10 + $0x1c48] sm:$0xff]  ;;  %v1931_v58 = vld [vmem:[#allocation10 + $0x1c18] sm:$0xff] }
 0x2a1   : > { %2305 = vmatmul.mubr.f32.vlgmr.msra.gmra.mrb[4].mxu0 %v6332_v17  ;;  %2589 = vmatmul.mubr.f32.vlgmr.msra.gmra.mrb[4].mxu1 %v6332_v17 }
 0x2a2   : > { %4445 = vmatpush1.bf16.msra.mxu0 %v4444_v63  ;;  %4701 = vmatpush1.bf16.msra.mxu1 %v4700_v7  ;;  %v1891_v63 = vld [vmem:[#allocation10 + $0x1ad8] sm:$0xff]  ;;  %v4460_v7 = vpack.c.bf16 %v1872_v62, %v1864_v61  ;;  %v4728_v61 = vpack.c.bf16 %v1922_v54, %v1914_v53  ;;  %v1928_v62 = vld [vmem:[#allocation10 + $0x1c00] sm:$0xff]  ;;  %v1978_v54 = vld [vmem:[#allocation10 + $0x1d90] sm:$0xff] }
 0x2a3   : > { %4447 = vmatprep.subr.bf16.mxu0 %v4446_v10  ;;  %4703 = vmatprep.subr.bf16.mxu1 %v4702_v11  ;;  %v1888_v10 = vld [vmem:[#allocation10 + $0x1ac0] sm:$0xff]  ;;  %v4462_v11 = vpack.c.bf16 %v1889_v5, %v1881_v4  ;;  %v4718_v13 = vpack.c.bf16 %v1891_v63, %v1883_v6  ;;  %v1938_v4 = vld [vmem:[#allocation10 + $0x1c50] sm:$0xff]  ;;  %v1945_v5 = vld [vmem:[#allocation10 + $0x1c88] sm:$0xff] }
 0x2a4   : > { %2375 = vmatprep.mubr.f32.mxu0 %v6334_v26  ;;  %2659 = vmatprep.mubr.f32.mxu1 %v6334_v26  ;;  %v1953_v6 = vld [vmem:[#allocation10 + $0x1cc8] sm:$0xff]  ;;  %v1947_v63 = vld [vmem:[#allocation10 + $0x1c98] sm:$0xff] }
 0x2a6   : > { %4449 = vmatpush1.bf16.msra.mxu0 %v4448_v21  ;;  %4705 = vmatpush1.bf16.msra.mxu1 %v4704_v27  ;;  %v1907_v21 = vld [vmem:[#allocation10 + $0x1b58] sm:$0xff]  ;;  %v4464_v27 = vpack.c.bf16 %v1888_v10, %v1880_v9  ;;  %v4732_v9 = vpack.c.bf16 %v1938_v4, %v1930_v3  ;;  %v1944_v10 = vld [vmem:[#allocation10 + $0x1c80] sm:$0xff]  ;;  %v1994_v4 = vld [vmem:[#allocation10 + $0x1e10] sm:$0xff] }
 0x2a7   : > { %4451 = vmatprep.subr.bf16.mxu0 %v4450_v30  ;;  %4707 = vmatprep.subr.bf16.mxu1 %v4706_v31  ;;  %v1904_v30 = vld [vmem:[#allocation10 + $0x1b40] sm:$0xff]  ;;  %v4466_v31 = vpack.c.bf16 %v1905_v22, %v1897_v19  ;;  %v4722_v33 = vpack.c.bf16 %v1907_v21, %v1899_v23  ;;  %v1954_v19 = vld [vmem:[#allocation10 + $0x1cd0] sm:$0xff]  ;;  %v1961_v22 = vld [vmem:[#allocation10 + $0x1d08] sm:$0xff] }
 0x2a8   : > { %v1969_v23 = vld [vmem:[#allocation10 + $0x1d48] sm:$0xff]  ;;  %v1963_v21 = vld [vmem:[#allocation10 + $0x1d18] sm:$0xff] }
 0x2aa   : > { %4453 = vmatpush1.bf16.msra.mxu0 %v4452_v45  ;;  %4709 = vmatpush1.bf16.msra.mxu1 %v4708_v46  ;;  %v1923_v45 = vld [vmem:[#allocation10 + $0x1bd8] sm:$0xff]  ;;  %v4468_v46 = vpack.c.bf16 %v1904_v30, %v1896_v29  ;;  %v4736_v29 = vpack.c.bf16 %v1954_v19, %v1946_v42  ;;  %v1960_v30 = vld [vmem:[#allocation10 + $0x1d00] sm:$0xff]  ;;  %v2010_v19 = vld [vmem:[#allocation10 + $0x1e90] sm:$0xff] }
 0x2ab   : > { %4455 = vmatprep.subr.bf16.mxu0 %v4454_v50  ;;  %4711 = vmatprep.subr.bf16.mxu1 %v4710_v51  ;;  %v1920_v50 = vld [vmem:[#allocation10 + $0x1bc0] sm:$0xff]  ;;  %v4470_v51 = vpack.c.bf16 %v1921_v43, %v1913_v41  ;;  %v4726_v52 = vpack.c.bf16 %v1923_v45, %v1915_v44  ;;  %v1970_v41 = vld [vmem:[#allocation10 + $0x1d50] sm:$0xff]  ;;  %v1977_v43 = vld [vmem:[#allocation10 + $0x1d88] sm:$0xff] }
 0x2ac   : > { %v1985_v44 = vld [vmem:[#allocation10 + $0x1dc8] sm:$0xff]  ;;  %v1979_v45 = vld [vmem:[#allocation10 + $0x1d98] sm:$0xff] }
 0x2ae   : > { %4457 = vmatpush1.bf16.msra.mxu0 %v4456_v59  ;;  %4713 = vmatpush1.bf16.msra.mxu1 %v4712_v60  ;;  %v1939_v59 = vld [vmem:[#allocation10 + $0x1c58] sm:$0xff]  ;;  %v4472_v60 = vpack.c.bf16 %v1920_v50, %v1912_v48  ;;  %v4740_v48 = vpack.c.bf16 %v1970_v41, %v1962_v39  ;;  %v1976_v50 = vld [vmem:[#allocation10 + $0x1d80] sm:$0xff] }
 0x2af   : > { %4459 = vmatprep.subr.bf16.mxu0 %v4458_v0  ;;  %4715 = vmatprep.subr.bf16.mxu1 %v4714_v1  ;;  %v1936_v0 = vld [vmem:[#allocation10 + $0x1c40] sm:$0xff]  ;;  %v4474_v1 = vpack.c.bf16 %v1937_v57, %v1929_v56  ;;  %v4730_v2 = vpack.c.bf16 %v1939_v59, %v1931_v58  ;;  %v1986_v56 = vld [vmem:[#allocation10 + $0x1dd0] sm:$0xff]  ;;  %v1993_v57 = vld [vmem:[#allocation10 + $0x1e08] sm:$0xff] }
 0x2b0   : > { %v2001_v58 = vld [vmem:[#allocation10 + $0x1e48] sm:$0xff]  ;;  %v1995_v59 = vld [vmem:[#allocation10 + $0x1e18] sm:$0xff] }
 0x2b2   : > { %4461 = vmatpush1.bf16.msra.mxu0 %v4460_v7  ;;  %4717 = vmatpush1.bf16.msra.mxu1 %v4716_v38  ;;  %v1955_v7 = vld [vmem:[#allocation10 + $0x1cd8] sm:$0xff]  ;;  %v4476_v38 = vpack.c.bf16 %v1936_v0, %v1928_v62  ;;  %v4744_v62 = vpack.c.bf16 %v1986_v56, %v1978_v54  ;;  %v1992_v0 = vld [vmem:[#allocation10 + $0x1e00] sm:$0xff] }
 0x2b3   : > { %4463 = vmatprep.subr.bf16.mxu0 %v4462_v11  ;;  %4719 = vmatprep.subr.bf16.mxu1 %v4718_v13  ;;  %v1952_v11 = vld [vmem:[#allocation10 + $0x1cc0] sm:$0xff]  ;;  %v4478_v13 = vpack.c.bf16 %v1953_v6, %v1945_v5  ;;  %v4734_v15 = vpack.c.bf16 %v1955_v7, %v1947_v63  ;;  %v2002_v5 = vld [vmem:[#allocation10 + $0x1e50] sm:$0xff]  ;;  %v2009_v6 = vld [vmem:[#allocation10 + $0x1e88] sm:$0xff] }
 0x2b4   : > { %v2017_v63 = vld [vmem:[#allocation10 + $0x1ec8] sm:$0xff]  ;;  %v2011_v7 = vld [vmem:[#allocation10 + $0x1e98] sm:$0xff] }
 0x2b6   : > { %4465 = vmatpush1.bf16.msra.mxu0 %v4464_v27  ;;  %4721 = vmatpush1.bf16.msra.mxu1 %v4720_v28  ;;  %v1971_v27 = vld [vmem:[#allocation10 + $0x1d58] sm:$0xff]  ;;  %v4480_v28 = vpack.c.bf16 %v1952_v11, %v1944_v10  ;;  %v4748_v10 = vpack.c.bf16 %v2002_v5, %v1994_v4  ;;  %v2008_v11 = vld [vmem:[#allocation10 + $0x1e80] sm:$0xff] }
 0x2b7   : > { %4467 = vmatprep.subr.bf16.mxu0 %v4466_v31  ;;  %4723 = vmatprep.subr.bf16.mxu1 %v4722_v33  ;;  %v1968_v31 = vld [vmem:[#allocation10 + $0x1d40] sm:$0xff]  ;;  %v4482_v33 = vpack.c.bf16 %v1969_v23, %v1961_v22  ;;  %v4738_v36 = vpack.c.bf16 %v1971_v27, %v1963_v21  ;;  %v2018_v22 = vld [vmem:[#allocation10 + $0x1ed0] sm:$0xff]  ;;  %v2025_v23 = vld [vmem:[#allocation10 + $0x1f08] sm:$0xff] }
 0x2b8   : > { %v2033_v21 = vld [vmem:[#allocation10 + $0x1f48] sm:$0xff]  ;;  %v2027_v27 = vld [vmem:[#allocation10 + $0x1f18] sm:$0xff]  ;;  %v1036_v5 = vld [vmem:[#allocation10 + $0x20] sm:$0xff] }
 0x2b9   : > { %v4498_v39 = vpack.c.bf16 %v2033_v21, %v2025_v23 }
 0x2ba   : > { %4469 = vmatpush1.bf16.msra.mxu0 %v4468_v46  ;;  %4725 = vmatpush1.bf16.msra.mxu1 %v4724_v47  ;;  %v1987_v46 = vld [vmem:[#allocation10 + $0x1dd8] sm:$0xff]  ;;  %v4484_v47 = vpack.c.bf16 %v1968_v31, %v1960_v30  ;;  %v4752_v30 = vpack.c.bf16 %v2018_v22, %v2010_v19  ;;  %v2024_v31 = vld [vmem:[#allocation10 + $0x1f00] sm:$0xff]  ;;  %v1054_v22 = vld [vmem:[#allocation10 + $0xb0] sm:$0xff] }
 0x2bb   : > { %4471 = vmatprep.subr.bf16.mxu0 %v4470_v51  ;;  %4727 = vmatprep.subr.bf16.mxu1 %v4726_v52  ;;  %v1984_v51 = vld [vmem:[#allocation10 + $0x1dc0] sm:$0xff]  ;;  %v4486_v52 = vpack.c.bf16 %v1985_v44, %v1977_v43  ;;  %v4742_v53 = vpack.c.bf16 %v1987_v46, %v1979_v45  ;;  %v2026_v43 = vld [vmem:[#allocation10 + $0x1f10] sm:$0xff]  ;;  %v2041_v45 = vld [vmem:[#allocation10 + $0x1f88] sm:$0xff] }
 0x2bc   : > { %v2034_v44 = vld [vmem:[#allocation10 + $0x1f50] sm:$0xff]  ;;  %v2049_v46 = vld [vmem:[#allocation10 + $0x1fc8] sm:$0xff]  ;;  %v1060_v19 = vld [vmem:[#allocation10 + $0xe0] sm:$0xff] }
 0x2bd   : > { %v4502_v56 = vpack.c.bf16 %v2049_v46, %v2041_v45  ;;  %v1070_v45 = vld [vmem:[#allocation10 + $0x130] sm:$0xff] }
 0x2be   : > { %4473 = vmatpush1.bf16.msra.mxu0 %v4472_v60  ;;  %4729 = vmatpush1.bf16.msra.mxu1 %v4728_v61  ;;  %v2003_v60 = vld [vmem:[#allocation10 + $0x1e58] sm:$0xff]  ;;  %v4488_v61 = vpack.c.bf16 %v1984_v51, %v1976_v50  ;;  %v4756_v51 = vpack.c.bf16 %v2034_v44, %v2026_v43  ;;  %v1068_v43 = vld [vmem:[#allocation10 + $0x120] sm:$0xff] }
 0x2bf   : > { %4475 = vmatprep.subr.bf16.mxu0 %v4474_v1  ;;  %4731 = vmatprep.subr.bf16.mxu1 %v4730_v2  ;;  %v2000_v1 = vld [vmem:[#allocation10 + $0x1e40] sm:$0xff]  ;;  %v4490_v2 = vpack.c.bf16 %v2001_v58, %v1993_v57  ;;  %v4746_v3 = vpack.c.bf16 %v2003_v60, %v1995_v59  ;;  %v2042_v58 = vld [vmem:[#allocation10 + $0x1f90] sm:$0xff]  ;;  %v1037_v60 = vld [vmem:[#allocation10 + $0x28] sm:$0xff] }
 0x2c0   : > { %v2050_v59 = vld [vmem:[#allocation10 + $0x1fd0] sm:$0xff]  ;;  %v1076_v44 = vld [vmem:[#allocation10 + $0x160] sm:$0xff] }
 0x2c2   : > { %4477 = vmatpush1.bf16.msra.mxu0 %v4476_v38  ;;  %4733 = vmatpush1.bf16.msra.mxu1 %v4732_v9  ;;  %v2019_v38 = vld [vmem:[#allocation10 + $0x1ed8] sm:$0xff]  ;;  %v4492_v9 = vpack.c.bf16 %v2000_v1, %v1992_v0 }
 0x2c3   : > { %4479 = vmatprep.subr.bf16.mxu0 %v4478_v13  ;;  %4735 = vmatprep.subr.bf16.mxu1 %v4734_v15  ;;  %v2016_v13 = vld [vmem:[#allocation10 + $0x1ec0] sm:$0xff]  ;;  %v4494_v15 = vpack.c.bf16 %v2017_v63, %v2009_v6  ;;  %v4750_v42 = vpack.c.bf16 %v2019_v38, %v2011_v7  ;;  %v1047_v0 = vld [vmem:[#allocation10 + $0x78] sm:$0xff]  ;;  %v1038_v63 = vld [vmem:[#allocation10 + $0x30] sm:$0xff] }
 0x2c4   : > { %v1044_v6 = vld [vmem:[#allocation10 + $0x60] sm:$0xff]  ;;  %v1046_v7 = vld [vmem:[#allocation10 + $0x70] sm:$0xff]  ;;  %v1053_v38 = vld [vmem:[#allocation10 + $0xa8] sm:$0xff] }
 0x2c6   : > { %4481 = vmatpush1.bf16.msra.mxu0 %v4480_v28  ;;  %4737 = vmatpush1.bf16.msra.mxu1 %v4736_v29  ;;  %v2035_v28 = vld [vmem:[#allocation10 + $0x1f58] sm:$0xff]  ;;  %v4496_v29 = vpack.c.bf16 %v2016_v13, %v2008_v11  ;;  %v4764_v13 = vpack.c.bf16 %v1044_v6, %v1036_v5  ;;  %v1108_v5 = vld [vmem:[#allocation10 + $0x260] sm:$0xff]  ;;  %v1102_v6 = vld [vmem:[#allocation10 + $0x230] sm:$0xff] }
 0x2c7   : > { %4483 = vmatprep.subr.bf16.mxu0 %v4482_v33  ;;  %4739 = vmatprep.subr.bf16.mxu1 %v4738_v36  ;;  %v2032_v33 = vld [vmem:[#allocation10 + $0x1f40] sm:$0xff]  ;;  %v726_v36 = vsub.s32 6, %v6267_v49  ;;  %v4754_v41 = vpack.c.bf16 %v2035_v28, %v2027_v27  ;;  %v1063_v11 = vld [vmem:[#allocation10 + $0xf8] sm:$0xff]  ;;  %v1062_v27 = vld [vmem:[#allocation10 + $0xf0] sm:$0xff] }
 0x2c8   : > { %v4500_v50 = vpack.c.bf16 %v2032_v33, %v2024_v31  ;;  %v1069_v28 = vld [vmem:[#allocation10 + $0x128] sm:$0xff]  ;;  %v1079_v31 = vld [vmem:[#allocation10 + $0x178] sm:$0xff] }
 0x2c9   : > { %v727_v54 = vrot.slane %v6322_v35, %v726_v36 }
 0x2ca   : > { %4485 = vmatpush1.bf16.msra.mxu0 %v4484_v47  ;;  %4741 = vmatpush1.bf16.msra.mxu1 %v4740_v48  ;;  %v2043_v47 = vld [vmem:[#allocation10 + $0x1f98] sm:$0xff] }
 0x2cb   : > { %4487 = vmatprep.subr.bf16.mxu0 %v4486_v52  ;;  %4743 = vmatprep.subr.bf16.mxu1 %v4742_v53  ;;  %v2051_v48 = vld [vmem:[#allocation10 + $0x1fd8] sm:$0xff]  ;;  %v2040_v52 = vld [vmem:[#allocation10 + $0x1f80] sm:$0xff] }
 0x2cc   : > { %v2048_v53 = vld [vmem:[#allocation10 + $0x1fc0] sm:$0xff]  ;;  %v4758_v57 = vpack.c.bf16 %v2051_v48, %v2043_v47  ;;  %v1078_v47 = vld [vmem:[#allocation10 + $0x170] sm:$0xff]  ;;  %v1085_v48 = vld [vmem:[#allocation10 + $0x1a8] sm:$0xff] }
 0x2cd   : > { %v4504_v1 = vpack.c.bf16 %v2048_v53, %v2040_v52  ;;  %v1095_v52 = vld [vmem:[#allocation10 + $0x1f8] sm:$0xff]  ;;  %v4772_v53 = vpack.c.bf16 %v1076_v44, %v1068_v43  ;;  %v1132_v43 = vld [vmem:[#allocation10 + $0x320] sm:$0xff] }
 0x2ce   : > { %4489 = vmatpush1.bf16.msra.mxu0 %v4488_v61  ;;  %4745 = vmatpush1.bf16.msra.mxu1 %v4744_v62  ;;  %v1045_v61 = vld [vmem:[#allocation10 + $0x68] sm:$0xff]  ;;  %v1039_v62 = vld [vmem:[#allocation10 + $0x38] sm:$0xff]  ;;  %v1140_v44 = vld [vmem:[#allocation10 + $0x360] sm:$0xff] }
 0x2cf   : > { %4491 = vmatprep.subr.bf16.mxu0 %v4490_v2  ;;  %4747 = vmatprep.subr.bf16.mxu1 %v4746_v3  ;;  %v4760_v2 = vpack.c.bf16 %v2050_v59, %v2042_v58  ;;  %v1020_v3 = vadd.f32 %v6316_v20, %v727_v54  ;;  %v4762_v4 = vpack.c.bf16 %v1045_v61, %v1037_v60  ;;  %v1086_v58 = vld [vmem:[#allocation10 + $0x1b0] sm:$0xff]  ;;  %v1101_v61 = vld [vmem:[#allocation10 + $0x228] sm:$0xff] }
 0x2d0   : > { %v5018_v35 = vpack.c.bf16 %v1047_v0, %v1039_v62  ;;  %v5020_v20 = vpack.c.bf16 %v1046_v7, %v1038_v63  ;;  %v5028_v54 = vpack.c.bf16 %v1078_v47, %v1070_v45  ;;  %v1094_v60 = vld [vmem:[#allocation10 + $0x1f0] sm:$0xff]  ;;  %v1109_v62 = vld [vmem:[#allocation10 + $0x268] sm:$0xff]  ;;  %v1103_v0 = vld [vmem:[#allocation10 + $0x238] sm:$0xff] }
 0x2d1   : > { %v1110_v7 = vld [vmem:[#allocation10 + $0x270] sm:$0xff] }
 0x2d2   : > { %4493 = vmatpush1.bf16.msra.mxu0 %v4492_v9  ;;  %4749 = vmatpush1.bf16.msra.mxu1 %v4748_v10  ;;  %v1061_v9 = vld [vmem:[#allocation10 + $0xe8] sm:$0xff]  ;;  %v1055_v10 = vld [vmem:[#allocation10 + $0xb8] sm:$0xff]  ;;  %v1134_v45 = vld [vmem:[#allocation10 + $0x330] sm:$0xff] }
 0x2d3   : > { %4495 = vmatprep.subr.bf16.mxu0 %v4494_v15  ;;  %4751 = vmatprep.subr.bf16.mxu1 %v4750_v42  ;;  %v6345_v15 = vmax.f32 %v1020_v3, 0.0  ;;  %v1052_v42 = vld [vmem:[#allocation10 + $0xa0] sm:$0xff]  ;;  %v4766_v23 = vpack.c.bf16 %v1061_v9, %v1053_v38  ;;  %v5022_v21 = vpack.c.bf16 %v1063_v11, %v1055_v10  ;;  %v5032_v3 = vpack.c.bf16 %v1094_v60, %v1086_v58  ;;  %v1117_v38 = vld [vmem:[#allocation10 + $0x2a8] sm:$0xff]  ;;  %v1119_v10 = vld [vmem:[#allocation10 + $0x2b8] sm:$0xff] }
 0x2d4   : > { %v4768_v33 = vpack.c.bf16 %v1060_v19, %v1052_v42  ;;  %v1125_v9 = vld [vmem:[#allocation10 + $0x2e8] sm:$0xff]  ;;  %v1127_v11 = vld [vmem:[#allocation10 + $0x2f8] sm:$0xff]  ;;  %v1116_v19 = vld [vmem:[#allocation10 + $0x2a0] sm:$0xff] }
 0x2d5   : > { %v4782_v42 = vpack.c.bf16 %v1125_v9, %v1117_v38  ;;  %v1142_v47 = vld [vmem:[#allocation10 + $0x370] sm:$0xff]  ;;  %v1181_v38 = vld [vmem:[#allocation10 + $0x4a8] sm:$0xff] }
 0x2d6   : > { %4497 = vmatpush1.bf16.msra.mxu0 %v4496_v29  ;;  %4753 = vmatpush1.bf16.msra.mxu1 %v4752_v30  ;;  %v1077_v29 = vld [vmem:[#allocation10 + $0x168] sm:$0xff]  ;;  %v1071_v30 = vld [vmem:[#allocation10 + $0x138] sm:$0xff]  ;;  %v1150_v58 = vld [vmem:[#allocation10 + $0x3b0] sm:$0xff] }
 0x2d7   : > { %4499 = vmatprep.subr.bf16.mxu0 %v4498_v39  ;;  %4755 = vmatprep.subr.bf16.mxu1 %v4754_v41  ;;  %v5024_v39 = vpack.c.bf16 %v1062_v27, %v1054_v22  ;;  %v4770_v41 = vpack.c.bf16 %v1077_v29, %v1069_v28  ;;  %v5026_v46 = vpack.c.bf16 %v1079_v31, %v1071_v30  ;;  %v1124_v22 = vld [vmem:[#allocation10 + $0x2e0] sm:$0xff]  ;;  %v1126_v27 = vld [vmem:[#allocation10 + $0x2f0] sm:$0xff]  ;;  %v1133_v28 = vld [vmem:[#allocation10 + $0x328] sm:$0xff] }
 0x2d8   : > { %v1141_v29 = vld [vmem:[#allocation10 + $0x368] sm:$0xff]  ;;  %v1135_v30 = vld [vmem:[#allocation10 + $0x338] sm:$0xff]  ;;  %v1158_v60 = vld [vmem:[#allocation10 + $0x3f0] sm:$0xff] }
 0x2d9   : > { %v1143_v31 = vld [vmem:[#allocation10 + $0x378] sm:$0xff]  ;;  %v1189_v9 = vld [vmem:[#allocation10 + $0x4e8] sm:$0xff] }
 0x2da   : > { %4501 = vmatpush1.bf16.msra.mxu0 %v4500_v50  ;;  %4757 = vmatpush1.bf16.msra.mxu1 %v4756_v51  ;;  %v1093_v50 = vld [vmem:[#allocation10 + $0x1e8] sm:$0xff]  ;;  %v1087_v51 = vld [vmem:[#allocation10 + $0x1b8] sm:$0xff] }
 0x2db   : > { %4503 = vmatprep.subr.bf16.mxu0 %v4502_v56  ;;  %4759 = vmatprep.subr.bf16.mxu1 %v4758_v57  ;;  %v4774_v56 = vpack.c.bf16 %v1093_v50, %v1085_v48  ;;  %v1092_v57 = vld [vmem:[#allocation10 + $0x1e0] sm:$0xff]  ;;  %v5030_v59 = vpack.c.bf16 %v1095_v52, %v1087_v51  ;;  %v1149_v48 = vld [vmem:[#allocation10 + $0x3a8] sm:$0xff]  ;;  %v1151_v51 = vld [vmem:[#allocation10 + $0x3b8] sm:$0xff] }
 0x2dc   : > { %v1157_v50 = vld [vmem:[#allocation10 + $0x3e8] sm:$0xff]  ;;  %v1159_v52 = vld [vmem:[#allocation10 + $0x3f8] sm:$0xff] }
 0x2de   : > { %4505 = vmatpush1.bf16.msra.mxu0 %v4504_v1  ;;  %4761 = vmatpush1.bf16.msra.mxu1 %v4760_v2  ;;  %v1111_v1 = vld [vmem:[#allocation10 + $0x278] sm:$0xff] }
 0x2df   : > { %4763 = vmatprep.subr.bf16.mxu0 %v4762_v4  ;;  %5019 = vmatprep.subr.bf16.mxu1 %v5018_v35  ;;  %v4778_v4 = vpack.c.bf16 %v1109_v62, %v1101_v61  ;;  %v1100_v35 = vld [vmem:[#allocation10 + $0x220] sm:$0xff]  ;;  %v5034_v63 = vpack.c.bf16 %v1111_v1, %v1103_v0  ;;  %v1165_v61 = vld [vmem:[#allocation10 + $0x428] sm:$0xff]  ;;  %v1167_v0 = vld [vmem:[#allocation10 + $0x438] sm:$0xff] }
 0x2e0   : > { %v1173_v62 = vld [vmem:[#allocation10 + $0x468] sm:$0xff]  ;;  %v1175_v1 = vld [vmem:[#allocation10 + $0x478] sm:$0xff] }
 0x2e1   : > { %2376 = vmatmul.mubr.f32.vlgmr.msra.gmra.mrb[4].mxu0 %v6345_v15  ;;  %2660 = vmatmul.mubr.f32.vlgmr.msra.gmra.mrb[4].mxu1 %v6345_v15 }
 0x2e2   : > { %4765 = vmatpush1.bf16.msra.mxu0 %v4764_v13  ;;  %2730 = vmatprep.mubr.f32.mxu0 %v6279_v32  ;;  %v4780_v13 = vpack.c.bf16 %v1108_v5, %v1100_v35  ;;  %v1164_v35 = vld [vmem:[#allocation10 + $0x420] sm:$0xff] }
 0x2e3   : > { %5021 = vmatpush1.bf16.msra.mxu1 %v5020_v20  ;;  %3014 = vmatprep.mubr.f32.mxu1 %v6279_v32  ;;  %v1084_v32 = vld [vmem:[#allocation10 + $0x1a0] sm:$0xff]  ;;  %v5036_v20 = vpack.c.bf16 %v1110_v7, %v1102_v6  ;;  %v1166_v6 = vld [vmem:[#allocation10 + $0x430] sm:$0xff] }
 0x2e4   : > { %4767 = vmatprep.subr.bf16.mxu0 %v4766_v23  ;;  %5023 = vmatprep.subr.bf16.mxu1 %v5022_v21  ;;  %v4776_v2 = vpack.c.bf16 %v1092_v57, %v1084_v32  ;;  %v1118_v23 = vld [vmem:[#allocation10 + $0x2b0] sm:$0xff]  ;;  %v5038_v21 = vpack.c.bf16 %v1127_v11, %v1119_v10  ;;  %v1148_v32 = vld [vmem:[#allocation10 + $0x3a0] sm:$0xff]  ;;  %v1183_v10 = vld [vmem:[#allocation10 + $0x4b8] sm:$0xff] }
 0x2e5   : > { %v1156_v57 = vld [vmem:[#allocation10 + $0x3e0] sm:$0xff]  ;;  %v1174_v7 = vld [vmem:[#allocation10 + $0x470] sm:$0xff]  ;;  %v1191_v11 = vld [vmem:[#allocation10 + $0x4f8] sm:$0xff] }
 0x2e6   : > { %4769 = vmatpush1.bf16.msra.mxu0 %v4768_v33  ;;  %v4784_v33 = vpack.c.bf16 %v1124_v22, %v1116_v19  ;;  %v1172_v5 = vld [vmem:[#allocation10 + $0x460] sm:$0xff] }
 0x2e7   : > { %5025 = vmatpush1.bf16.msra.mxu1 %v5024_v39  ;;  %4771 = vmatprep.subr.bf16.mxu0 %v4770_v41  ;;  %v5040_v39 = vpack.c.bf16 %v1126_v27, %v1118_v23  ;;  %v4786_v41 = vpack.c.bf16 %v1141_v29, %v1133_v28  ;;  %v1180_v19 = vld [vmem:[#allocation10 + $0x4a0] sm:$0xff]  ;;  %v1182_v23 = vld [vmem:[#allocation10 + $0x4b0] sm:$0xff]  ;;  %v1197_v28 = vld [vmem:[#allocation10 + $0x528] sm:$0xff] }
 0x2e8   : > { %5027 = vmatprep.subr.bf16.mxu1 %v5026_v46  ;;  %v5042_v46 = vpack.c.bf16 %v1143_v31, %v1135_v30  ;;  %v1188_v22 = vld [vmem:[#allocation10 + $0x4e0] sm:$0xff]  ;;  %v1190_v27 = vld [vmem:[#allocation10 + $0x4f0] sm:$0xff]  ;;  %v1205_v29 = vld [vmem:[#allocation10 + $0x568] sm:$0xff] }
 0x2e9   : > { %v1199_v30 = vld [vmem:[#allocation10 + $0x538] sm:$0xff] }
 0x2ea   : > { %4773 = vmatpush1.bf16.msra.mxu0 %v4772_v53  ;;  %v4788_v53 = vpack.c.bf16 %v1140_v44, %v1132_v43  ;;  %v1207_v31 = vld [vmem:[#allocation10 + $0x578] sm:$0xff]  ;;  %v1196_v43 = vld [vmem:[#allocation10 + $0x520] sm:$0xff] }
 0x2eb   : > { %5029 = vmatpush1.bf16.msra.mxu1 %v5028_v54  ;;  %4775 = vmatprep.subr.bf16.mxu0 %v4774_v56  ;;  %v5044_v54 = vpack.c.bf16 %v1142_v47, %v1134_v45  ;;  %v4790_v56 = vpack.c.bf16 %v1157_v50, %v1149_v48  ;;  %v1204_v44 = vld [vmem:[#allocation10 + $0x560] sm:$0xff]  ;;  %v1198_v45 = vld [vmem:[#allocation10 + $0x530] sm:$0xff]  ;;  %v1213_v48 = vld [vmem:[#allocation10 + $0x5a8] sm:$0xff] }
 0x2ec   : > { %5031 = vmatprep.subr.bf16.mxu1 %v5030_v59  ;;  %v5046_v59 = vpack.c.bf16 %v1159_v52, %v1151_v51  ;;  %v1206_v47 = vld [vmem:[#allocation10 + $0x570] sm:$0xff]  ;;  %v1221_v50 = vld [vmem:[#allocation10 + $0x5e8] sm:$0xff]  ;;  %v1215_v51 = vld [vmem:[#allocation10 + $0x5b8] sm:$0xff] }
 0x2ed   : > { %v1223_v52 = vld [vmem:[#allocation10 + $0x5f8] sm:$0xff] }
 0x2ee   : > { %4777 = vmatpush1.bf16.msra.mxu0 %v4776_v2  ;;  %v4792_v2 = vpack.c.bf16 %v1156_v57, %v1148_v32  ;;  %v1212_v32 = vld [vmem:[#allocation10 + $0x5a0] sm:$0xff] }
 0x2ef   : > { %5033 = vmatpush1.bf16.msra.mxu1 %v5032_v3  ;;  %4779 = vmatprep.subr.bf16.mxu0 %v4778_v4  ;;  %v5048_v3 = vpack.c.bf16 %v1158_v60, %v1150_v58  ;;  %v4794_v4 = vpack.c.bf16 %v1173_v62, %v1165_v61  ;;  %v1220_v57 = vld [vmem:[#allocation10 + $0x5e0] sm:$0xff]  ;;  %v1214_v58 = vld [vmem:[#allocation10 + $0x5b0] sm:$0xff]  ;;  %v1229_v61 = vld [vmem:[#allocation10 + $0x628] sm:$0xff] }
 0x2f0   : > { %5035 = vmatprep.subr.bf16.mxu1 %v5034_v63  ;;  %v5050_v63 = vpack.c.bf16 %v1175_v1, %v1167_v0  ;;  %v1222_v60 = vld [vmem:[#allocation10 + $0x5f0] sm:$0xff]  ;;  %v1237_v62 = vld [vmem:[#allocation10 + $0x668] sm:$0xff]  ;;  %v1231_v0 = vld [vmem:[#allocation10 + $0x638] sm:$0xff] }
 0x2f1   : > { %v1239_v1 = vld [vmem:[#allocation10 + $0x678] sm:$0xff] }
 0x2f2   : > { %4781 = vmatpush1.bf16.msra.mxu0 %v4780_v13  ;;  %v4796_v13 = vpack.c.bf16 %v1172_v5, %v1164_v35  ;;  %v1228_v35 = vld [vmem:[#allocation10 + $0x620] sm:$0xff] }
 0x2f3   : > { %5037 = vmatpush1.bf16.msra.mxu1 %v5036_v20  ;;  %4783 = vmatprep.subr.bf16.mxu0 %v4782_v42  ;;  %v5052_v20 = vpack.c.bf16 %v1174_v7, %v1166_v6  ;;  %v4798_v42 = vpack.c.bf16 %v1189_v9, %v1181_v38  ;;  %v1236_v5 = vld [vmem:[#allocation10 + $0x660] sm:$0xff]  ;;  %v1230_v6 = vld [vmem:[#allocation10 + $0x630] sm:$0xff]  ;;  %v1245_v38 = vld [vmem:[#allocation10 + $0x6a8] sm:$0xff] }
 0x2f4   : > { %5039 = vmatprep.subr.bf16.mxu1 %v5038_v21  ;;  %v5054_v21 = vpack.c.bf16 %v1191_v11, %v1183_v10  ;;  %v1238_v7 = vld [vmem:[#allocation10 + $0x670] sm:$0xff]  ;;  %v1253_v9 = vld [vmem:[#allocation10 + $0x6e8] sm:$0xff]  ;;  %v1247_v10 = vld [vmem:[#allocation10 + $0x6b8] sm:$0xff] }
 0x2f5   : > { %v1255_v11 = vld [vmem:[#allocation10 + $0x6f8] sm:$0xff] }
 0x2f6   : > { %4785 = vmatpush1.bf16.msra.mxu0 %v4784_v33  ;;  %v4800_v33 = vpack.c.bf16 %v1188_v22, %v1180_v19  ;;  %v1244_v19 = vld [vmem:[#allocation10 + $0x6a0] sm:$0xff] }
 0x2f7   : > { %5041 = vmatpush1.bf16.msra.mxu1 %v5040_v39  ;;  %4787 = vmatprep.subr.bf16.mxu0 %v4786_v41  ;;  %v5056_v39 = vpack.c.bf16 %v1190_v27, %v1182_v23  ;;  %v4802_v41 = vpack.c.bf16 %v1205_v29, %v1197_v28  ;;  %v1252_v22 = vld [vmem:[#allocation10 + $0x6e0] sm:$0xff]  ;;  %v1246_v23 = vld [vmem:[#allocation10 + $0x6b0] sm:$0xff]  ;;  %v1261_v28 = vld [vmem:[#allocation10 + $0x728] sm:$0xff] }
 0x2f8   : > { %5043 = vmatprep.subr.bf16.mxu1 %v5042_v46  ;;  %v5058_v46 = vpack.c.bf16 %v1207_v31, %v1199_v30  ;;  %v1254_v27 = vld [vmem:[#allocation10 + $0x6f0] sm:$0xff]  ;;  %v1269_v29 = vld [vmem:[#allocation10 + $0x768] sm:$0xff]  ;;  %v1263_v30 = vld [vmem:[#allocation10 + $0x738] sm:$0xff] }
 0x2f9   : > { %v1271_v31 = vld [vmem:[#allocation10 + $0x778] sm:$0xff] }
 0x2fa   : > { %4789 = vmatpush1.bf16.msra.mxu0 %v4788_v53  ;;  %v4804_v53 = vpack.c.bf16 %v1204_v44, %v1196_v43  ;;  %v1260_v43 = vld [vmem:[#allocation10 + $0x720] sm:$0xff] }
 0x2fb   : > { %5045 = vmatpush1.bf16.msra.mxu1 %v5044_v54  ;;  %4791 = vmatprep.subr.bf16.mxu0 %v4790_v56  ;;  %v5060_v54 = vpack.c.bf16 %v1206_v47, %v1198_v45  ;;  %v4806_v56 = vpack.c.bf16 %v1221_v50, %v1213_v48  ;;  %v1268_v44 = vld [vmem:[#allocation10 + $0x760] sm:$0xff]  ;;  %v1262_v45 = vld [vmem:[#allocation10 + $0x730] sm:$0xff]  ;;  %v1277_v48 = vld [vmem:[#allocation10 + $0x7a8] sm:$0xff] }
 0x2fc   : > { %5047 = vmatprep.subr.bf16.mxu1 %v5046_v59  ;;  %v5062_v59 = vpack.c.bf16 %v1223_v52, %v1215_v51  ;;  %v1270_v47 = vld [vmem:[#allocation10 + $0x770] sm:$0xff]  ;;  %v1285_v50 = vld [vmem:[#allocation10 + $0x7e8] sm:$0xff]  ;;  %v1279_v51 = vld [vmem:[#allocation10 + $0x7b8] sm:$0xff] }
 0x2fd   : > { %v1287_v52 = vld [vmem:[#allocation10 + $0x7f8] sm:$0xff] }
 0x2fe   : > { %4793 = vmatpush1.bf16.msra.mxu0 %v4792_v2  ;;  %v4808_v2 = vpack.c.bf16 %v1220_v57, %v1212_v32  ;;  %v1276_v32 = vld [vmem:[#allocation10 + $0x7a0] sm:$0xff] }
 0x2ff   : > { %5049 = vmatpush1.bf16.msra.mxu1 %v5048_v3  ;;  %4795 = vmatprep.subr.bf16.mxu0 %v4794_v4  ;;  %v5064_v3 = vpack.c.bf16 %v1222_v60, %v1214_v58  ;;  %v4810_v4 = vpack.c.bf16 %v1237_v62, %v1229_v61  ;;  %v1284_v57 = vld [vmem:[#allocation10 + $0x7e0] sm:$0xff]  ;;  %v1278_v58 = vld [vmem:[#allocation10 + $0x7b0] sm:$0xff]  ;;  %v1293_v61 = vld [vmem:[#allocation10 + $0x828] sm:$0xff] }
 0x300   : > { %5051 = vmatprep.subr.bf16.mxu1 %v5050_v63  ;;  %v5066_v63 = vpack.c.bf16 %v1239_v1, %v1231_v0  ;;  %v1286_v60 = vld [vmem:[#allocation10 + $0x7f0] sm:$0xff]  ;;  %v1301_v62 = vld [vmem:[#allocation10 + $0x868] sm:$0xff]  ;;  %v1295_v0 = vld [vmem:[#allocation10 + $0x838] sm:$0xff] }
 0x301   : > { %v1303_v1 = vld [vmem:[#allocation10 + $0x878] sm:$0xff] }
 0x302   : > { %4797 = vmatpush1.bf16.msra.mxu0 %v4796_v13  ;;  %v4812_v13 = vpack.c.bf16 %v1236_v5, %v1228_v35  ;;  %v1292_v35 = vld [vmem:[#allocation10 + $0x820] sm:$0xff] }
 0x303   : > { %5053 = vmatpush1.bf16.msra.mxu1 %v5052_v20  ;;  %4799 = vmatprep.subr.bf16.mxu0 %v4798_v42  ;;  %v5068_v20 = vpack.c.bf16 %v1238_v7, %v1230_v6  ;;  %v4814_v42 = vpack.c.bf16 %v1253_v9, %v1245_v38  ;;  %v1300_v5 = vld [vmem:[#allocation10 + $0x860] sm:$0xff]  ;;  %v5082_v6 = vpack.c.bf16 %v1303_v1, %v1295_v0  ;;  %v1302_v7 = vld [vmem:[#allocation10 + $0x870] sm:$0xff]  ;;  %v1309_v38 = vld [vmem:[#allocation10 + $0x8a8] sm:$0xff] }
 0x304   : > { %5055 = vmatprep.subr.bf16.mxu1 %v5054_v21  ;;  %v5070_v21 = vpack.c.bf16 %v1255_v11, %v1247_v10  ;;  %v1317_v9 = vld [vmem:[#allocation10 + $0x8e8] sm:$0xff]  ;;  %v4828_v10 = vpack.c.bf16 %v1300_v5, %v1292_v35  ;;  %v1311_v11 = vld [vmem:[#allocation10 + $0x8b8] sm:$0xff]  ;;  %v1358_v35 = vld [vmem:[#allocation10 + $0xa30] sm:$0xff] }
 0x306   : > { %4801 = vmatpush1.bf16.msra.mxu0 %v4800_v33  ;;  %v4816_v33 = vpack.c.bf16 %v1252_v22, %v1244_v19  ;;  %v1316_v19 = vld [vmem:[#allocation10 + $0x8e0] sm:$0xff]  ;;  %v1310_v22 = vld [vmem:[#allocation10 + $0x8b0] sm:$0xff] }
 0x307   : > { %5057 = vmatpush1.bf16.msra.mxu1 %v5056_v39  ;;  %4803 = vmatprep.subr.bf16.mxu0 %v4802_v41  ;;  %v5072_v39 = vpack.c.bf16 %v1254_v27, %v1246_v23  ;;  %v4818_v41 = vpack.c.bf16 %v1269_v29, %v1261_v28  ;;  %v4830_v23 = vpack.c.bf16 %v1317_v9, %v1309_v38  ;;  %v1325_v27 = vld [vmem:[#allocation10 + $0x928] sm:$0xff]  ;;  %v1375_v38 = vld [vmem:[#allocation10 + $0xab8] sm:$0xff] }
 0x308   : > { %5059 = vmatprep.subr.bf16.mxu1 %v5058_v46  ;;  %v5074_v46 = vpack.c.bf16 %v1271_v31, %v1263_v30  ;;  %v1333_v28 = vld [vmem:[#allocation10 + $0x968] sm:$0xff]  ;;  %v1327_v30 = vld [vmem:[#allocation10 + $0x938] sm:$0xff] }
 0x309   : > { %v1335_v31 = vld [vmem:[#allocation10 + $0x978] sm:$0xff] }
 0x30a   : > { %4805 = vmatpush1.bf16.msra.mxu0 %v4804_v53  ;;  %v4820_v53 = vpack.c.bf16 %v1268_v44, %v1260_v43  ;;  %v1324_v43 = vld [vmem:[#allocation10 + $0x920] sm:$0xff]  ;;  %v1383_v9 = vld [vmem:[#allocation10 + $0xaf8] sm:$0xff] }
 0x30b   : > { %5061 = vmatpush1.bf16.msra.mxu1 %v5060_v54  ;;  %4807 = vmatprep.subr.bf16.mxu0 %v4806_v56  ;;  %v5076_v54 = vpack.c.bf16 %v1270_v47, %v1262_v45  ;;  %v4822_v56 = vpack.c.bf16 %v1285_v50, %v1277_v48  ;;  %v1332_v44 = vld [vmem:[#allocation10 + $0x960] sm:$0xff]  ;;  %v1326_v45 = vld [vmem:[#allocation10 + $0x930] sm:$0xff]  ;;  %v1341_v48 = vld [vmem:[#allocation10 + $0x9a8] sm:$0xff] }
 0x30c   : > { %5063 = vmatprep.subr.bf16.mxu1 %v5062_v59  ;;  %v5078_v59 = vpack.c.bf16 %v1287_v52, %v1279_v51  ;;  %v1334_v47 = vld [vmem:[#allocation10 + $0x970] sm:$0xff]  ;;  %v1349_v50 = vld [vmem:[#allocation10 + $0x9e8] sm:$0xff]  ;;  %v1343_v51 = vld [vmem:[#allocation10 + $0x9b8] sm:$0xff]  ;;  %v4836_v52 = vpack.c.bf16 %v1332_v44, %v1324_v43 }
 0x30d   : > { %v1390_v43 = vld [vmem:[#allocation10 + $0xb30] sm:$0xff] }
 0x30e   : > { %4809 = vmatpush1.bf16.msra.mxu0 %v4808_v2  ;;  %v4824_v2 = vpack.c.bf16 %v1284_v57, %v1276_v32  ;;  %v1348_v32 = vld [vmem:[#allocation10 + $0x9e0] sm:$0xff]  ;;  %v1342_v57 = vld [vmem:[#allocation10 + $0x9b0] sm:$0xff] }
 0x30f   : > { %5065 = vmatpush1.bf16.msra.mxu1 %v5064_v3  ;;  %4811 = vmatprep.subr.bf16.mxu0 %v4810_v4  ;;  %v5080_v3 = vpack.c.bf16 %v1286_v60, %v1278_v58  ;;  %v4826_v4 = vpack.c.bf16 %v1301_v62, %v1293_v61  ;;  %v1365_v60 = vld [vmem:[#allocation10 + $0xa68] sm:$0xff]  ;;  %v1359_v61 = vld [vmem:[#allocation10 + $0xa38] sm:$0xff] }
 0x310   : > { %5067 = vmatprep.subr.bf16.mxu1 %v5066_v63  ;;  %v1294_v63 = vld [vmem:[#allocation10 + $0x830] sm:$0xff]  ;;  %v1367_v62 = vld [vmem:[#allocation10 + $0xa78] sm:$0xff] }
 0x311   : > { %v5098_v5 = vpack.c.bf16 %v1367_v62, %v1359_v61 }
 0x312   : > { %4813 = vmatpush1.bf16.msra.mxu0 %v4812_v13  ;;  %v1319_v13 = vld [vmem:[#allocation10 + $0x8f8] sm:$0xff] }
 0x313   : > { %5069 = vmatpush1.bf16.msra.mxu1 %v5068_v20  ;;  %4815 = vmatprep.subr.bf16.mxu0 %v4814_v42  ;;  %v5084_v20 = vpack.c.bf16 %v1302_v7, %v1294_v63  ;;  %v1308_v42 = vld [vmem:[#allocation10 + $0x8a0] sm:$0xff]  ;;  %v5086_v29 = vpack.c.bf16 %v1319_v13, %v1311_v11  ;;  %v1373_v63 = vld [vmem:[#allocation10 + $0xaa8] sm:$0xff] }
 0x314   : > { %5071 = vmatprep.subr.bf16.mxu1 %v5070_v21  ;;  %v1318_v21 = vld [vmem:[#allocation10 + $0x8f0] sm:$0xff]  ;;  %v1381_v7 = vld [vmem:[#allocation10 + $0xae8] sm:$0xff] }
 0x315   : > { %v4846_v13 = vpack.c.bf16 %v1381_v7, %v1373_v63  ;;  %v1439_v63 = vld [vmem:[#allocation10 + $0xcb8] sm:$0xff] }
 0x316   : > { %4817 = vmatpush1.bf16.msra.mxu0 %v4816_v33  ;;  %v4832_v33 = vpack.c.bf16 %v1316_v19, %v1308_v42  ;;  %v1380_v42 = vld [vmem:[#allocation10 + $0xae0] sm:$0xff]  ;;  %v1374_v19 = vld [vmem:[#allocation10 + $0xab0] sm:$0xff]  ;;  %v1447_v7 = vld [vmem:[#allocation10 + $0xcf8] sm:$0xff] }
 0x317   : > { %5073 = vmatpush1.bf16.msra.mxu1 %v5072_v39  ;;  %4819 = vmatprep.subr.bf16.mxu0 %v4818_v41  ;;  %v5088_v39 = vpack.c.bf16 %v1318_v21, %v1310_v22  ;;  %v4834_v41 = vpack.c.bf16 %v1333_v28, %v1325_v27  ;;  %v5102_v22 = vpack.c.bf16 %v1383_v9, %v1375_v38  ;;  %v1389_v21 = vld [vmem:[#allocation10 + $0xb28] sm:$0xff]  ;;  %v1391_v28 = vld [vmem:[#allocation10 + $0xb38] sm:$0xff] }
 0x318   : > { %5075 = vmatprep.subr.bf16.mxu1 %v5074_v46  ;;  %v5090_v46 = vpack.c.bf16 %v1335_v31, %v1327_v30  ;;  %v1397_v27 = vld [vmem:[#allocation10 + $0xb68] sm:$0xff] }
 0x31a   : > { %4821 = vmatpush1.bf16.msra.mxu0 %v4820_v53  ;;  %v5092_v53 = vpack.c.bf16 %v1334_v47, %v1326_v45  ;;  %v1398_v45 = vld [vmem:[#allocation10 + $0xb70] sm:$0xff]  ;;  %v1413_v47 = vld [vmem:[#allocation10 + $0xbe8] sm:$0xff] }
 0x31b   : > { %5077 = vmatpush1.bf16.msra.mxu1 %v5076_v54  ;;  %4823 = vmatprep.subr.bf16.mxu0 %v4822_v56  ;;  %v4838_v54 = vpack.c.bf16 %v1349_v50, %v1341_v48  ;;  %v1340_v56 = vld [vmem:[#allocation10 + $0x9a0] sm:$0xff]  ;;  %v1407_v48 = vld [vmem:[#allocation10 + $0xbb8] sm:$0xff] }
 0x31c   : > { %5079 = vmatprep.subr.bf16.mxu1 %v5078_v59  ;;  %v1357_v59 = vld [vmem:[#allocation10 + $0xa28] sm:$0xff]  ;;  %v4840_v0 = vpack.c.bf16 %v1348_v32, %v1340_v56  ;;  %v1415_v50 = vld [vmem:[#allocation10 + $0xbf8] sm:$0xff]  ;;  %v1406_v56 = vld [vmem:[#allocation10 + $0xbb0] sm:$0xff] }
 0x31d   : > { %v5110_v32 = vpack.c.bf16 %v1415_v50, %v1407_v48 }
 0x31e   : > { %4825 = vmatpush1.bf16.msra.mxu0 %v4824_v2  ;;  %v4842_v2 = vpack.c.bf16 %v1365_v60, %v1357_v59  ;;  %v1423_v59 = vld [vmem:[#allocation10 + $0xc38] sm:$0xff] }
 0x31f   : > { %5081 = vmatpush1.bf16.msra.mxu1 %v5080_v3  ;;  %4827 = vmatprep.subr.bf16.mxu0 %v4826_v4  ;;  %v1356_v3 = vld [vmem:[#allocation10 + $0xa20] sm:$0xff]  ;;  %v1431_v60 = vld [vmem:[#allocation10 + $0xc78] sm:$0xff] }
 0x320   : > { %5083 = vmatprep.subr.bf16.mxu1 %v5082_v6  ;;  %v1364_v4 = vld [vmem:[#allocation10 + $0xa60] sm:$0xff]  ;;  %v1366_v6 = vld [vmem:[#allocation10 + $0xa70] sm:$0xff] }
 0x321   : > { %2731 = vmatmul.mubr.f32.vlgmr.msra.gmra.mrb[6].mxu0 %v6281_v37  ;;  %v5100_v11 = vpack.c.bf16 %v1366_v6, %v1358_v35  ;;  %v1430_v35 = vld [vmem:[#allocation10 + $0xc70] sm:$0xff]  ;;  %v1445_v6 = vld [vmem:[#allocation10 + $0xce8] sm:$0xff] }
 0x322   : > { %3015 = vmatmul.mubr.f32.vlgmr.msra.gmra.mrb[6].mxu1 %v6281_v37  ;;  %4829 = vmatpush1.bf16.msra.mxu0 %v4828_v10  ;;  %v1351_v37 = vld [vmem:[#allocation10 + $0x9f8] sm:$0xff]  ;;  %v4844_v10 = vpack.c.bf16 %v1364_v4, %v1356_v3  ;;  %v1422_v3 = vld [vmem:[#allocation10 + $0xc30] sm:$0xff]  ;;  %v5114_v4 = vpack.c.bf16 %v1431_v60, %v1423_v59 }
 0x323   : > { %2801 = vmatprep.mubr.f32.mxu0 %v6293_v55  ;;  %5085 = vmatpush1.bf16.msra.mxu1 %v5084_v20  ;;  %v5094_v58 = vpack.c.bf16 %v1351_v37, %v1343_v51  ;;  %v1372_v20 = vld [vmem:[#allocation10 + $0xaa0] sm:$0xff]  ;;  %v5108_v37 = vpack.c.bf16 %v1398_v45, %v1390_v43  ;;  %v5116_v9 = vpack.c.bf16 %v1430_v35, %v1422_v3  ;;  %v1462_v43 = vld [vmem:[#allocation10 + $0xd70] sm:$0xff]  ;;  %v1477_v45 = vld [vmem:[#allocation10 + $0xde8] sm:$0xff] }
 0x324   : > { %3085 = vmatprep.mubr.f32.mxu1 %v6293_v55  ;;  %4831 = vmatprep.subr.bf16.mxu0 %v4830_v23  ;;  %v1350_v55 = vld [vmem:[#allocation10 + $0x9f0] sm:$0xff]  ;;  %v4848_v30 = vpack.c.bf16 %v1380_v42, %v1372_v20  ;;  %v5118_v42 = vpack.c.bf16 %v1447_v7, %v1439_v63  ;;  %v1509_v35 = vld [vmem:[#allocation10 + $0xee8] sm:$0xff] }
 0x325   : > { %5087 = vmatprep.subr.bf16.mxu1 %v5086_v29  ;;  %v5096_v1 = vpack.c.bf16 %v1350_v55, %v1342_v57  ;;  %v1382_v23 = vld [vmem:[#allocation10 + $0xaf0] sm:$0xff]  ;;  %v1399_v29 = vld [vmem:[#allocation10 + $0xb78] sm:$0xff]  ;;  %v1429_v55 = vld [vmem:[#allocation10 + $0xc68] sm:$0xff] }
 0x326   : > { %4833 = vmatpush1.bf16.msra.mxu0 %v4832_v33  ;;  %v5104_v31 = vpack.c.bf16 %v1382_v23, %v1374_v19  ;;  %v4850_v33 = vpack.c.bf16 %v1397_v27, %v1389_v21  ;;  %v5106_v44 = vpack.c.bf16 %v1399_v29, %v1391_v28  ;;  %v1414_v57 = vld [vmem:[#allocation10 + $0xbf0] sm:$0xff]  ;;  %v1461_v23 = vld [vmem:[#allocation10 + $0xd68] sm:$0xff]  ;;  %v1455_v21 = vld [vmem:[#allocation10 + $0xd38] sm:$0xff] }
 0x327   : > { %5089 = vmatpush1.bf16.msra.mxu1 %v5088_v39  ;;  %4835 = vmatprep.subr.bf16.mxu0 %v4834_v41  ;;  %v1388_v39 = vld [vmem:[#allocation10 + $0xb20] sm:$0xff]  ;;  %v5112_v62 = vpack.c.bf16 %v1414_v57, %v1406_v56  ;;  %v1438_v20 = vld [vmem:[#allocation10 + $0xcb0] sm:$0xff]  ;;  %v1463_v27 = vld [vmem:[#allocation10 + $0xd78] sm:$0xff] }
 0x328   : > { %5091 = vmatprep.subr.bf16.mxu1 %v5090_v46  ;;  %v1396_v41 = vld [vmem:[#allocation10 + $0xb60] sm:$0xff]  ;;  %v1405_v46 = vld [vmem:[#allocation10 + $0xba8] sm:$0xff]  ;;  %v1446_v19 = vld [vmem:[#allocation10 + $0xcf0] sm:$0xff] }
 0x329   : > { %v4852_v51 = vpack.c.bf16 %v1396_v41, %v1388_v39  ;;  %v5120_v29 = vpack.c.bf16 %v1446_v19, %v1438_v20  ;;  %v1454_v39 = vld [vmem:[#allocation10 + $0xd30] sm:$0xff]  ;;  %v5122_v41 = vpack.c.bf16 %v1463_v27, %v1455_v21  ;;  %v1493_v57 = vld [vmem:[#allocation10 + $0xe68] sm:$0xff] }
 0x32a   : > { %4837 = vmatpush1.bf16.msra.mxu0 %v4836_v52  ;;  %v4854_v52 = vpack.c.bf16 %v1413_v47, %v1405_v46  ;;  %v1471_v46 = vld [vmem:[#allocation10 + $0xdb8] sm:$0xff]  ;;  %v5124_v50 = vpack.c.bf16 %v1462_v43, %v1454_v39  ;;  %v1478_v56 = vld [vmem:[#allocation10 + $0xdf0] sm:$0xff]  ;;  %v1525_v19 = vld [vmem:[#allocation10 + $0xf68] sm:$0xff] }
 0x32b   : > { %5093 = vmatpush1.bf16.msra.mxu1 %v5092_v53  ;;  %4839 = vmatprep.subr.bf16.mxu0 %v4838_v54  ;;  %v1404_v53 = vld [vmem:[#allocation10 + $0xba0] sm:$0xff]  ;;  %v1479_v47 = vld [vmem:[#allocation10 + $0xdf8] sm:$0xff]  ;;  %v1494_v3 = vld [vmem:[#allocation10 + $0xe70] sm:$0xff] }
 0x32c   : > { %5095 = vmatprep.subr.bf16.mxu1 %v5094_v58  ;;  %v1412_v54 = vld [vmem:[#allocation10 + $0xbe0] sm:$0xff]  ;;  %v1421_v58 = vld [vmem:[#allocation10 + $0xc28] sm:$0xff]  ;;  %v1510_v20 = vld [vmem:[#allocation10 + $0xef0] sm:$0xff] }
 0x32d   : > { %v4856_v61 = vpack.c.bf16 %v1412_v54, %v1404_v53  ;;  %v1470_v53 = vld [vmem:[#allocation10 + $0xdb0] sm:$0xff]  ;;  %v5126_v54 = vpack.c.bf16 %v1479_v47, %v1471_v46  ;;  %v1541_v43 = vld [vmem:[#allocation10 + $0xfe8] sm:$0xff] }
 0x32e   : > { %4841 = vmatpush1.bf16.msra.mxu0 %v4840_v0  ;;  %v4858_v0 = vpack.c.bf16 %v1429_v55, %v1421_v58  ;;  %v1487_v58 = vld [vmem:[#allocation10 + $0xe38] sm:$0xff]  ;;  %v5128_v60 = vpack.c.bf16 %v1478_v56, %v1470_v53  ;;  %v1526_v39 = vld [vmem:[#allocation10 + $0xf70] sm:$0xff]  ;;  %v1557_v56 = vld [vmem:[#allocation10 + $0x1068] sm:$0xff] }
 0x32f   : > { %5097 = vmatpush1.bf16.msra.mxu1 %v5096_v1  ;;  %4843 = vmatprep.subr.bf16.mxu0 %v4842_v2  ;;  %v1420_v1 = vld [vmem:[#allocation10 + $0xc20] sm:$0xff]  ;;  %v1495_v55 = vld [vmem:[#allocation10 + $0xe78] sm:$0xff]  ;;  %v1542_v53 = vld [vmem:[#allocation10 + $0xff0] sm:$0xff] }
 0x330   : > { %5099 = vmatprep.subr.bf16.mxu1 %v5098_v5  ;;  %v1428_v2 = vld [vmem:[#allocation10 + $0xc60] sm:$0xff]  ;;  %v1437_v5 = vld [vmem:[#allocation10 + $0xca8] sm:$0xff] }
 0x331   : > { %v4860_v38 = vpack.c.bf16 %v1428_v2, %v1420_v1  ;;  %v1486_v1 = vld [vmem:[#allocation10 + $0xe30] sm:$0xff]  ;;  %v5130_v2 = vpack.c.bf16 %v1495_v55, %v1487_v58 }
 0x332   : > { %4845 = vmatpush1.bf16.msra.mxu0 %v4844_v10  ;;  %v4862_v10 = vpack.c.bf16 %v1445_v6, %v1437_v5  ;;  %v1503_v5 = vld [vmem:[#allocation10 + $0xeb8] sm:$0xff]  ;;  %v5132_v7 = vpack.c.bf16 %v1494_v3, %v1486_v1  ;;  %v1558_v1 = vld [vmem:[#allocation10 + $0x1070] sm:$0xff]  ;;  %v1573_v3 = vld [vmem:[#allocation10 + $0x10e8] sm:$0xff] }
 0x333   : > { %5101 = vmatpush1.bf16.msra.mxu1 %v5100_v11  ;;  %4847 = vmatprep.subr.bf16.mxu0 %v4846_v13  ;;  %v1436_v11 = vld [vmem:[#allocation10 + $0xca0] sm:$0xff]  ;;  %v1511_v6 = vld [vmem:[#allocation10 + $0xef8] sm:$0xff] }
 0x334   : > { %5103 = vmatprep.subr.bf16.mxu1 %v5102_v22  ;;  %v1444_v13 = vld [vmem:[#allocation10 + $0xce0] sm:$0xff]  ;;  %v1453_v22 = vld [vmem:[#allocation10 + $0xd28] sm:$0xff] }
 0x335   : > { %v4864_v28 = vpack.c.bf16 %v1444_v13, %v1436_v11  ;;  %v1502_v11 = vld [vmem:[#allocation10 + $0xeb0] sm:$0xff]  ;;  %v5134_v13 = vpack.c.bf16 %v1511_v6, %v1503_v5  ;;  %v1575_v5 = vld [vmem:[#allocation10 + $0x10f8] sm:$0xff] }
 0x336   : > { %4849 = vmatpush1.bf16.msra.mxu0 %v4848_v30  ;;  %v4866_v30 = vpack.c.bf16 %v1461_v23, %v1453_v22  ;;  %v1519_v22 = vld [vmem:[#allocation10 + $0xf38] sm:$0xff]  ;;  %v5136_v27 = vpack.c.bf16 %v1510_v20, %v1502_v11  ;;  %v1581_v11 = vld [vmem:[#allocation10 + $0x1128] sm:$0xff] }
 0x337   : > { %5105 = vmatpush1.bf16.msra.mxu1 %v5104_v31  ;;  %4851 = vmatprep.subr.bf16.mxu0 %v4850_v33  ;;  %v1452_v31 = vld [vmem:[#allocation10 + $0xd20] sm:$0xff]  ;;  %v1527_v23 = vld [vmem:[#allocation10 + $0xf78] sm:$0xff] }
 0x338   : > { %5107 = vmatprep.subr.bf16.mxu1 %v5106_v44  ;;  %v1460_v33 = vld [vmem:[#allocation10 + $0xd60] sm:$0xff]  ;;  %v1469_v44 = vld [vmem:[#allocation10 + $0xda8] sm:$0xff] }
 0x339   : > { %v4868_v48 = vpack.c.bf16 %v1460_v33, %v1452_v31  ;;  %v1518_v31 = vld [vmem:[#allocation10 + $0xf30] sm:$0xff]  ;;  %v5138_v33 = vpack.c.bf16 %v1527_v23, %v1519_v22 }
 0x33a   : > { %4853 = vmatpush1.bf16.msra.mxu0 %v4852_v51  ;;  %v4870_v51 = vpack.c.bf16 %v1477_v45, %v1469_v44  ;;  %v1535_v44 = vld [vmem:[#allocation10 + $0xfb8] sm:$0xff]  ;;  %v5140_v47 = vpack.c.bf16 %v1526_v39, %v1518_v31  ;;  %v1590_v31 = vld [vmem:[#allocation10 + $0x1170] sm:$0xff]  ;;  %v1605_v39 = vld [vmem:[#allocation10 + $0x11e8] sm:$0xff] }
 0x33b   : > { %5109 = vmatpush1.bf16.msra.mxu1 %v5108_v37  ;;  %4855 = vmatprep.subr.bf16.mxu0 %v4854_v52  ;;  %v1468_v37 = vld [vmem:[#allocation10 + $0xda0] sm:$0xff]  ;;  %v1543_v45 = vld [vmem:[#allocation10 + $0xff8] sm:$0xff] }
 0x33c   : > { %5111 = vmatprep.subr.bf16.mxu1 %v5110_v32  ;;  %v1476_v52 = vld [vmem:[#allocation10 + $0xde0] sm:$0xff]  ;;  %v1485_v32 = vld [vmem:[#allocation10 + $0xe28] sm:$0xff] }
 0x33d   : > { %v4872_v59 = vpack.c.bf16 %v1476_v52, %v1468_v37  ;;  %v1534_v37 = vld [vmem:[#allocation10 + $0xfb0] sm:$0xff]  ;;  %v5142_v52 = vpack.c.bf16 %v1543_v45, %v1535_v44 }
 0x33e   : > { %4857 = vmatpush1.bf16.msra.mxu0 %v4856_v61  ;;  %v4874_v61 = vpack.c.bf16 %v1493_v57, %v1485_v32  ;;  %v1551_v32 = vld [vmem:[#allocation10 + $0x1038] sm:$0xff]  ;;  %v5144_v55 = vpack.c.bf16 %v1542_v53, %v1534_v37  ;;  %v1621_v37 = vld [vmem:[#allocation10 + $0x1268] sm:$0xff] }
 0x33f   : > { %5113 = vmatpush1.bf16.msra.mxu1 %v5112_v62  ;;  %4859 = vmatprep.subr.bf16.mxu0 %v4858_v0  ;;  %v1484_v62 = vld [vmem:[#allocation10 + $0xe20] sm:$0xff]  ;;  %v1559_v57 = vld [vmem:[#allocation10 + $0x1078] sm:$0xff] }
 0x340   : > { %5115 = vmatprep.subr.bf16.mxu1 %v5114_v4  ;;  %v1492_v0 = vld [vmem:[#allocation10 + $0xe60] sm:$0xff]  ;;  %v1501_v4 = vld [vmem:[#allocation10 + $0xea8] sm:$0xff]  ;;  %v1623_v53 = vld [vmem:[#allocation10 + $0x1278] sm:$0xff] }
 0x341   : > { %v4876_v63 = vpack.c.bf16 %v1492_v0, %v1484_v62  ;;  %v5146_v62 = vpack.c.bf16 %v1559_v57, %v1551_v32  ;;  %v1550_v0 = vld [vmem:[#allocation10 + $0x1030] sm:$0xff]  ;;  %v1612_v57 = vld [vmem:[#allocation10 + $0x1220] sm:$0xff] }
 0x342   : > { %4861 = vmatpush1.bf16.msra.mxu0 %v4860_v38  ;;  %v4878_v38 = vpack.c.bf16 %v1509_v35, %v1501_v4  ;;  %v1567_v35 = vld [vmem:[#allocation10 + $0x10b8] sm:$0xff]  ;;  %v5148_v6 = vpack.c.bf16 %v1558_v1, %v1550_v0 }
 0x343   : > { %5117 = vmatpush1.bf16.msra.mxu1 %v5116_v9  ;;  %4863 = vmatprep.subr.bf16.mxu0 %v4862_v10  ;;  %v1500_v9 = vld [vmem:[#allocation10 + $0xea0] sm:$0xff]  ;;  %v5150_v20 = vpack.c.bf16 %v1575_v5, %v1567_v35  ;;  %v1631_v0 = vld [vmem:[#allocation10 + $0x12b8] sm:$0xff] }
 0x344   : > { %5119 = vmatprep.subr.bf16.mxu1 %v5118_v42  ;;  %v1508_v10 = vld [vmem:[#allocation10 + $0xee0] sm:$0xff]  ;;  %v1517_v42 = vld [vmem:[#allocation10 + $0xf28] sm:$0xff]  ;;  %v1639_v1 = vld [vmem:[#allocation10 + $0x12f8] sm:$0xff] }
 0x345   : > { %v4880_v21 = vpack.c.bf16 %v1508_v10, %v1500_v9  ;;  %v1574_v10 = vld [vmem:[#allocation10 + $0x10f0] sm:$0xff]  ;;  %v1628_v35 = vld [vmem:[#allocation10 + $0x12a0] sm:$0xff] }
 0x346   : > { %4865 = vmatpush1.bf16.msra.mxu0 %v4864_v28  ;;  %v4882_v28 = vpack.c.bf16 %v1525_v19, %v1517_v42  ;;  %v1583_v42 = vld [vmem:[#allocation10 + $0x1138] sm:$0xff]  ;;  %v1636_v5 = vld [vmem:[#allocation10 + $0x12e0] sm:$0xff] }
 0x347   : > { %5121 = vmatpush1.bf16.msra.mxu1 %v5120_v29  ;;  %4867 = vmatprep.subr.bf16.mxu0 %v4866_v30  ;;  %v1516_v29 = vld [vmem:[#allocation10 + $0xf20] sm:$0xff]  ;;  %v1591_v19 = vld [vmem:[#allocation10 + $0x1178] sm:$0xff] }
 0x348   : > { %5123 = vmatprep.subr.bf16.mxu1 %v5122_v41  ;;  %v1524_v30 = vld [vmem:[#allocation10 + $0xf60] sm:$0xff]  ;;  %v1533_v41 = vld [vmem:[#allocation10 + $0xfa8] sm:$0xff] }
 0x349   : > { %v4884_v46 = vpack.c.bf16 %v1524_v30, %v1516_v29  ;;  %v1582_v29 = vld [vmem:[#allocation10 + $0x1130] sm:$0xff]  ;;  %v5154_v30 = vpack.c.bf16 %v1591_v19, %v1583_v42  ;;  %v1644_v19 = vld [vmem:[#allocation10 + $0x1320] sm:$0xff] }
 0x34a   : > { %4869 = vmatpush1.bf16.msra.mxu0 %v4868_v48  ;;  %v4886_v48 = vpack.c.bf16 %v1541_v43, %v1533_v41  ;;  %v1599_v41 = vld [vmem:[#allocation10 + $0x11b8] sm:$0xff]  ;;  %v5156_v44 = vpack.c.bf16 %v1590_v31, %v1582_v29  ;;  %v1669_v29 = vld [vmem:[#allocation10 + $0x13e8] sm:$0xff] }
 0x34b   : > { %5125 = vmatpush1.bf16.msra.mxu1 %v5124_v50  ;;  %4871 = vmatprep.subr.bf16.mxu0 %v4870_v51  ;;  %v1532_v50 = vld [vmem:[#allocation10 + $0xfa0] sm:$0xff]  ;;  %v1671_v31 = vld [vmem:[#allocation10 + $0x13f8] sm:$0xff] }
 0x34c   : > { %5127 = vmatprep.subr.bf16.mxu1 %v5126_v54  ;;  %v1540_v51 = vld [vmem:[#allocation10 + $0xfe0] sm:$0xff]  ;;  %v1549_v54 = vld [vmem:[#allocation10 + $0x1028] sm:$0xff] }
 0x34d   : > { %v4888_v58 = vpack.c.bf16 %v1540_v51, %v1532_v50  ;;  %v1613_v51 = vld [vmem:[#allocation10 + $0x1228] sm:$0xff] }
 0x34e   : > { %4873 = vmatpush1.bf16.msra.mxu0 %v4872_v59  ;;  %v4890_v59 = vpack.c.bf16 %v1557_v56, %v1549_v54  ;;  %v4906_v32 = vpack.c.bf16 %v1621_v37, %v1613_v51 }
 0x34f   : > { %5129 = vmatpush1.bf16.msra.mxu1 %v5128_v60  ;;  %4875 = vmatprep.subr.bf16.mxu0 %v4874_v61  ;;  %v1548_v60 = vld [vmem:[#allocation10 + $0x1020] sm:$0xff] }
 0x350   : > { %5131 = vmatprep.subr.bf16.mxu1 %v5130_v2  ;;  %v1556_v61 = vld [vmem:[#allocation10 + $0x1060] sm:$0xff]  ;;  %v1565_v2 = vld [vmem:[#allocation10 + $0x10a8] sm:$0xff] }
 0x351   : > { %v4892_v4 = vpack.c.bf16 %v1556_v61, %v1548_v60  ;;  %v4894_v9 = vpack.c.bf16 %v1573_v3, %v1565_v2  ;;  %v1622_v60 = vld [vmem:[#allocation10 + $0x1270] sm:$0xff]  ;;  %v1629_v61 = vld [vmem:[#allocation10 + $0x12a8] sm:$0xff] }
 0x352   : > { %4877 = vmatpush1.bf16.msra.mxu0 %v4876_v63  ;;  %v1564_v63 = vld [vmem:[#allocation10 + $0x10a0] sm:$0xff] }
 0x353   : > { %5133 = vmatpush1.bf16.msra.mxu1 %v5132_v7  ;;  %4879 = vmatprep.subr.bf16.mxu0 %v4878_v38  ;;  %v1572_v7 = vld [vmem:[#allocation10 + $0x10e0] sm:$0xff]  ;;  %v1566_v38 = vld [vmem:[#allocation10 + $0x10b0] sm:$0xff] }
 0x354   : > { %5135 = vmatprep.subr.bf16.mxu1 %v5134_v13  ;;  %v1589_v13 = vld [vmem:[#allocation10 + $0x1168] sm:$0xff]  ;;  %v4896_v22 = vpack.c.bf16 %v1572_v7, %v1564_v63  ;;  %v5152_v23 = vpack.c.bf16 %v1574_v10, %v1566_v38  ;;  %v5166_v63 = vpack.c.bf16 %v1639_v1, %v1631_v0  ;;  %v1638_v7 = vld [vmem:[#allocation10 + $0x12f0] sm:$0xff]  ;;  %v1647_v10 = vld [vmem:[#allocation10 + $0x1338] sm:$0xff] }
 0x355   : > { %v1645_v38 = vld [vmem:[#allocation10 + $0x1328] sm:$0xff]  ;;  %v1692_v1 = vld [vmem:[#allocation10 + $0x14a0] sm:$0xff] }
 0x356   : > { %4881 = vmatpush1.bf16.msra.mxu0 %v4880_v21  ;;  %v4898_v21 = vpack.c.bf16 %v1589_v13, %v1581_v11  ;;  %v1655_v11 = vld [vmem:[#allocation10 + $0x1378] sm:$0xff]  ;;  %v4912_v13 = vpack.c.bf16 %v1636_v5, %v1628_v35  ;;  %v1702_v35 = vld [vmem:[#allocation10 + $0x14f0] sm:$0xff]  ;;  %v1709_v5 = vld [vmem:[#allocation10 + $0x1528] sm:$0xff] }
 0x357   : > { %5137 = vmatpush1.bf16.msra.mxu1 %v5136_v27  ;;  %4883 = vmatprep.subr.bf16.mxu0 %v4882_v28  ;;  %v1580_v27 = vld [vmem:[#allocation10 + $0x1120] sm:$0xff] }
 0x358   : > { %5139 = vmatprep.subr.bf16.mxu1 %v5138_v33  ;;  %v1588_v28 = vld [vmem:[#allocation10 + $0x1160] sm:$0xff]  ;;  %v1597_v33 = vld [vmem:[#allocation10 + $0x11a8] sm:$0xff] }
 0x359   : > { %v4900_v43 = vpack.c.bf16 %v1588_v28, %v1580_v27  ;;  %v4902_v45 = vpack.c.bf16 %v1605_v39, %v1597_v33  ;;  %v1654_v27 = vld [vmem:[#allocation10 + $0x1370] sm:$0xff]  ;;  %v1661_v28 = vld [vmem:[#allocation10 + $0x13a8] sm:$0xff] }
 0x35a   : > { %4885 = vmatpush1.bf16.msra.mxu0 %v4884_v46  ;;  %v1596_v46 = vld [vmem:[#allocation10 + $0x11a0] sm:$0xff] }
 0x35b   : > { %5141 = vmatpush1.bf16.msra.mxu1 %v5140_v47  ;;  %4887 = vmatprep.subr.bf16.mxu0 %v4886_v48  ;;  %v1604_v47 = vld [vmem:[#allocation10 + $0x11e0] sm:$0xff]  ;;  %v1598_v48 = vld [vmem:[#allocation10 + $0x11b0] sm:$0xff] }
 0x35c   : > { %5143 = vmatprep.subr.bf16.mxu1 %v5142_v52  ;;  %v1615_v52 = vld [vmem:[#allocation10 + $0x1238] sm:$0xff]  ;;  %v4904_v54 = vpack.c.bf16 %v1604_v47, %v1596_v46  ;;  %v1670_v46 = vld [vmem:[#allocation10 + $0x13f0] sm:$0xff]  ;;  %v1677_v47 = vld [vmem:[#allocation10 + $0x1428] sm:$0xff] }
 0x35e   : > { %4889 = vmatpush1.bf16.msra.mxu0 %v4888_v58  ;;  %v1620_v58 = vld [vmem:[#allocation10 + $0x1260] sm:$0xff] }
 0x35f   : > { %5145 = vmatpush1.bf16.msra.mxu1 %v5144_v55  ;;  %4891 = vmatprep.subr.bf16.mxu0 %v4890_v59  ;;  %v1614_v55 = vld [vmem:[#allocation10 + $0x1230] sm:$0xff]  ;;  %v5162_v59 = vpack.c.bf16 %v1623_v53, %v1615_v52  ;;  %v4908_v2 = vpack.c.bf16 %v1620_v58, %v1612_v57  ;;  %v1676_v53 = vld [vmem:[#allocation10 + $0x1420] sm:$0xff]  ;;  %v1693_v58 = vld [vmem:[#allocation10 + $0x14a8] sm:$0xff] }
 0x360   : > { %5147 = vmatprep.subr.bf16.mxu1 %v5146_v62  ;;  %v1637_v62 = vld [vmem:[#allocation10 + $0x12e8] sm:$0xff]  ;;  %v5164_v3 = vpack.c.bf16 %v1622_v60, %v1614_v55  ;;  %v1686_v57 = vld [vmem:[#allocation10 + $0x1470] sm:$0xff]  ;;  %v1703_v60 = vld [vmem:[#allocation10 + $0x14f8] sm:$0xff] }
 0x361   : > { %2802 = vmatmul.mubr.f32.vlgmr.msra.gmra.mrb[6].mxu0 %v6308_v8  ;;  %v1701_v55 = vld [vmem:[#allocation10 + $0x14e8] sm:$0xff] }
 0x362   : > { %3086 = vmatmul.mubr.f32.vlgmr.msra.gmra.mrb[6].mxu1 %v6308_v8  ;;  %4893 = vmatpush1.bf16.msra.mxu0 %v4892_v4  ;;  %v1607_v8 = vld [vmem:[#allocation10 + $0x11f8] sm:$0xff]  ;;  %v4910_v4 = vpack.c.bf16 %v1637_v62, %v1629_v61  ;;  %v4926_v0 = vpack.c.bf16 %v1701_v55, %v1693_v58 }
 0x363   : > { %2872 = vmatprep.mubr.f32.mxu0 %v6310_v25  ;;  %5149 = vmatpush1.bf16.msra.mxu1 %v5148_v6  ;;  %v5158_v50 = vpack.c.bf16 %v1607_v8, %v1599_v41  ;;  %v1630_v6 = vld [vmem:[#allocation10 + $0x12b0] sm:$0xff]  ;;  %v4918_v41 = vpack.c.bf16 %v1669_v29, %v1661_v28  ;;  %v1660_v8 = vld [vmem:[#allocation10 + $0x13a0] sm:$0xff] }
 0x364   : > { %3156 = vmatprep.mubr.f32.mxu1 %v6310_v25  ;;  %4895 = vmatprep.subr.bf16.mxu0 %v4894_v9  ;;  %v1606_v25 = vld [vmem:[#allocation10 + $0x11f0] sm:$0xff]  ;;  %v1653_v9 = vld [vmem:[#allocation10 + $0x1368] sm:$0xff] }
 0x365   : > { %5151 = vmatprep.subr.bf16.mxu1 %v5150_v20  ;;  %v5160_v56 = vpack.c.bf16 %v1606_v25, %v1598_v48  ;;  %v5168_v20 = vpack.c.bf16 %v1638_v7, %v1630_v6  ;;  %v4914_v42 = vpack.c.bf16 %v1653_v9, %v1645_v38  ;;  %v1685_v48 = vld [vmem:[#allocation10 + $0x1468] sm:$0xff]  ;;  %v1687_v25 = vld [vmem:[#allocation10 + $0x1478] sm:$0xff] }
 0x366   : > { %4897 = vmatpush1.bf16.msra.mxu0 %v4896_v22  ;;  %v1652_v22 = vld [vmem:[#allocation10 + $0x1360] sm:$0xff]  ;;  %v4922_v52 = vpack.c.bf16 %v1685_v48, %v1677_v47  ;;  %v1717_v6 = vld [vmem:[#allocation10 + $0x1568] sm:$0xff]  ;;  %v1719_v7 = vld [vmem:[#allocation10 + $0x1578] sm:$0xff] }
 0x367   : > { %5153 = vmatpush1.bf16.msra.mxu1 %v5152_v23  ;;  %4899 = vmatprep.subr.bf16.mxu0 %v4898_v21  ;;  %v1646_v23 = vld [vmem:[#allocation10 + $0x1330] sm:$0xff]  ;;  %v5170_v21 = vpack.c.bf16 %v1655_v11, %v1647_v10  ;;  %v4916_v33 = vpack.c.bf16 %v1652_v22, %v1644_v19  ;;  %v4930_v10 = vpack.c.bf16 %v1717_v6, %v1709_v5  ;;  %v1708_v11 = vld [vmem:[#allocation10 + $0x1520] sm:$0xff]  ;;  %v1725_v22 = vld [vmem:[#allocation10 + $0x15a8] sm:$0xff] }
 0x368   : > { %5155 = vmatprep.subr.bf16.mxu1 %v5154_v30  ;;  %v1663_v30 = vld [vmem:[#allocation10 + $0x13b8] sm:$0xff]  ;;  %v5172_v39 = vpack.c.bf16 %v1654_v27, %v1646_v23  ;;  %v1718_v19 = vld [vmem:[#allocation10 + $0x1570] sm:$0xff]  ;;  %v1733_v23 = vld [vmem:[#allocation10 + $0x15e8] sm:$0xff] }
 0x369   : > { %v1735_v27 = vld [vmem:[#allocation10 + $0x15f8] sm:$0xff] }
 0x36a   : > { %4901 = vmatpush1.bf16.msra.mxu0 %v4900_v43  ;;  %v1668_v43 = vld [vmem:[#allocation10 + $0x13e0] sm:$0xff] }
 0x36b   : > { %5157 = vmatpush1.bf16.msra.mxu1 %v5156_v44  ;;  %4903 = vmatprep.subr.bf16.mxu0 %v4902_v45  ;;  %v1662_v44 = vld [vmem:[#allocation10 + $0x13b0] sm:$0xff]  ;;  %v5174_v45 = vpack.c.bf16 %v1671_v31, %v1663_v30  ;;  %v4920_v51 = vpack.c.bf16 %v1668_v43, %v1660_v8  ;;  %v4934_v30 = vpack.c.bf16 %v1733_v23, %v1725_v22  ;;  %v1724_v31 = vld [vmem:[#allocation10 + $0x15a0] sm:$0xff]  ;;  %v1741_v43 = vld [vmem:[#allocation10 + $0x1628] sm:$0xff] }
 0x36c   : > { %5159 = vmatprep.subr.bf16.mxu1 %v5158_v50  ;;  %v1679_v50 = vld [vmem:[#allocation10 + $0x1438] sm:$0xff]  ;;  %v5176_v37 = vpack.c.bf16 %v1670_v46, %v1662_v44  ;;  %v1734_v8 = vld [vmem:[#allocation10 + $0x15f0] sm:$0xff]  ;;  %v1749_v44 = vld [vmem:[#allocation10 + $0x1668] sm:$0xff] }
 0x36d   : > { %v1751_v46 = vld [vmem:[#allocation10 + $0x1678] sm:$0xff] }
 0x36e   : > { %4905 = vmatpush1.bf16.msra.mxu0 %v4904_v54  ;;  %v1684_v54 = vld [vmem:[#allocation10 + $0x1460] sm:$0xff] }
 0x36f   : > { %5161 = vmatpush1.bf16.msra.mxu1 %v5160_v56  ;;  %4907 = vmatprep.subr.bf16.mxu0 %v4906_v32  ;;  %v1678_v56 = vld [vmem:[#allocation10 + $0x1430] sm:$0xff]  ;;  %v5178_v32 = vpack.c.bf16 %v1687_v25, %v1679_v50  ;;  %v4924_v61 = vpack.c.bf16 %v1684_v54, %v1676_v53  ;;  %v4938_v50 = vpack.c.bf16 %v1749_v44, %v1741_v43  ;;  %v1740_v25 = vld [vmem:[#allocation10 + $0x1620] sm:$0xff]  ;;  %v1757_v54 = vld [vmem:[#allocation10 + $0x16a8] sm:$0xff] }
 0x370   : > { %5163 = vmatprep.subr.bf16.mxu1 %v5162_v59  ;;  %v1695_v59 = vld [vmem:[#allocation10 + $0x14b8] sm:$0xff]  ;;  %v5180_v62 = vpack.c.bf16 %v1686_v57, %v1678_v56  ;;  %v1750_v53 = vld [vmem:[#allocation10 + $0x1670] sm:$0xff]  ;;  %v1765_v56 = vld [vmem:[#allocation10 + $0x16e8] sm:$0xff] }
 0x371   : > { %v1767_v57 = vld [vmem:[#allocation10 + $0x16f8] sm:$0xff] }
 0x372   : > { %4909 = vmatpush1.bf16.msra.mxu0 %v4908_v2  ;;  %v1700_v2 = vld [vmem:[#allocation10 + $0x14e0] sm:$0xff] }
 0x373   : > { %5165 = vmatpush1.bf16.msra.mxu1 %v5164_v3  ;;  %4911 = vmatprep.subr.bf16.mxu0 %v4910_v4  ;;  %v1694_v3 = vld [vmem:[#allocation10 + $0x14b0] sm:$0xff]  ;;  %v5182_v4 = vpack.c.bf16 %v1703_v60, %v1695_v59  ;;  %v4928_v38 = vpack.c.bf16 %v1700_v2, %v1692_v1  ;;  %v4942_v59 = vpack.c.bf16 %v1765_v56, %v1757_v54  ;;  %v1756_v60 = vld [vmem:[#allocation10 + $0x16a0] sm:$0xff]  ;;  %v1773_v2 = vld [vmem:[#allocation10 + $0x1728] sm:$0xff] }
 0x374   : > { %5167 = vmatprep.subr.bf16.mxu1 %v5166_v63  ;;  %v1711_v63 = vld [vmem:[#allocation10 + $0x1538] sm:$0xff]  ;;  %v5184_v9 = vpack.c.bf16 %v1702_v35, %v1694_v3  ;;  %v1766_v1 = vld [vmem:[#allocation10 + $0x16f0] sm:$0xff]  ;;  %v1781_v3 = vld [vmem:[#allocation10 + $0x1768] sm:$0xff] }
 0x375   : > { %v1783_v35 = vld [vmem:[#allocation10 + $0x1778] sm:$0xff] }
 0x376   : > { %4913 = vmatpush1.bf16.msra.mxu0 %v4912_v13  ;;  %v1716_v13 = vld [vmem:[#allocation10 + $0x1560] sm:$0xff]  ;;  %v1831_v54 = vld [vmem:[#allocation10 + $0x18f8] sm:$0xff] }
 0x377   : > { %5169 = vmatpush1.bf16.msra.mxu1 %v5168_v20  ;;  %4915 = vmatprep.subr.bf16.mxu0 %v4914_v42  ;;  %v1710_v20 = vld [vmem:[#allocation10 + $0x1530] sm:$0xff]  ;;  %v5186_v42 = vpack.c.bf16 %v1719_v7, %v1711_v63  ;;  %v4932_v28 = vpack.c.bf16 %v1716_v13, %v1708_v11  ;;  %v4946_v63 = vpack.c.bf16 %v1781_v3, %v1773_v2  ;;  %v1772_v7 = vld [vmem:[#allocation10 + $0x1720] sm:$0xff]  ;;  %v1789_v13 = vld [vmem:[#allocation10 + $0x17a8] sm:$0xff] }
 0x378   : > { %5171 = vmatprep.subr.bf16.mxu1 %v5170_v21  ;;  %v1727_v21 = vld [vmem:[#allocation10 + $0x15b8] sm:$0xff]  ;;  %v5188_v29 = vpack.c.bf16 %v1718_v19, %v1710_v20  ;;  %v1782_v11 = vld [vmem:[#allocation10 + $0x1770] sm:$0xff]  ;;  %v1797_v20 = vld [vmem:[#allocation10 + $0x17e8] sm:$0xff] }
 0x379   : > { %v1799_v19 = vld [vmem:[#allocation10 + $0x17f8] sm:$0xff] }
 0x37a   : > { %4917 = vmatpush1.bf16.msra.mxu0 %v4916_v33  ;;  %v1732_v33 = vld [vmem:[#allocation10 + $0x15e0] sm:$0xff] }
 0x37b   : > { %5173 = vmatpush1.bf16.msra.mxu1 %v5172_v39  ;;  %4919 = vmatprep.subr.bf16.mxu0 %v4918_v41  ;;  %v1726_v39 = vld [vmem:[#allocation10 + $0x15b0] sm:$0xff]  ;;  %v5190_v41 = vpack.c.bf16 %v1735_v27, %v1727_v21  ;;  %v4936_v47 = vpack.c.bf16 %v1732_v33, %v1724_v31  ;;  %v4950_v21 = vpack.c.bf16 %v1797_v20, %v1789_v13  ;;  %v1788_v27 = vld [vmem:[#allocation10 + $0x17a0] sm:$0xff]  ;;  %v1805_v33 = vld [vmem:[#allocation10 + $0x1828] sm:$0xff] }
 0x37c   : > { %5175 = vmatprep.subr.bf16.mxu1 %v5174_v45  ;;  %v1743_v45 = vld [vmem:[#allocation10 + $0x1638] sm:$0xff]  ;;  %v5192_v48 = vpack.c.bf16 %v1734_v8, %v1726_v39  ;;  %v1798_v31 = vld [vmem:[#allocation10 + $0x17f0] sm:$0xff]  ;;  %v1813_v39 = vld [vmem:[#allocation10 + $0x1868] sm:$0xff] }
 0x37d   : > { %v1815_v8 = vld [vmem:[#allocation10 + $0x1878] sm:$0xff] }
 0x37e   : > { %4921 = vmatpush1.bf16.msra.mxu0 %v4920_v51  ;;  %v1748_v51 = vld [vmem:[#allocation10 + $0x1660] sm:$0xff] }
 0x37f   : > { %5177 = vmatpush1.bf16.msra.mxu1 %v5176_v37  ;;  %4923 = vmatprep.subr.bf16.mxu0 %v4922_v52  ;;  %v1742_v37 = vld [vmem:[#allocation10 + $0x1630] sm:$0xff]  ;;  %v5194_v52 = vpack.c.bf16 %v1751_v46, %v1743_v45  ;;  %v4940_v58 = vpack.c.bf16 %v1748_v51, %v1740_v25  ;;  %v4954_v45 = vpack.c.bf16 %v1813_v39, %v1805_v33  ;;  %v1804_v46 = vld [vmem:[#allocation10 + $0x1820] sm:$0xff]  ;;  %v1821_v51 = vld [vmem:[#allocation10 + $0x18a8] sm:$0xff] }
 0x380   : > { %5179 = vmatprep.subr.bf16.mxu1 %v5178_v32  ;;  %v1759_v32 = vld [vmem:[#allocation10 + $0x16b8] sm:$0xff]  ;;  %v5196_v55 = vpack.c.bf16 %v1750_v53, %v1742_v37  ;;  %v1814_v25 = vld [vmem:[#allocation10 + $0x1870] sm:$0xff]  ;;  %v1829_v37 = vld [vmem:[#allocation10 + $0x18e8] sm:$0xff] }
 0x381   : > { %v1823_v53 = vld [vmem:[#allocation10 + $0x18b8] sm:$0xff]  ;;  %v1868_v39 = vld [vmem:[#allocation10 + $0x1a20] sm:$0xff] }
 0x382   : > { %4925 = vmatpush1.bf16.msra.mxu0 %v4924_v61  ;;  %v1764_v61 = vld [vmem:[#allocation10 + $0x16e0] sm:$0xff] }
 0x383   : > { %5181 = vmatpush1.bf16.msra.mxu1 %v5180_v62  ;;  %4927 = vmatprep.subr.bf16.mxu0 %v4926_v0  ;;  %v1758_v62 = vld [vmem:[#allocation10 + $0x16b0] sm:$0xff]  ;;  %v5198_v0 = vpack.c.bf16 %v1767_v57, %v1759_v32  ;;  %v4944_v5 = vpack.c.bf16 %v1764_v61, %v1756_v60  ;;  %v1820_v32 = vld [vmem:[#allocation10 + $0x18a0] sm:$0xff]  ;;  %v1837_v60 = vld [vmem:[#allocation10 + $0x1928] sm:$0xff] }
 0x384   : > { %5183 = vmatprep.subr.bf16.mxu1 %v5182_v4  ;;  %v1775_v4 = vld [vmem:[#allocation10 + $0x1738] sm:$0xff]  ;;  %v5200_v6 = vpack.c.bf16 %v1766_v1, %v1758_v62  ;;  %v1828_v57 = vld [vmem:[#allocation10 + $0x18e0] sm:$0xff]  ;;  %v1845_v61 = vld [vmem:[#allocation10 + $0x1968] sm:$0xff]  ;;  %v5214_v62 = vpack.c.bf16 %v1831_v54, %v1823_v53 }
 0x385   : > { %v1847_v1 = vld [vmem:[#allocation10 + $0x1978] sm:$0xff]  ;;  %v4960_v2 = vpack.c.bf16 %v1828_v57, %v1820_v32  ;;  %v1886_v53 = vld [vmem:[#allocation10 + $0x1ab0] sm:$0xff]  ;;  %v1901_v32 = vld [vmem:[#allocation10 + $0x1b28] sm:$0xff] }
 0x386   : > { %4929 = vmatpush1.bf16.msra.mxu0 %v4928_v38  ;;  %v1780_v38 = vld [vmem:[#allocation10 + $0x1760] sm:$0xff]  ;;  %v1909_v57 = vld [vmem:[#allocation10 + $0x1b68] sm:$0xff] }
 0x387   : > { %5185 = vmatpush1.bf16.msra.mxu1 %v5184_v9  ;;  %4931 = vmatprep.subr.bf16.mxu0 %v4930_v10  ;;  %v1774_v9 = vld [vmem:[#allocation10 + $0x1730] sm:$0xff]  ;;  %v5202_v10 = vpack.c.bf16 %v1783_v35, %v1775_v4  ;;  %v4948_v22 = vpack.c.bf16 %v1780_v38, %v1772_v7  ;;  %v4962_v4 = vpack.c.bf16 %v1845_v61, %v1837_v60  ;;  %v1836_v35 = vld [vmem:[#allocation10 + $0x1920] sm:$0xff]  ;;  %v1853_v38 = vld [vmem:[#allocation10 + $0x19a8] sm:$0xff] }
 0x388   : > { %5187 = vmatprep.subr.bf16.mxu1 %v5186_v42  ;;  %v1791_v42 = vld [vmem:[#allocation10 + $0x17b8] sm:$0xff]  ;;  %v5204_v23 = vpack.c.bf16 %v1782_v11, %v1774_v9  ;;  %v1846_v7 = vld [vmem:[#allocation10 + $0x1970] sm:$0xff]  ;;  %v1861_v9 = vld [vmem:[#allocation10 + $0x19e8] sm:$0xff]  ;;  %v4978_v61 = vpack.c.bf16 %v1909_v57, %v1901_v32 }
 0x389   : > { %v4966_v20 = vpack.c.bf16 %v1861_v9, %v1853_v38  ;;  %v1919_v38 = vld [vmem:[#allocation10 + $0x1bb8] sm:$0xff] }
 0x38a   : > { %4933 = vmatpush1.bf16.msra.mxu0 %v4932_v28  ;;  %v1796_v28 = vld [vmem:[#allocation10 + $0x17e0] sm:$0xff]  ;;  %v1927_v9 = vld [vmem:[#allocation10 + $0x1bf8] sm:$0xff] }
 0x38b   : > { %5189 = vmatpush1.bf16.msra.mxu1 %v5188_v29  ;;  %4935 = vmatprep.subr.bf16.mxu0 %v4934_v30  ;;  %v1790_v29 = vld [vmem:[#allocation10 + $0x17b0] sm:$0xff]  ;;  %v5206_v30 = vpack.c.bf16 %v1799_v19, %v1791_v42  ;;  %v4952_v43 = vpack.c.bf16 %v1796_v28, %v1788_v27  ;;  %v1852_v42 = vld [vmem:[#allocation10 + $0x19a0] sm:$0xff]  ;;  %v1877_v27 = vld [vmem:[#allocation10 + $0x1a68] sm:$0xff] }
 0x38c   : > { %5191 = vmatprep.subr.bf16.mxu1 %v5190_v41  ;;  %v1807_v41 = vld [vmem:[#allocation10 + $0x1838] sm:$0xff]  ;;  %v5208_v44 = vpack.c.bf16 %v1798_v31, %v1790_v29  ;;  %v1860_v19 = vld [vmem:[#allocation10 + $0x19e0] sm:$0xff] }
 0x38d   : > { %v1871_v28 = vld [vmem:[#allocation10 + $0x1a38] sm:$0xff] }
 0x38e   : > { %4937 = vmatpush1.bf16.msra.mxu0 %v4936_v47  ;;  %v1812_v47 = vld [vmem:[#allocation10 + $0x1860] sm:$0xff]  ;;  %v1879_v29 = vld [vmem:[#allocation10 + $0x1a78] sm:$0xff] }
 0x38f   : > { %5193 = vmatpush1.bf16.msra.mxu1 %v5192_v48  ;;  %4939 = vmatprep.subr.bf16.mxu0 %v4938_v50  ;;  %v5210_v48 = vpack.c.bf16 %v1815_v8, %v1807_v41  ;;  %v1806_v50 = vld [vmem:[#allocation10 + $0x1830] sm:$0xff]  ;;  %v1876_v41 = vld [vmem:[#allocation10 + $0x1a60] sm:$0xff]  ;;  %v1967_v32 = vld [vmem:[#allocation10 + $0x1d38] sm:$0xff] }
 0x390   : > { %5195 = vmatprep.subr.bf16.mxu1 %v5194_v52  ;;  %v4956_v52 = vpack.c.bf16 %v1812_v47, %v1804_v46  ;;  %v5212_v56 = vpack.c.bf16 %v1814_v25, %v1806_v50  ;;  %v1870_v8 = vld [vmem:[#allocation10 + $0x1a30] sm:$0xff]  ;;  %v1893_v46 = vld [vmem:[#allocation10 + $0x1ae8] sm:$0xff]  ;;  %v1887_v47 = vld [vmem:[#allocation10 + $0x1ab8] sm:$0xff]  ;;  %v4972_v50 = vpack.c.bf16 %v1876_v41, %v1868_v39 }
 0x391   : > { %v1934_v39 = vld [vmem:[#allocation10 + $0x1c30] sm:$0xff]  ;;  %v1975_v57 = vld [vmem:[#allocation10 + $0x1d78] sm:$0xff] }
 0x392   : > { %4941 = vmatpush1.bf16.msra.mxu0 %v4940_v58  ;;  %v1822_v58 = vld [vmem:[#allocation10 + $0x18b0] sm:$0xff] }
 0x393   : > { %5197 = vmatpush1.bf16.msra.mxu1 %v5196_v55  ;;  %4943 = vmatprep.subr.bf16.mxu0 %v4942_v59  ;;  %v4958_v55 = vpack.c.bf16 %v1829_v37, %v1821_v51  ;;  %v1830_v59 = vld [vmem:[#allocation10 + $0x18f0] sm:$0xff]  ;;  %v1884_v37 = vld [vmem:[#allocation10 + $0x1aa0] sm:$0xff] }
 0x394   : > { %5199 = vmatprep.subr.bf16.mxu1 %v5198_v0  ;;  %v1839_v0 = vld [vmem:[#allocation10 + $0x1938] sm:$0xff]  ;;  %v5216_v3 = vpack.c.bf16 %v1830_v59, %v1822_v58 }
 0x395   : > { %v1903_v58 = vld [vmem:[#allocation10 + $0x1b38] sm:$0xff] }
 0x396   : > { %4945 = vmatpush1.bf16.msra.mxu0 %v4944_v5  ;;  %v1844_v5 = vld [vmem:[#allocation10 + $0x1960] sm:$0xff] }
 0x397   : > { %5201 = vmatpush1.bf16.msra.mxu1 %v5200_v6  ;;  %4947 = vmatprep.subr.bf16.mxu0 %v4946_v63  ;;  %v1838_v6 = vld [vmem:[#allocation10 + $0x1930] sm:$0xff]  ;;  %v5218_v63 = vpack.c.bf16 %v1847_v1, %v1839_v0  ;;  %v4964_v11 = vpack.c.bf16 %v1844_v5, %v1836_v35  ;;  %v1908_v0 = vld [vmem:[#allocation10 + $0x1b60] sm:$0xff]  ;;  %v1917_v5 = vld [vmem:[#allocation10 + $0x1ba8] sm:$0xff] }
 0x398   : > { %5203 = vmatprep.subr.bf16.mxu1 %v5202_v10  ;;  %v1855_v10 = vld [vmem:[#allocation10 + $0x19b8] sm:$0xff]  ;;  %v5220_v13 = vpack.c.bf16 %v1846_v7, %v1838_v6  ;;  %v1902_v1 = vld [vmem:[#allocation10 + $0x1b30] sm:$0xff]  ;;  %v1925_v6 = vld [vmem:[#allocation10 + $0x1be8] sm:$0xff] }
 0x399   : > { %v1910_v35 = vld [vmem:[#allocation10 + $0x1b70] sm:$0xff] }
 0x39a   : > { %4949 = vmatpush1.bf16.msra.mxu0 %v4948_v22  ;;  %v1854_v22 = vld [vmem:[#allocation10 + $0x19b0] sm:$0xff] }
 0x39b   : > { %5205 = vmatpush1.bf16.msra.mxu1 %v5204_v23  ;;  %4951 = vmatprep.subr.bf16.mxu0 %v4950_v21  ;;  %v1869_v21 = vld [vmem:[#allocation10 + $0x1a28] sm:$0xff] }
 0x39c   : > { %5207 = vmatprep.subr.bf16.mxu1 %v5206_v30  ;;  %v4968_v30 = vpack.c.bf16 %v1860_v19, %v1852_v42  ;;  %v4970_v33 = vpack.c.bf16 %v1877_v27, %v1869_v21  ;;  %v1918_v42 = vld [vmem:[#allocation10 + $0x1bb0] sm:$0xff]  ;;  %v5238_v19 = vpack.c.bf16 %v1927_v9, %v1919_v38  ;;  %v1935_v21 = vld [vmem:[#allocation10 + $0x1c38] sm:$0xff] }
 0x39d   : > { %v1943_v27 = vld [vmem:[#allocation10 + $0x1c78] sm:$0xff] }
 0x39e   : > { %4953 = vmatpush1.bf16.msra.mxu0 %v4952_v43  ;;  %v5226_v43 = vpack.c.bf16 %v1879_v29, %v1871_v28  ;;  %v5242_v41 = vpack.c.bf16 %v1943_v27, %v1935_v21 }
 0x39f   : > { %5209 = vmatpush1.bf16.msra.mxu1 %v5208_v44  ;;  %4955 = vmatprep.subr.bf16.mxu0 %v4954_v45  ;;  %v1878_v44 = vld [vmem:[#allocation10 + $0x1a70] sm:$0xff]  ;;  %v1885_v45 = vld [vmem:[#allocation10 + $0x1aa8] sm:$0xff] }
 0x3a0   : > { %5211 = vmatprep.subr.bf16.mxu1 %v5210_v48  ;;  %v1895_v48 = vld [vmem:[#allocation10 + $0x1af8] sm:$0xff]  ;;  %v5228_v25 = vpack.c.bf16 %v1878_v44, %v1870_v8  ;;  %v4974_v51 = vpack.c.bf16 %v1893_v46, %v1885_v45  ;;  %v1942_v8 = vld [vmem:[#allocation10 + $0x1c70] sm:$0xff]  ;;  %v1957_v44 = vld [vmem:[#allocation10 + $0x1ce8] sm:$0xff] }
 0x3a1   : > { %2873 = vmatmul.mubr.f32.vlgmr.msra.gmra.mrb[6].mxu0 %v6332_v17  ;;  %v5230_v54 = vpack.c.bf16 %v1895_v48, %v1887_v47  ;;  %v1951_v45 = vld [vmem:[#allocation10 + $0x1cb8] sm:$0xff]  ;;  %v5244_v48 = vpack.c.bf16 %v1942_v8, %v1934_v39  ;;  %v2006_v39 = vld [vmem:[#allocation10 + $0x1e70] sm:$0xff]  ;;  %v2021_v8 = vld [vmem:[#allocation10 + $0x1ee8] sm:$0xff] }
 0x3a2   : > { %3157 = vmatmul.mubr.f32.vlgmr.msra.gmra.mrb[6].mxu1 %v6332_v17  ;;  %4957 = vmatpush1.bf16.msra.mxu0 %v4956_v52  ;;  %v1863_v17 = vld [vmem:[#allocation10 + $0x19f8] sm:$0xff]  ;;  %v1892_v52 = vld [vmem:[#allocation10 + $0x1ae0] sm:$0xff] }
 0x3a3   : > { %2943 = vmatprep.mubr.f32.mxu0 %v6334_v26  ;;  %5213 = vmatpush1.bf16.msra.mxu1 %v5212_v56  ;;  %v5222_v23 = vpack.c.bf16 %v1863_v17, %v1855_v10  ;;  %v1894_v56 = vld [vmem:[#allocation10 + $0x1af0] sm:$0xff]  ;;  %v4976_v59 = vpack.c.bf16 %v1892_v52, %v1884_v37  ;;  %v5236_v17 = vpack.c.bf16 %v1910_v35, %v1902_v1  ;;  %v1959_v46 = vld [vmem:[#allocation10 + $0x1cf8] sm:$0xff]  ;;  %v1989_v35 = vld [vmem:[#allocation10 + $0x1de8] sm:$0xff] }
 0x3a4   : > { %3227 = vmatprep.mubr.f32.mxu1 %v6334_v26  ;;  %4959 = vmatprep.subr.bf16.mxu0 %v4958_v55  ;;  %v1862_v26 = vld [vmem:[#allocation10 + $0x19f0] sm:$0xff]  ;;  %v1911_v55 = vld [vmem:[#allocation10 + $0x1b78] sm:$0xff]  ;;  %v5232_v60 = vpack.c.bf16 %v1894_v56, %v1886_v53  ;;  %v5246_v52 = vpack.c.bf16 %v1959_v46, %v1951_v45  ;;  %v1973_v56 = vld [vmem:[#allocation10 + $0x1d68] sm:$0xff] }
 0x3a5   : > { %5215 = vmatprep.subr.bf16.mxu1 %v5214_v62  ;;  %v5224_v31 = vpack.c.bf16 %v1862_v26, %v1854_v22  ;;  %v1900_v62 = vld [vmem:[#allocation10 + $0x1b20] sm:$0xff]  ;;  %v1926_v22 = vld [vmem:[#allocation10 + $0x1bf0] sm:$0xff]  ;;  %v1941_v26 = vld [vmem:[#allocation10 + $0x1c68] sm:$0xff] }
 0x3a6   : > { %4961 = vmatpush1.bf16.msra.mxu0 %v4960_v2  ;;  %v4980_v10 = vpack.c.bf16 %v1908_v0, %v1900_v62  ;;  %v5240_v29 = vpack.c.bf16 %v1926_v22, %v1918_v42  ;;  %v1950_v37 = vld [vmem:[#allocation10 + $0x1cb0] sm:$0xff]  ;;  %v5250_v0 = vpack.c.bf16 %v1975_v57, %v1967_v32  ;;  %v2005_v22 = vld [vmem:[#allocation10 + $0x1e68] sm:$0xff] }
 0x3a7   : > { %5217 = vmatpush1.bf16.msra.mxu1 %v5216_v3  ;;  %4963 = vmatprep.subr.bf16.mxu0 %v4962_v4  ;;  %v5234_v4 = vpack.c.bf16 %v1911_v55, %v1903_v58  ;;  %v1958_v53 = vld [vmem:[#allocation10 + $0x1cf0] sm:$0xff] }
 0x3a8   : > { %5219 = vmatprep.subr.bf16.mxu1 %v5218_v63  ;;  %v5248_v55 = vpack.c.bf16 %v1958_v53, %v1950_v37  ;;  %v1966_v62 = vld [vmem:[#allocation10 + $0x1d30] sm:$0xff]  ;;  %v2037_v53 = vld [vmem:[#allocation10 + $0x1f68] sm:$0xff] }
 0x3a9   : > { %v1974_v1 = vld [vmem:[#allocation10 + $0x1d70] sm:$0xff] }
 0x3aa   : > { %4965 = vmatpush1.bf16.msra.mxu0 %v4964_v11  ;;  %v4982_v11 = vpack.c.bf16 %v1925_v6, %v1917_v5  ;;  %v1983_v5 = vld [vmem:[#allocation10 + $0x1db8] sm:$0xff]  ;;  %v5252_v9 = vpack.c.bf16 %v1974_v1, %v1966_v62  ;;  %v1990_v42 = vld [vmem:[#allocation10 + $0x1df0] sm:$0xff]  ;;  %v2053_v1 = vld [vmem:[#allocation10 + $0x1fe8] sm:$0xff] }
 0x3ab   : > { %5221 = vmatpush1.bf16.msra.mxu1 %v5220_v13  ;;  %4967 = vmatprep.subr.bf16.mxu0 %v4966_v20  ;;  %v1916_v13 = vld [vmem:[#allocation10 + $0x1ba0] sm:$0xff]  ;;  %v1991_v6 = vld [vmem:[#allocation10 + $0x1df8] sm:$0xff]  ;;  %v2022_v37 = vld [vmem:[#allocation10 + $0x1ef0] sm:$0xff] }
 0x3ac   : > { %5223 = vmatprep.subr.bf16.mxu1 %v5222_v23  ;;  %v1924_v20 = vld [vmem:[#allocation10 + $0x1be0] sm:$0xff]  ;;  %v1933_v23 = vld [vmem:[#allocation10 + $0x1c28] sm:$0xff]  ;;  %v2038_v62 = vld [vmem:[#allocation10 + $0x1f70] sm:$0xff] }
 0x3ad   : > { %v4984_v28 = vpack.c.bf16 %v1924_v20, %v1916_v13  ;;  %v1982_v13 = vld [vmem:[#allocation10 + $0x1db0] sm:$0xff]  ;;  %v5254_v20 = vpack.c.bf16 %v1991_v6, %v1983_v5  ;;  %v6371_v5 = vld [vmem:[#allocation11] sm:$0xff] }
 0x3ae   : > { %4969 = vmatpush1.bf16.msra.mxu0 %v4968_v30  ;;  %v4986_v30 = vpack.c.bf16 %v1941_v26, %v1933_v23  ;;  %v1999_v23 = vld [vmem:[#allocation10 + $0x1e38] sm:$0xff]  ;;  %v5256_v27 = vpack.c.bf16 %v1990_v42, %v1982_v13  ;;  %v3258_v42 = vld [vmem:[#allocation13 + $0x80] sm:$0xff] }
 0x3af   : > { %5225 = vmatpush1.bf16.msra.mxu1 %v5224_v31  ;;  %4971 = vmatprep.subr.bf16.mxu0 %v4970_v33  ;;  %v1932_v31 = vld [vmem:[#allocation10 + $0x1c20] sm:$0xff]  ;;  %v2007_v26 = vld [vmem:[#allocation10 + $0x1e78] sm:$0xff] }
 0x3b0   : > { %5227 = vmatprep.subr.bf16.mxu1 %v5226_v43  ;;  %v1940_v33 = vld [vmem:[#allocation10 + $0x1c60] sm:$0xff]  ;;  %v1949_v43 = vld [vmem:[#allocation10 + $0x1ca8] sm:$0xff] }
 0x3b1   : > { %v4988_v47 = vpack.c.bf16 %v1940_v33, %v1932_v31  ;;  %v1998_v31 = vld [vmem:[#allocation10 + $0x1e30] sm:$0xff]  ;;  %v5258_v33 = vpack.c.bf16 %v2007_v26, %v1999_v23  ;;  %v3290_v23 = vld [vmem:[#allocation13 + $0x180] sm:$0xff] }
 0x3b2   : > { %4973 = vmatpush1.bf16.msra.mxu0 %v4972_v50  ;;  %v4990_v50 = vpack.c.bf16 %v1957_v44, %v1949_v43  ;;  %v2015_v43 = vld [vmem:[#allocation10 + $0x1eb8] sm:$0xff]  ;;  %v5260_v46 = vpack.c.bf16 %v2006_v39, %v1998_v31  ;;  %v3291_v26 = vld [vmem:[#allocation13 + $0x188] sm:$0xff]  ;;  %v3274_v39 = vld [vmem:[#allocation13 + $0x100] sm:$0xff] }
 0x3b3   : > { %5229 = vmatpush1.bf16.msra.mxu1 %v5228_v25  ;;  %4975 = vmatprep.subr.bf16.mxu0 %v4974_v51  ;;  %v1948_v25 = vld [vmem:[#allocation10 + $0x1ca0] sm:$0xff]  ;;  %v2023_v44 = vld [vmem:[#allocation10 + $0x1ef8] sm:$0xff]  ;;  %v3243_v31 = vld [vmem:[#allocation13 + $0x8] sm:$0xff] }
 0x3b4   : > { %v6363_v2 = vpop.f32.mrb[4].mxu0  ;;  %v6365_v3 = vpop.f32.mrb[4].mxu1  ;;  %5231 = vmatprep.subr.bf16.mxu1 %v5230_v54  ;;  %v1956_v51 = vld [vmem:[#allocation10 + $0x1ce0] sm:$0xff]  ;;  %v1965_v54 = vld [vmem:[#allocation10 + $0x1d28] sm:$0xff] }
 0x3b5   : > { %v6367_v63 = vpop.f32.mrb[5].mxu0  ;;  %v6369_v7 = vpop.f32.mrb[5].mxu1  ;;  %v4992_v58 = vpack.c.bf16 %v1956_v51, %v1948_v25  ;;  %v2014_v25 = vld [vmem:[#allocation10 + $0x1eb0] sm:$0xff]  ;;  %v5262_v51 = vpack.c.bf16 %v2023_v44, %v2015_v43  ;;  %v3261_v43 = vld [vmem:[#allocation13 + $0x98] sm:$0xff] }
 0x3b6   : > { %4977 = vmatpush1.bf16.msra.mxu0 %v4976_v59  ;;  %v4994_v59 = vpack.c.bf16 %v1973_v56, %v1965_v54  ;;  %v2031_v54 = vld [vmem:[#allocation10 + $0x1f38] sm:$0xff]  ;;  %v5264_v57 = vpack.c.bf16 %v2022_v37, %v2014_v25  ;;  %v3277_v37 = vld [vmem:[#allocation13 + $0x118] sm:$0xff] }
 0x3b7   : > { %5233 = vmatpush1.bf16.msra.mxu1 %v5232_v60  ;;  %4979 = vmatprep.subr.bf16.mxu0 %v4978_v61  ;;  %v1964_v60 = vld [vmem:[#allocation10 + $0x1d20] sm:$0xff]  ;;  %v2039_v56 = vld [vmem:[#allocation10 + $0x1f78] sm:$0xff] }
 0x3b8   : > { %5235 = vmatprep.subr.bf16.mxu1 %v5234_v4  ;;  %v1972_v61 = vld [vmem:[#allocation10 + $0x1d60] sm:$0xff]  ;;  %v1981_v4 = vld [vmem:[#allocation10 + $0x1da8] sm:$0xff]  ;;  %v3276_v25 = vld [vmem:[#allocation13 + $0x110] sm:$0xff] }
 0x3b9   : > { %v4996_v38 = vpack.c.bf16 %v1972_v61, %v1964_v60  ;;  %v2030_v60 = vld [vmem:[#allocation10 + $0x1f30] sm:$0xff]  ;;  %v5266_v61 = vpack.c.bf16 %v2039_v56, %v2031_v54 }
 0x3ba   : > { %4981 = vmatpush1.bf16.msra.mxu0 %v4980_v10  ;;  %v4998_v10 = vpack.c.bf16 %v1989_v35, %v1981_v4  ;;  %v2047_v4 = vld [vmem:[#allocation10 + $0x1fb8] sm:$0xff]  ;;  %v3295_v56 = vld [vmem:[#allocation13 + $0x1a8] sm:$0xff] }
 0x3bb   : > { %5237 = vmatpush1.bf16.msra.mxu1 %v5236_v17  ;;  %4983 = vmatprep.subr.bf16.mxu0 %v4982_v11  ;;  %v1980_v17 = vld [vmem:[#allocation10 + $0x1da0] sm:$0xff]  ;;  %v2055_v35 = vld [vmem:[#allocation10 + $0x1ff8] sm:$0xff] }
 0x3bc   : > { %5239 = vmatprep.subr.bf16.mxu1 %v5238_v19  ;;  %v1988_v11 = vld [vmem:[#allocation10 + $0x1de0] sm:$0xff]  ;;  %v1997_v19 = vld [vmem:[#allocation10 + $0x1e28] sm:$0xff]  ;;  %v5270_v13 = vpack.c.bf16 %v2055_v35, %v2047_v4  ;;  %v3296_v35 = vld [vmem:[#allocation13 + $0x1b0] sm:$0xff] }
 0x3bd   : > { %v5000_v21 = vpack.c.bf16 %v1988_v11, %v1980_v17  ;;  %v2052_v17 = vld [vmem:[#allocation10 + $0x1fe0] sm:$0xff]  ;;  %v2046_v11 = vld [vmem:[#allocation10 + $0x1fb0] sm:$0xff] }
 0x3be   : > { %4985 = vmatpush1.bf16.msra.mxu0 %v4984_v28  ;;  %v5002_v28 = vpack.c.bf16 %v2005_v22, %v1997_v19  ;;  %v3259_v19 = vld [vmem:[#allocation13 + $0x88] sm:$0xff]  ;;  %v2065_v22 = vrot.slane %v6371_v5, %v706_v18  ;;  %v3265_v4 = vld [vmem:[#allocation13 + $0xb8] sm:$0xff] }
 0x3bf   : > { %5241 = vmatpush1.bf16.msra.mxu1 %v5240_v29  ;;  %4987 = vmatprep.subr.bf16.mxu0 %v4986_v30  ;;  %v1996_v29 = vld [vmem:[#allocation10 + $0x1e20] sm:$0xff] }
 0x3c0   : > { %5243 = vmatprep.subr.bf16.mxu1 %v5242_v41  ;;  %v2004_v30 = vld [vmem:[#allocation10 + $0x1e60] sm:$0xff]  ;;  %v2013_v41 = vld [vmem:[#allocation10 + $0x1ea8] sm:$0xff]  ;;  %v5403_v18 = vadd.f32 %v6367_v63, %v2065_v22 }
 0x3c1   : > { %v5004_v45 = vpack.c.bf16 %v2004_v30, %v1996_v29  ;;  %v5274_v29 = vpack.c.bf16 %v3259_v19, %v3258_v42  ;;  %v3242_v30 = vld [vmem:[#allocation13] sm:$0xff]  ;;  %v3267_v19 = vld [vmem:[#allocation13 + $0xc8] sm:$0xff] }
 0x3c2   : > { %4989 = vmatpush1.bf16.msra.mxu0 %v4988_v47  ;;  %v5006_v47 = vpack.c.bf16 %v2021_v8, %v2013_v41  ;;  %v3275_v41 = vld [vmem:[#allocation13 + $0x108] sm:$0xff]  ;;  %v3260_v8 = vld [vmem:[#allocation13 + $0x90] sm:$0xff]  ;;  %v3235_v63 = vmax.f32 %v5403_v18, 0.0  ;;  %v3266_v42 = vld [vmem:[#allocation13 + $0xc0] sm:$0xff] }
 0x3c3   : > { %5245 = vmatpush1.bf16.msra.mxu1 %v5244_v48  ;;  %4991 = vmatprep.subr.bf16.mxu0 %v4990_v50  ;;  %v2012_v48 = vld [vmem:[#allocation10 + $0x1ea0] sm:$0xff]  ;;  %v3298_v22 = vld [vmem:[#allocation13 + $0x1c0] sm:$0xff]  ;;  %v3300_v18 = vld [vmem:[#allocation13 + $0x1d0] sm:$0xff] }
 0x3c4   : > { %5247 = vmatprep.subr.bf16.mxu1 %v5246_v52  ;;  %v2020_v50 = vld [vmem:[#allocation10 + $0x1ee0] sm:$0xff]  ;;  %v2029_v52 = vld [vmem:[#allocation10 + $0x1f28] sm:$0xff] }
 0x3c5   : > { %v5008_v32 = vpack.c.bf16 %v2020_v50, %v2012_v48  ;;  %v3244_v48 = vld [vmem:[#allocation13 + $0x10] sm:$0xff]  ;;  %v3245_v50 = vld [vmem:[#allocation13 + $0x18] sm:$0xff] }
 0x3c6   : > { %4993 = vmatpush1.bf16.msra.mxu0 %v4992_v58  ;;  %v5010_v58 = vpack.c.bf16 %v2037_v53, %v2029_v52  ;;  %v3262_v52 = vld [vmem:[#allocation13 + $0xa0] sm:$0xff]  ;;  %v3263_v53 = vld [vmem:[#allocation13 + $0xa8] sm:$0xff] }
 0x3c7   : > { %5249 = vmatpush1.bf16.msra.mxu1 %v5248_v55  ;;  %4995 = vmatprep.subr.bf16.mxu0 %v4994_v59  ;;  %v2028_v55 = vld [vmem:[#allocation10 + $0x1f20] sm:$0xff] }
 0x3c8   : > { %5251 = vmatprep.subr.bf16.mxu1 %v5250_v0  ;;  %v2036_v59 = vld [vmem:[#allocation10 + $0x1f60] sm:$0xff]  ;;  %v2045_v0 = vld [vmem:[#allocation10 + $0x1fa8] sm:$0xff] }
 0x3c9   : > { %v5012_v6 = vpack.c.bf16 %v2036_v59, %v2028_v55  ;;  %v5282_v55 = vpack.c.bf16 %v3263_v53, %v3262_v52  ;;  %v3246_v59 = vld [vmem:[#allocation13 + $0x20] sm:$0xff]  ;;  %v3303_v52 = vld [vmem:[#allocation13 + $0x1e8] sm:$0xff] }
 0x3ca   : > { %4997 = vmatpush1.bf16.msra.mxu0 %v4996_v38  ;;  %v5268_v38 = vpack.c.bf16 %v2038_v62, %v2030_v60  ;;  %v3247_v60 = vld [vmem:[#allocation13 + $0x28] sm:$0xff] }
 0x3cb   : > { %5253 = vmatpush1.bf16.msra.mxu1 %v5252_v9  ;;  %4999 = vmatprep.subr.bf16.mxu0 %v4998_v10  ;;  %v5014_v9 = vpack.c.bf16 %v2053_v1, %v2045_v0  ;;  %v2044_v10 = vld [vmem:[#allocation10 + $0x1fa0] sm:$0xff]  ;;  %v3279_v0 = vld [vmem:[#allocation13 + $0x128] sm:$0xff]  ;;  %v3264_v1 = vld [vmem:[#allocation13 + $0xb0] sm:$0xff] }
 0x3cc   : > { %5255 = vmatprep.subr.bf16.mxu1 %v5254_v20  ;;  %v2054_v20 = vld [vmem:[#allocation10 + $0x1ff0] sm:$0xff] }
 0x3ce   : > { %5001 = vmatpush1.bf16.msra.mxu0 %v5000_v21  ;;  %v2073_v21 = vrot.slane %v6371_v5, %v714_v12  ;;  %v5276_v12 = vpack.c.bf16 %v3243_v31, %v3242_v30  ;;  %v3282_v30 = vld [vmem:[#allocation13 + $0x140] sm:$0xff] }
 0x3cf   : > { %5257 = vmatpush1.bf16.msra.mxu1 %v5256_v27  ;;  %5003 = vmatprep.subr.bf16.mxu0 %v5002_v28  ;;  %v5016_v27 = vpack.c.bf16 %v2052_v17, %v2044_v10  ;;  %v5272_v28 = vpack.c.bf16 %v2054_v20, %v2046_v11  ;;  %v3248_v10 = vld [vmem:[#allocation13 + $0x30] sm:$0xff]  ;;  %v3249_v17 = vld [vmem:[#allocation13 + $0x38] sm:$0xff] }
 0x3d0   : > { %5259 = vmatprep.subr.bf16.mxu1 %v5258_v33  ;;  %v5306_v33 = vpack.c.bf16 %v3291_v26, %v3290_v23  ;;  %v5405_v44 = vadd.f32 %v6369_v7, %v2073_v21  ;;  %v3294_v7 = vld [vmem:[#allocation13 + $0x1a0] sm:$0xff]  ;;  %v3280_v11 = vld [vmem:[#allocation13 + $0x130] sm:$0xff]  ;;  %v3281_v20 = vld [vmem:[#allocation13 + $0x138] sm:$0xff]  ;;  %v5288_v26 = vpack.c.bf16 %v3249_v17, %v3248_v10 }
 0x3d1   : > { %v5314_v62 = vpack.c.bf16 %v3295_v56, %v3294_v7  ;;  %v3299_v23 = vld [vmem:[#allocation13 + $0x1c8] sm:$0xff]  ;;  %v5320_v21 = vpack.c.bf16 %v3281_v20, %v3280_v11  ;;  %v3254_v7 = vld [vmem:[#allocation13 + $0x60] sm:$0xff]  ;;  %v3289_v10 = vld [vmem:[#allocation13 + $0x178] sm:$0xff] }
 0x3d2   : > { %5005 = vmatpush1.bf16.msra.mxu0 %v5004_v45  ;;  %v3292_v45 = vld [vmem:[#allocation13 + $0x190] sm:$0xff]  ;;  %v5322_v31 = vpack.c.bf16 %v3299_v23, %v3298_v22  ;;  %v3255_v56 = vld [vmem:[#allocation13 + $0x68] sm:$0xff]  ;;  %v3322_v17 = vld [vmem:[#allocation13 + $0x280] sm:$0xff] }
 0x3d3   : > { %5261 = vmatpush1.bf16.msra.mxu1 %v5260_v46  ;;  %5007 = vmatprep.subr.bf16.mxu0 %v5006_v47  ;;  %v3293_v46 = vld [vmem:[#allocation13 + $0x198] sm:$0xff]  ;;  %v5308_v47 = vpack.c.bf16 %v3275_v41, %v3274_v39  ;;  %v3268_v39 = vld [vmem:[#allocation13 + $0xd0] sm:$0xff]  ;;  %v3323_v11 = vld [vmem:[#allocation13 + $0x288] sm:$0xff] }
 0x3d4   : > { %5263 = vmatprep.subr.bf16.mxu1 %v5262_v51  ;;  %v5278_v51 = vpack.c.bf16 %v3261_v43, %v3260_v8  ;;  %v5310_v54 = vpack.c.bf16 %v3293_v46, %v3292_v45  ;;  %v3269_v41 = vld [vmem:[#allocation13 + $0xd8] sm:$0xff]  ;;  %v3252_v45 = vld [vmem:[#allocation13 + $0x50] sm:$0xff]  ;;  %v3355_v20 = vld [vmem:[#allocation13 + $0x388] sm:$0xff]  ;;  %v5338_v22 = vpack.c.bf16 %v3323_v11, %v3322_v17 }
 0x3d5   : > { %v3301_v8 = vld [vmem:[#allocation13 + $0x1d8] sm:$0xff]  ;;  %v3306_v23 = vld [vmem:[#allocation13 + $0x200] sm:$0xff] }
 0x3d6   : > { %5009 = vmatpush1.bf16.msra.mxu0 %v5008_v32  ;;  %v3237_v32 = vmax.f32 %v5405_v44, 0.0  ;;  %v3253_v46 = vld [vmem:[#allocation13 + $0x58] sm:$0xff]  ;;  %v3314_v11 = vld [vmem:[#allocation13 + $0x240] sm:$0xff] }
 0x3d7   : > { %5265 = vmatpush1.bf16.msra.mxu1 %v5264_v57  ;;  %5011 = vmatprep.subr.bf16.mxu0 %v5010_v58  ;;  %v5280_v57 = vpack.c.bf16 %v3245_v50, %v3244_v48  ;;  %v5312_v58 = vpack.c.bf16 %v3277_v37, %v3276_v25  ;;  %v5326_v48 = vpack.c.bf16 %v3301_v8, %v3300_v18  ;;  %v3285_v50 = vld [vmem:[#allocation13 + $0x158] sm:$0xff]  ;;  %v3270_v25 = vld [vmem:[#allocation13 + $0xe0] sm:$0xff]  ;;  %v3308_v8 = vld [vmem:[#allocation13 + $0x210] sm:$0xff] }
 0x3d8   : > { %5267 = vmatprep.subr.bf16.mxu1 %v5266_v61  ;;  %v3278_v61 = vld [vmem:[#allocation13 + $0x120] sm:$0xff]  ;;  %v5296_v53 = vpack.c.bf16 %v3253_v46, %v3252_v45  ;;  %v3341_v45 = vld [vmem:[#allocation13 + $0x318] sm:$0xff] }
 0x3d9   : > { %v3302_v37 = vld [vmem:[#allocation13 + $0x1e0] sm:$0xff] }
 0x3da   : > { %5013 = vmatpush1.bf16.msra.mxu0 %v5012_v6  ;;  %v3297_v6 = vld [vmem:[#allocation13 + $0x1b8] sm:$0xff]  ;;  %v3326_v46 = vld [vmem:[#allocation13 + $0x2a0] sm:$0xff] }
 0x3db   : > { %5269 = vmatpush1.bf16.msra.mxu1 %v5268_v38  ;;  %5015 = vmatprep.subr.bf16.mxu0 %v5014_v9  ;;  %v5316_v38 = vpack.c.bf16 %v3279_v0, %v3278_v61  ;;  %v5286_v9 = vpack.c.bf16 %v3265_v4, %v3264_v1  ;;  %v3305_v61 = vld [vmem:[#allocation13 + $0x1f8] sm:$0xff]  ;;  %v2061_v0 = vrot.slane %v6371_v5, %v702_v16 }
 0x3dc   : > { %5271 = vmatprep.subr.bf16.mxu1 %v5270_v13  ;;  %v5318_v13 = vpack.c.bf16 %v3297_v6, %v3296_v35  ;;  %v3256_v35 = vld [vmem:[#allocation13 + $0x70] sm:$0xff]  ;;  %v3257_v6 = vld [vmem:[#allocation13 + $0x78] sm:$0xff] }
 0x3dd   : > { %v5304_v16 = vpack.c.bf16 %v3257_v6, %v3256_v35  ;;  %v3330_v35 = vld [vmem:[#allocation13 + $0x2c0] sm:$0xff]  ;;  %v3331_v6 = vld [vmem:[#allocation13 + $0x2c8] sm:$0xff] }
 0x3de   : > { %5017 = vmatpush1.bf16.msra.mxu0 %v5016_v27  ;;  %v5290_v27 = vpack.c.bf16 %v3267_v19, %v3266_v42  ;;  %v5402_v42 = vadd.f32 %v6363_v2, %v2061_v0  ;;  %v3344_v0 = vld [vmem:[#allocation13 + $0x330] sm:$0xff]  ;;  %v5354_v17 = vpack.c.bf16 %v3331_v6, %v3330_v35 }
 0x3df   : > { %5273 = vmatpush1.bf16.msra.mxu1 %v5272_v28  ;;  %5275 = vmatprep.subr.bf16.mxu0 %v5274_v29  ;;  %v3250_v28 = vld [vmem:[#allocation13 + $0x40] sm:$0xff]  ;;  %v3251_v29 = vld [vmem:[#allocation13 + $0x48] sm:$0xff] }
 0x3e0   : > { %5307 = vmatprep.subr.bf16.mxu1 %v5306_v33  ;;  %v3283_v33 = vld [vmem:[#allocation13 + $0x148] sm:$0xff]  ;;  %v5292_v43 = vpack.c.bf16 %v3251_v29, %v3250_v28  ;;  %v3324_v29 = vld [vmem:[#allocation13 + $0x290] sm:$0xff] }
 0x3e1   : > { %2944 = vmatmul.mubr.f32.vlgmr.msra.gmra.mrb[6].mxu0 %v6345_v15  ;;  %v5324_v44 = vpack.c.bf16 %v3283_v33, %v3282_v30  ;;  %v3339_v28 = vld [vmem:[#allocation13 + $0x308] sm:$0xff]  ;;  %v3325_v30 = vld [vmem:[#allocation13 + $0x298] sm:$0xff] }
 0x3e2   : > { %3228 = vmatmul.mubr.f32.vlgmr.msra.gmra.mrb[6].mxu1 %v6345_v15  ;;  %5277 = vmatpush3.bf16.msra.mxu0 %v5276_v12  ;;  %v5284_v15 = vpack.c.bf16 %v3247_v60, %v3246_v59  ;;  %v5294_v12 = vpack.c.bf16 %v3269_v41, %v3268_v39  ;;  %v3273_v59 = vld [vmem:[#allocation13 + $0xf8] sm:$0xff]  ;;  %v3304_v60 = vld [vmem:[#allocation13 + $0x1f0] sm:$0xff]  ;;  %v3234_v41 = vmax.f32 %v5402_v42, 0.0  ;;  %v5342_v18 = vpack.c.bf16 %v3325_v30, %v3324_v29  ;;  %v3347_v42 = vld [vmem:[#allocation13 + $0x348] sm:$0xff] }
 0x3e3   : > { %3441 = vmatprep.mubr.f32.mxu0 %v3235_v63  ;;  %5309 = vmatpush3.bf16.msra.mxu1 %v5308_v47  ;;  %v3284_v47 = vld [vmem:[#allocation13 + $0x150] sm:$0xff]  ;;  %v3357_v33 = vld [vmem:[#allocation13 + $0x398] sm:$0xff] }
 0x3e4   : > { %3511 = vmatprep.mubr.f32.mxu1 %v3237_v32  ;;  %5279 = vmatprep.subr.bf16.mxu0 %v5278_v51  ;;  %v3271_v51 = vld [vmem:[#allocation13 + $0xe8] sm:$0xff]  ;;  %v5328_v63 = vpack.c.bf16 %v3285_v50, %v3284_v47  ;;  %v3286_v32 = vld [vmem:[#allocation13 + $0x160] sm:$0xff]  ;;  %v3317_v29 = vld [vmem:[#allocation13 + $0x258] sm:$0xff] }
 0x3e5   : > { %5311 = vmatprep.subr.bf16.mxu1 %v5310_v54  ;;  %v5298_v54 = vpack.c.bf16 %v3271_v51, %v3270_v25  ;;  %v3327_v47 = vld [vmem:[#allocation13 + $0x2a8] sm:$0xff]  ;;  %v3348_v30 = vld [vmem:[#allocation13 + $0x350] sm:$0xff] }
 0x3e6   : > { %5281 = vmatpush3.bf16.msra.mxu0 %v5280_v57  ;;  %v5330_v57 = vpack.c.bf16 %v3303_v52, %v3302_v37  ;;  %v3359_v50 = vld [vmem:[#allocation13 + $0x3a8] sm:$0xff]  ;;  %v5346_v37 = vpack.c.bf16 %v3327_v47, %v3326_v46  ;;  %v3310_v52 = vld [vmem:[#allocation13 + $0x220] sm:$0xff] }
 0x3e7   : > { %5313 = vmatpush3.bf16.msra.mxu1 %v5312_v58  ;;  %5283 = vmatprep.subr.bf16.mxu0 %v5282_v55  ;;  %v3287_v58 = vld [vmem:[#allocation13 + $0x168] sm:$0xff]  ;;  %v3272_v55 = vld [vmem:[#allocation13 + $0xf0] sm:$0xff]  ;;  %v3350_v46 = vld [vmem:[#allocation13 + $0x360] sm:$0xff] }
 0x3e8   : > { %5315 = vmatprep.subr.bf16.mxu1 %v5314_v62  ;;  %v5300_v62 = vpack.c.bf16 %v3255_v56, %v3254_v7  ;;  %v5332_v1 = vpack.c.bf16 %v3287_v58, %v3286_v32  ;;  %v5302_v4 = vpack.c.bf16 %v3273_v59, %v3272_v55  ;;  %v3343_v7 = vld [vmem:[#allocation13 + $0x328] sm:$0xff]  ;;  %v3328_v56 = vld [vmem:[#allocation13 + $0x2b0] sm:$0xff]  ;;  %v3329_v32 = vld [vmem:[#allocation13 + $0x2b8] sm:$0xff] }
 0x3e9   : > { %v3361_v58 = vld [vmem:[#allocation13 + $0x3b8] sm:$0xff] }
 0x3ea   : > { %5285 = vmatpush3.bf16.msra.mxu0 %v5284_v15  ;;  %v3288_v15 = vld [vmem:[#allocation13 + $0x170] sm:$0xff] }
 0x3eb   : > { %5317 = vmatpush3.bf16.msra.mxu1 %v5316_v38  ;;  %5287 = vmatprep.subr.bf16.mxu0 %v5286_v9  ;;  %v2069_v38 = vrot.slane %v6371_v5, %v710_v24  ;;  %v5334_v9 = vpack.c.bf16 %v3305_v61, %v3304_v60  ;;  %v5336_v19 = vpack.c.bf16 %v3289_v10, %v3288_v15  ;;  %v3312_v61 = vld [vmem:[#allocation13 + $0x230] sm:$0xff]  ;;  %v3362_v15 = vld [vmem:[#allocation13 + $0x3c0] sm:$0xff] }
 0x3ec   : > { %5319 = vmatprep.subr.bf16.mxu1 %v5318_v13  ;;  %v3354_v13 = vld [vmem:[#allocation13 + $0x380] sm:$0xff]  ;;  %v5350_v60 = vpack.c.bf16 %v3329_v32, %v3328_v56  ;;  %v3352_v32 = vld [vmem:[#allocation13 + $0x370] sm:$0xff] }
 0x3ed   : > { %v5404_v24 = vadd.f32 %v6365_v3, %v2069_v38  ;;  %v3363_v38 = vld [vmem:[#allocation13 + $0x3c8] sm:$0xff] }
 0x3ee   : > { %5289 = vmatpush3.bf16.msra.mxu0 %v5288_v26  ;;  %v3307_v26 = vld [vmem:[#allocation13 + $0x208] sm:$0xff] }
 0x3ef   : > { %5321 = vmatpush3.bf16.msra.mxu1 %v5320_v21  ;;  %5291 = vmatprep.subr.bf16.mxu0 %v5290_v27  ;;  %v3338_v21 = vld [vmem:[#allocation13 + $0x300] sm:$0xff]  ;;  %v5370_v27 = vpack.c.bf16 %v3355_v20, %v3354_v13  ;;  %v5340_v39 = vpack.c.bf16 %v3307_v26, %v3306_v23  ;;  %v3315_v13 = vld [vmem:[#allocation13 + $0x248] sm:$0xff]  ;;  %v3364_v23 = vld [vmem:[#allocation13 + $0x3d0] sm:$0xff] }
 0x3f0   : > { %5323 = vmatprep.subr.bf16.mxu1 %v5322_v31  ;;  %v3356_v31 = vld [vmem:[#allocation13 + $0x390] sm:$0xff]  ;;  %v5372_v2 = vpack.c.bf16 %v3339_v28, %v3338_v21  ;;  %v3346_v20 = vld [vmem:[#allocation13 + $0x340] sm:$0xff]  ;;  %v3365_v26 = vld [vmem:[#allocation13 + $0x3d8] sm:$0xff]  ;;  %v5356_v21 = vpack.c.bf16 %v3315_v13, %v3314_v11 }
 0x3f1   : > { %v5374_v3 = vpack.c.bf16 %v3357_v33, %v3356_v31  ;;  %v3316_v28 = vld [vmem:[#allocation13 + $0x250] sm:$0xff]  ;;  %v5390_v31 = vpack.c.bf16 %v3365_v26, %v3364_v23  ;;  %v3349_v33 = vld [vmem:[#allocation13 + $0x358] sm:$0xff] }
 0x3f2   : > { %5293 = vmatpush3.bf16.msra.mxu0 %v5292_v43  ;;  %v3309_v43 = vld [vmem:[#allocation13 + $0x218] sm:$0xff] }
 0x3f3   : > { %5325 = vmatpush3.bf16.msra.mxu1 %v5324_v44  ;;  %5295 = vmatprep.subr.bf16.mxu0 %v5294_v12  ;;  %v3340_v44 = vld [vmem:[#allocation13 + $0x310] sm:$0xff]  ;;  %v3236_v12 = vmax.f32 %v5404_v24, 0.0  ;;  %v5344_v25 = vpack.c.bf16 %v3309_v43, %v3308_v8  ;;  %v5388_v24 = vpack.c.bf16 %v3347_v42, %v3346_v20  ;;  %v5360_v8 = vpack.c.bf16 %v3317_v29, %v3316_v28 }
 0x3f4   : > { %5327 = vmatprep.subr.bf16.mxu1 %v5326_v48  ;;  %v3358_v48 = vld [vmem:[#allocation13 + $0x3a0] sm:$0xff]  ;;  %v5376_v51 = vpack.c.bf16 %v3341_v45, %v3340_v44  ;;  %v5392_v43 = vpack.c.bf16 %v3349_v33, %v3348_v30  ;;  %v3319_v45 = vld [vmem:[#allocation13 + $0x268] sm:$0xff] }
 0x3f6   : > { %5297 = vmatpush3.bf16.msra.mxu0 %v5296_v53  ;;  %v3311_v53 = vld [vmem:[#allocation13 + $0x228] sm:$0xff] }
 0x3f7   : > { %5329 = vmatpush3.bf16.msra.mxu1 %v5328_v63  ;;  %5299 = vmatprep.subr.bf16.mxu0 %v5298_v54  ;;  %v3342_v63 = vld [vmem:[#allocation13 + $0x320] sm:$0xff]  ;;  %v5378_v54 = vpack.c.bf16 %v3359_v50, %v3358_v48  ;;  %v5348_v55 = vpack.c.bf16 %v3311_v53, %v3310_v52  ;;  %v3351_v48 = vld [vmem:[#allocation13 + $0x368] sm:$0xff]  ;;  %v3369_v53 = vld [vmem:[#allocation13 + $0x3f8] sm:$0xff] }
 0x3f8   : > { %5331 = vmatprep.subr.bf16.mxu1 %v5330_v57  ;;  %v3360_v57 = vld [vmem:[#allocation13 + $0x3b0] sm:$0xff]  ;;  %v5380_v59 = vpack.c.bf16 %v3343_v7, %v3342_v63  ;;  %v5396_v50 = vpack.c.bf16 %v3351_v48, %v3350_v46 }
 0x3f9   : > { %v3320_v63 = vld [vmem:[#allocation13 + $0x270] sm:$0xff] }
 0x3fa   : > { %5301 = vmatpush3.bf16.msra.mxu0 %v5300_v62  ;;  %v3313_v62 = vld [vmem:[#allocation13 + $0x238] sm:$0xff] }
 0x3fb   : > { %5333 = vmatpush3.bf16.msra.mxu1 %v5332_v1  ;;  %5303 = vmatprep.subr.bf16.mxu0 %v5302_v4  ;;  %v5382_v1 = vpack.c.bf16 %v3361_v58, %v3360_v57  ;;  %v3345_v4 = vld [vmem:[#allocation13 + $0x338] sm:$0xff] }
 0x3fc   : > { %5335 = vmatprep.subr.bf16.mxu1 %v5334_v9  ;;  %v5352_v9 = vpack.c.bf16 %v3313_v62, %v3312_v61  ;;  %v5384_v10 = vpack.c.bf16 %v3345_v4, %v3344_v0  ;;  %v3353_v57 = vld [vmem:[#allocation13 + $0x378] sm:$0xff]  ;;  %v2089_v61 = vrot.slane %v6371_v5, %v730_v34  ;;  %v3848_v34 = vld [vmem:[#allocation14] ss:$0 sm:$0xff] }
 0x3fd   : > { %v5400_v58 = vpack.c.bf16 %v3353_v57, %v3352_v32 }
 0x3fe   : > { %5305 = vmatpush3.bf16.msra.mxu0 %v5304_v16  ;;  %v5386_v16 = vpack.c.bf16 %v3363_v38, %v3362_v15 }
 0x3ff   : > { %5337 = vmatpush3.bf16.msra.mxu1 %v5336_v19  ;;  %5339 = vmatprep.subr.bf16.mxu0 %v5338_v22  ;;  %v3332_v19 = vld [vmem:[#allocation13 + $0x2d0] sm:$0xff]  ;;  %v3333_v22 = vld [vmem:[#allocation13 + $0x2d8] sm:$0xff] }
 0x400   : > { %5371 = vmatprep.subr.bf16.mxu1 %v5370_v27  ;;  %v5358_v27 = vpack.c.bf16 %v3333_v22, %v3332_v19 }
 0x401   : > { %3442 = vmatmul.mubr.f32.vlgmr.msra.gmra.mrb[8].mxu0 %v3234_v41  ;;  %v3335_v41 = vld [vmem:[#allocation13 + $0x2e8] sm:$0xff] }
 0x402   : > { %3512 = vmatmul.mubr.f32.vlgmr.msra.gmra.mrb[8].mxu1 %v3236_v12  ;;  %5341 = vmatpush3.bf16.msra.mxu0 %v5340_v39  ;;  %v3334_v39 = vld [vmem:[#allocation13 + $0x2e0] sm:$0xff] }
 0x403   : > { %5373 = vmatpush3.bf16.msra.mxu1 %v5372_v2  ;;  %5343 = vmatprep.subr.bf16.mxu0 %v5342_v18  ;;  %v3366_v2 = vld [vmem:[#allocation13 + $0x3e0] sm:$0xff]  ;;  %v3367_v18 = vld [vmem:[#allocation13 + $0x3e8] sm:$0xff]  ;;  %v5362_v44 = vpack.c.bf16 %v3335_v41, %v3334_v39 }
 0x404   : > { %5375 = vmatprep.subr.bf16.mxu1 %v5374_v3  ;;  %v5394_v12 = vpack.c.bf16 %v3367_v18, %v3366_v2  ;;  %v3318_v3 = vld [vmem:[#allocation13 + $0x260] sm:$0xff] }
 0x405   : > { %v5364_v47 = vpack.c.bf16 %v3319_v45, %v3318_v3 }
 0x406   : > { %5345 = vmatpush3.bf16.msra.mxu0 %v5344_v25  ;;  %v3336_v25 = vld [vmem:[#allocation13 + $0x2f0] sm:$0xff] }
 0x407   : > { %5377 = vmatpush3.bf16.msra.mxu1 %v5376_v51  ;;  %5347 = vmatprep.subr.bf16.mxu0 %v5346_v37  ;;  %v3337_v51 = vld [vmem:[#allocation13 + $0x2f8] sm:$0xff]  ;;  %v3368_v37 = vld [vmem:[#allocation13 + $0x3f0] sm:$0xff] }
 0x408   : > { %5379 = vmatprep.subr.bf16.mxu1 %v5378_v54  ;;  %v5366_v52 = vpack.c.bf16 %v3337_v51, %v3336_v25  ;;  %v3321_v54 = vld [vmem:[#allocation13 + $0x278] sm:$0xff]  ;;  %v5398_v7 = vpack.c.bf16 %v3369_v53, %v3368_v37 }
 0x409   : > { %v5368_v56 = vpack.c.bf16 %v3321_v54, %v3320_v63 }
 0x40a   : > { %5349 = vmatpush3.bf16.msra.mxu0 %v5348_v55  ;;  %v2077_v55 = vrot.slane %v6371_v5, %v718_v14 }
 0x40b   : > { %5381 = vmatpush3.bf16.msra.mxu1 %v5380_v59  ;;  %5351 = vmatprep.subr.bf16.mxu0 %v5350_v60  ;;  %v2085_v59 = vrot.slane %v6371_v5, %v726_v36  ;;  %v2081_v60 = vrot.slane %v6371_v5, %v722_v40 }
 0x40c   : > { %5383 = vmatprep.subr.bf16.mxu1 %v5382_v1 }
 0x40e   : > { %5353 = vmatpush3.bf16.msra.mxu0 %v5352_v9 }
 0x40f   : > { %5385 = vmatpush3.bf16.msra.mxu1 %v5384_v10  ;;  %5355 = vmatprep.subr.bf16.mxu0 %v5354_v17 }
 0x410   : > { %5387 = vmatprep.subr.bf16.mxu1 %v5386_v16 }
 0x412   : > { %5357 = vmatpush3.bf16.msra.mxu0 %v5356_v21 }
 0x413   : > { %5389 = vmatpush3.bf16.msra.mxu1 %v5388_v24  ;;  %5359 = vmatprep.subr.bf16.mxu0 %v5358_v27  ;;  %v3657_v27 = vld [vmem:[%s6231_s10] sm:$0xff] }
 0x414   : > { %5391 = vmatprep.subr.bf16.mxu1 %v5390_v31 }
 0x416   : > { %5361 = vmatpush3.bf16.msra.mxu0 %v5360_v8 }
 0x417   : > { %5393 = vmatpush3.bf16.msra.mxu1 %v5392_v43  ;;  %5363 = vmatprep.subr.bf16.mxu0 %v5362_v44 }
 0x418   : > { %5395 = vmatprep.subr.bf16.mxu1 %v5394_v12 }
 0x41a   : > { %5365 = vmatpush3.bf16.msra.mxu0 %v5364_v47 }
 0x41b   : > { %5397 = vmatpush3.bf16.msra.mxu1 %v5396_v50  ;;  %5367 = vmatprep.subr.bf16.mxu0 %v5366_v52 }
 0x41c   : > { %5399 = vmatprep.subr.bf16.mxu1 %v5398_v7 }
 0x41e   : > { %5369 = vmatpush3.bf16.msra.mxu0 %v5368_v56 }
 0x41f   : > { %5401 = vmatpush3.bf16.msra.mxu1 %v5400_v58 }
 0x4b4   : > { %v2945_v62 = vpop.f32.mrb[6].mxu0 }
 0x4b5   : > { %v5406_v0 = vadd.f32 %v2945_v62, %v2077_v55  ;;  %v3229_v1 = vpop.f32.mrb[6].mxu1  ;;  %v2947_v4 = vpop.f32.mrb[7].mxu0 }
 0x4b6   : > { %v5408_v35 = vadd.f32 %v3229_v1, %v2085_v59  ;;  %v5407_v6 = vadd.f32 %v2947_v4, %v2081_v60  ;;  %v3231_v15 = vpop.f32.mrb[7].mxu1 }
 0x4b7   : > { %v5409_v14 = vadd.f32 %v3231_v15, %v2089_v61  ;;  %v3238_v9 = vmax.f32 %v5406_v0, 0.0 }
 0x4b8   : > { %v3239_v38 = vmax.f32 %v5407_v6, 0.0  ;;  %v3240_v36 = vmax.f32 %v5408_v35, 0.0 }
 0x4b9   : > { %v3241_v10 = vmax.f32 %v5409_v14, 0.0 }
 0x4ba   : > { %3581 = vmatprep.mubr.f32.mxu0 %v3239_v38 }
 0x4bb   : > { %3651 = vmatprep.mubr.f32.mxu1 %v3241_v10  ;;  %3582 = vmatmul.mubr.f32.vlgmr.msra.gmra.mrb[10].mxu0 %v3238_v9 }
 0x4bc   : > { %3652 = vmatmul.mubr.f32.vlgmr.msra.gmra.mrb[10].mxu1 %v3240_v36 }
 0x4d4   : > { %v3886_v40 = vpop.f32.mrb[8].mxu0 }
 0x4d5   : > { %v3921_v49 = vpop.f32.mrb[8].mxu1  ;;  %v3887_v5 = vpop.f32.mrb[9].mxu0 }
 0x4d6   : > { %v3888_v17 = vadd.f32 %v3887_v5, %v3886_v40  ;;  %v3922_v11 = vpop.f32.mrb[9].mxu1 }
 0x4d7   : > { %v3923_v13 = vadd.f32 %v3922_v11, %v3921_v49 }
 0x4d8   : > { %v3444_v20 = vadd.f32 %v3888_v17, %v3848_v34 }
 0x4da   : > { %v3514_v16 = vadd.f32 %v3923_v13, %v3444_v20 }
 0x58e   : > { %v3956_v42 = vpop.f32.mrb[10].mxu0 }
 0x58f   : > { %v3991_v19 = vpop.f32.mrb[10].mxu1  ;;  %v3957_v22 = vpop.f32.mrb[11].mxu0 }
 0x590   : > { %v3958_v23 = vadd.f32 %v3957_v22, %v3956_v42  ;;  %v3992_v26 = vpop.f32.mrb[11].mxu1 }
 0x591   : > { %v3993_v21 = vadd.f32 %v3992_v26, %v3991_v19 }
 0x592   : > { %v3584_v24 = vadd.f32 %v3958_v23, %v3514_v16 }
 0x594   : > { %v3654_v28 = vadd.f32 %v3993_v21, %v3584_v24 }
 0x596   : > { %v3658_v29 = vmul.f32 %v3657_v27, %v3654_v28 }
 0x598   : > { %3659 = vst [vmem:[%s439_s13] sm:$0xff] %v3658_v29 }
 0x599   : > { %5792 = shalt.err (!%p5789_p7)
}
 0x59a   : > { %s5793_s4 = scalar_lea.hbm %s6410_s2, 128  ;;  %s5797_s0 = scalar_lea.hbm %s6461_s8, 512 }
 0x59b   : > { %p5794_p8 = scmp.ne.s32.totalorder %s6410_s2, %s5793_s4  ;;  %p5798_p13 = scmp.lt.u32.totalorder %s6410_s2, %s6461_s8 }
 0x59c   : > { %p5799_p0 = scmp.lt.u32.totalorder %s5797_s0, %s5793_s4  ;;  %p5801_p9 = scmp.lt.u32.totalorder %s5793_s4, %s6410_s2 }
 0x59d   : > { %p5795_p12 = pnand %p5794_p8, %p6496_p10 }
 0x59e   : > { %p5800_p2 = por %p5799_p0, %p5798_p13 }
 0x59f   : > { %p5796_p1 = pneg %p5795_p12 }
 0x5a0   : > { %p5802_p4 = por %p5801_p9, %p5800_p2 }
 0x5a2   : > { %p5803_p6 = pnand %p5802_p4, %p5796_p1 }
 0x5a4   : > { %5806 = shalt.err (!%p5803_p6)
}
 0x5a5   : > { %5462 = dma.vmem_to_hbm [thread:$0]  (%p6496_p10), %s6412_s21, 128, %s6410_s2, %s3661_s24  }
 0x5a6 PF: > { %p5507_p3 = scmp.ge.s32.totalorder %s5865_s30, 2  ;;  %s3686_s10 = sand.u32 1, %s5853_s27  }
 0x5a7   : > { %p6497_p5 = scmp.ne.s32.totalorder %s6482_s14, 0  ;;  %s3687_s20 = scalar_lea.sflag [#allocation4], %s3686_s10 }
 0x5a9   : > { %p5491_p11 = pnand %p5507_p3, %p6497_p5 }
 0x5ab   : > { %5848 = dma.done.wait (!%p5491_p11), %s3687_s20, 128  }
 0x5ac   : > { %5850 = vsyncadd (!%p5491_p11), %s3687_s20, 4294967168  ;;  %p27_p7 = scmp.ge.s32.totalorder %s6106_s15, 6   ;;  %s6498_s27 = smov %s5857_s28 }
 0x5ad   : > { %s6499_s28 = smov %s5861_s29  ;;  %s6500_s29 = smov %s6117_s22 }
 0x5ae   : > { %s6501_s30 = smov %s6106_s15  ;;  %29 = sbr.rel (!%p27_p7) target bundleno = 15 (0xf), region = 134 }
 0x5b5   :  { %3692 = vsyncpa [#allocation3], 1 }
 0x5b6   :  { %3694 = vsyncpa [#allocation3 + $0x1], 1 }
 0x5b7   :  { %3695 = vsyncpa [#allocation6], 1 }
 0x5b8   :  { %3697 = vsyncpa [#allocation6 + $0x1], 1 }
 0x5b9   :  { %3698 = vsyncpa [#allocation9], 1 }
 0x5ba   :  { %3699 = vsyncpa [#allocation12], 1 }
 0x5bb   :  { %3700 = vsyncpa [#allocation15], 1 }
 0x5bc   :  { %3701 = vsyncpa [#allocation4], 1 }
 0x5bd   :  { %3703 = vsyncpa [#allocation4 + $0x1], 1 }

</bundles_post_ra>
